<compile_context>
chip_gen: v6e
topology: v6e:2x2x1
jax: 0.10.0
libtpu: 0.0.40
codegen_flags: <defaults>
</compile_context>

<pallas_src>
import functools

import jax
import jax.numpy as jnp
import numpy as np
from jax.experimental import pallas as pl
from jax.experimental.pallas import tpu as pltpu

# ----------------------- model hyper-parameters (small test shapes) -----------
BATCH = 8            # >=8 rows per block -> full sublane / MXU-row utilization
MAX_LEN = 256        # args.maxlen (sequence length); tiled, scales to 4096
EMBED_DIM = 768      # BigBird/BERT hidden size (lane-aligned: 6 * 128)
NUM_LABELS = 2
LABEL_PAD = 128      # classifier width padded to one full lane group
TILE_S = 128         # sequence tile (pipelined over the "arbitrary" axis)
TILE_B = 8           # batch tile (sharded over the "parallel" axis)


# ------------------------------ fused head kernel ------------------------------
def _head_kernel(hidden_ref, w_ref, b_ref, out_ref, acc_ref, *, inv_len):
    """Fused sequence average-pool + Linear classifier (padded to 128 labels).

    hidden_ref: (tile_b, tile_s, E)  bf16 BigBird last_hidden_state tile
    w_ref:      (E, LABEL_PAD)       classifier weight, pre-transposed + zero-padded
    b_ref:      (1, LABEL_PAD)       classifier bias, zero-padded
    out_ref:    (tile_b, LABEL_PAD)  padded logits (lane-dense store)
    acc_ref:    (tile_b, E) f32      sequence-sum accumulator (VMEM scratch)
    """
    s = pl.program_id(1)

    @pl.when(s == 0)
    def _init():
        acc_ref[...] = jnp.zeros_like(acc_ref)

    # Upcast bf16 -> f32 in-kernel and accumulate a pure sum over the sequence.
    x = hidden_ref[...].astype(jnp.float32)          # (tile_b, tile_s, E)
    acc_ref[...] += jnp.sum(x, axis=1)               # (tile_b, E)

    @pl.when(s == pl.num_programs(1) - 1)
    def _finalize():
        logits = jnp.dot(acc_ref[...], w_ref[...],
                         preferred_element_type=jnp.float32)  # (tile_b, LABEL_PAD)
        # 1/S (mean) applied to the tiny logits tile instead of B*E pooled elems.
        out_ref[...] = logits * inv_len + b_ref[...]


# ------------------------------ forward wrapper --------------------------------
@jax.jit
def bigbird_classifier_forward(last_hidden_state, params):
    """last_hidden_state: (B, max_len, embed_dim), bf16 (backbone native dtype)."""
    B, S, E = last_hidden_state.shape
    tile_b = min(B, TILE_B)
    tile_s = min(S, TILE_S)
    assert B % tile_b == 0 and S % tile_s == 0, "shapes must tile evenly"
    grid = (B // tile_b, S // tile_s)

    cost = pl.CostEstimate(
        flops=B * S * E + 2 * B * E * LABEL_PAD,
        transcendentals=0,
        bytes_accessed=(B * S * E * last_hidden_state.dtype.itemsize
                        + E * LABEL_PAD * 4
                        + B * LABEL_PAD * 4),
    )

    kernel = functools.partial(_head_kernel, inv_len=1.0 / S)

    padded_logits = pl.pallas_call(
        kernel,
        out_shape=jax.ShapeDtypeStruct((B, LABEL_PAD), jnp.float32),
        grid_spec=pltpu.PrefetchScalarGridSpec(
            num_scalar_prefetch=0,
            grid=grid,
            in_specs=[
                pl.BlockSpec((tile_b, tile_s, E), lambda b, s: (b, s, 0)),
                pl.BlockSpec((E, LABEL_PAD), lambda b, s: (0, 0)),
                pl.BlockSpec((1, LABEL_PAD), lambda b, s: (0, 0)),
            ],
            out_specs=pl.BlockSpec((tile_b, LABEL_PAD), lambda b, s: (b, 0)),
            scratch_shapes=[pltpu.VMEM((tile_b, EMBED_DIM), jnp.float32)],
        ),
        compiler_params=pltpu.CompilerParams(
            dimension_semantics=("parallel", "arbitrary"),
        ),
        cost_estimate=cost,
    )(last_hidden_state, params["w_pad"], params["b_pad"])

    # Drop the zero-padded label columns outside the kernel (tiny slice).
    return padded_logits[:, :NUM_LABELS]


# ----------------------------- parameter setup ---------------------------------
def init_params(key):
    kw, kb = jax.random.split(key)
    bound = 1.0 / (EMBED_DIM ** 0.5)
    # Stored pre-transposed: (in_features, out_features) for row-major MXU matmul.
    w = jax.random.uniform(kw, (EMBED_DIM, NUM_LABELS), jnp.float32, -bound, bound)
    b = jax.random.uniform(kb, (NUM_LABELS,), jnp.float32, -bound, bound)
    # Zero-pad labels to 128 once (lane-dense out store inside the kernel).
    w_pad = jnp.zeros((EMBED_DIM, LABEL_PAD), jnp.float32).at[:, :NUM_LABELS].set(w)
    b_pad = jnp.zeros((1, LABEL_PAD), jnp.float32).at[0, :NUM_LABELS].set(b)
    return {"w": w, "b": b, "w_pad": w_pad, "b_pad": b_pad}


# --------------------------- pure-JAX reference ---------------------------------
def _ref_forward(last_hidden_state, params):
    x = last_hidden_state.astype(jnp.float32)
    pooled = jnp.mean(x, axis=1)          # == AvgPool2d((max_len, 1)) then squeeze
    return pooled @ params["w"] + params["b"]


# ----------------------------------- main ---------------------------------------
if __name__ == "__main__":
    key = jax.random.PRNGKey(0)
    k_x, k_p = jax.random.split(key)

    # Stand-in for the BigBird backbone output, in its native bf16.
    hidden = jax.random.normal(
        k_x, (BATCH, MAX_LEN, EMBED_DIM), jnp.float32).astype(jnp.bfloat16)
    params = init_params(k_p)

    logits = bigbird_classifier_forward(hidden, params)
    logits = jax.block_until_ready(logits)

    ref = _ref_forward(hidden, params)
    np.testing.assert_allclose(np.asarray(logits), np.asarray(ref),
                               rtol=2e-3, atol=2e-3)
    print("KERNEL_OK")
</pallas_src>

<mosaic_0001>
module attributes {stable_mosaic.version = 11 : i64} {
  func.func @_head_kernel(%arg0: i32, %arg1: i32, %arg2: memref<8x128x768xbf16, #tpu.memory_space<vmem>>, %arg3: memref<768x128xf32, #tpu.memory_space<vmem>>, %arg4: memref<1x128xf32, #tpu.memory_space<vmem>>, %arg5: memref<8x128xf32, #tpu.memory_space<vmem>>, %arg6: memref<8x768xf32, #tpu.memory_space<vmem>>) attributes {dimension_semantics = [#tpu.dimension_semantics<parallel>, #tpu.dimension_semantics<arbitrary>], iteration_bounds = array<i64: 1, 2>, scalar_prefetch = 0 : i64, scratch_operands = 1 : i64, tpu.core_type = #tpu.core_type<tc>, window_params = [{transform_indices = @transform_0, window_bounds = array<i64: 8, 128, 768>}, {pipeline_mode = #tpu.pipeline_mode<synchronous>, transform_indices = @transform_1, window_bounds = array<i64: 768, 128>}, {pipeline_mode = #tpu.pipeline_mode<synchronous>, transform_indices = @transform_2, window_bounds = array<i64: 1, 128>}, {transform_indices = @transform_3, window_bounds = array<i64: 8, 128>}]} {
    %c0_i32 = arith.constant 0 : i32
    %0 = arith.cmpi eq, %arg1, %c0_i32 : i32
    %1 = arith.extui %0 : i1 to i32
    %c0_i32_0 = arith.constant 0 : i32
    %2 = arith.cmpi ne, %1, %c0_i32_0 : i32
    scf.if %2 {
      %cst_8 = arith.constant 0.000000e+00 : f32
      %12 = vector.broadcast %cst_8 : f32 to vector<8x768xf32>
      %c0_9 = arith.constant 0 : index
      %c0_10 = arith.constant 0 : index
      %13 = vector.load %arg6[%c0_9, %c0_10] : memref<8x768xf32, #tpu.memory_space<vmem>>, vector<8x768xf32>
      tpu.vector_store %arg6[%c0_9, %c0_10], %12 {strides = array<i32>} : memref<8x768xf32, #tpu.memory_space<vmem>>, vector<8x768xf32>,
    } else {
    }
    %c0 = arith.constant 0 : index
    %c0_1 = arith.constant 0 : index
    %c0_2 = arith.constant 0 : index
    %3 = vector.load %arg2[%c0, %c0_1, %c0_2] : memref<8x128x768xbf16, #tpu.memory_space<vmem>>, vector<8x128x768xbf16>
    %4 = arith.extf %3 : vector<8x128x768xbf16> to vector<8x128x768xf32>
    %c0_3 = arith.constant 0 : index
    %c0_4 = arith.constant 0 : index
    %5 = vector.load %arg6[%c0_3, %c0_4] : memref<8x768xf32, #tpu.memory_space<vmem>>, vector<8x768xf32>
    %cst = arith.constant dense<0.000000e+00> : vector<8x768xf32>
    %6 = vector.multi_reduction <add>, %4, %cst [1] : vector<8x128x768xf32> to vector<8x768xf32>
    %7 = arith.addf %5, %6 : vector<8x768xf32>
    %c0_5 = arith.constant 0 : index
    %c0_6 = arith.constant 0 : index
    %8 = vector.load %arg6[%c0_5, %c0_6] : memref<8x768xf32, #tpu.memory_space<vmem>>, vector<8x768xf32>
    tpu.vector_store %arg6[%c0_5, %c0_6], %7 {strides = array<i32>} : memref<8x768xf32, #tpu.memory_space<vmem>>, vector<8x768xf32>,
    %c1_i32 = arith.constant 1 : i32
    %9 = arith.cmpi eq, %arg1, %c1_i32 : i32
    %10 = arith.extui %9 : i1 to i32
    %c0_i32_7 = arith.constant 0 : i32
    %11 = arith.cmpi ne, %10, %c0_i32_7 : i32
    scf.if %11 {
      %c0_8 = arith.constant 0 : index
      %c0_9 = arith.constant 0 : index
      %12 = vector.load %arg6[%c0_8, %c0_9] : memref<8x768xf32, #tpu.memory_space<vmem>>, vector<8x768xf32>
      %c0_10 = arith.constant 0 : index
      %c0_11 = arith.constant 0 : index
      %13 = vector.load %arg3[%c0_10, %c0_11] : memref<768x128xf32, #tpu.memory_space<vmem>>, vector<768x128xf32>
      %cst_12 = arith.constant dense<0.000000e+00> : vector<8x128xf32>
      %14 = tpu.matmul %12, %13, %cst_12 {dimension_numbers = #tpu.dot_dimension_numbers<[1], [0], [0], [1], [0, 0, 1, 1], [], []>} : vector<8x768xf32>, vector<768x128xf32>, vector<8x128xf32> -> vector<8x128xf32>
      %cst_13 = arith.constant 3.906250e-03 : f32
      %15 = vector.broadcast %cst_13 : f32 to vector<8x128xf32>
      %16 = arith.mulf %14, %15 : vector<8x128xf32>
      %c0_14 = arith.constant 0 : index
      %c0_15 = arith.constant 0 : index
      %17 = vector.load %arg4[%c0_14, %c0_15] : memref<1x128xf32, #tpu.memory_space<vmem>>, vector<1x128xf32>
      %18 = vector.broadcast %17 : vector<1x128xf32> to vector<8x128xf32>
      %19 = arith.addf %16, %18 : vector<8x128xf32>
      %c0_16 = arith.constant 0 : index
      %c0_17 = arith.constant 0 : index
      %20 = vector.load %arg5[%c0_16, %c0_17] : memref<8x128xf32, #tpu.memory_space<vmem>>, vector<8x128xf32>
      tpu.vector_store %arg5[%c0_16, %c0_17], %19 {strides = array<i32>} : memref<8x128xf32, #tpu.memory_space<vmem>>, vector<8x128xf32>,
    } else {
    }
    return
  }
  func.func @transform_0(%arg0: i32, %arg1: i32) -> (i32, i32, i32) {
    %c0_i32 = arith.constant 0 : i32
    %c0_i32_0 = arith.constant 0 : i32
    return %arg0, %arg1, %c0_i32 : i32, i32, i32
  }
  func.func @transform_1(%arg0: i32, %arg1: i32) -> (i32, i32) {
    %c0_i32 = arith.constant 0 : i32
    %c0_i32_0 = arith.constant 0 : i32
    %c0_i32_1 = arith.constant 0 : i32
    return %c0_i32, %c0_i32_0 : i32, i32
  }
  func.func @transform_2(%arg0: i32, %arg1: i32) -> (i32, i32) {
    %c0_i32 = arith.constant 0 : i32
    %c0_i32_0 = arith.constant 0 : i32
    %c0_i32_1 = arith.constant 0 : i32
    return %c0_i32, %c0_i32_0 : i32, i32
  }
  func.func @transform_3(%arg0: i32, %arg1: i32) -> (i32, i32) {
    %c0_i32 = arith.constant 0 : i32
    %c0_i32_0 = arith.constant 0 : i32
    return %arg0, %c0_i32 : i32, i32
  }
}

</mosaic_0001>

<bundles_post_ra>
// kernel: bigbird_classifier_forward.1
= control target key start
LH: loop header
LB: loop body
LE: loop exit
PB: predicated region body
PF: predicated region fallthrough
CT: control target
= control target key end

     0   :  { %8 = vsyncpa [#allocation4], 0  ;;  %s7127_s0 = inlined_call_operand.hbm [shape: bf16[8,256,768], index: 0, kind: input, shape index: {}]   ;;  %s7128_s1 = inlined_call_operand.hbm [shape: f32[768,128], index: 1, kind: input, shape index: {}]   ;;  %s7129_s2 = inlined_call_operand.hbm [shape: f32[1,128], index: 2, kind: input, shape index: {}]   ;;  %s7130_s3 = inlined_call_operand.vmem [shape: f32[8,128], index: 3, kind: output, shape index: {}]  }
   0x1   :  { %10 = vsyncpa [#allocation4 + $0x1], 0 }
   0x2   :  { %11 = vsyncpa [#allocation6], 0  ;;  %s3323_s12 = smov 0   ;;  %s3325_s13 = smov 0  }
   0x3   :  { %s3327_s14 = smov 0   ;;  %s3329_s15 = smov 0  }
   0x4   :  { %s3331_s16 = smov 0   ;;  %s3333_s17 = smov 0  }
   0x5 LB: > { %s2970_s18 = sadd.s32 4294967295, %s3290_s17   ;;  %s26_s19 = sadd.s32 1, %s3286_s16  ;;  %s3290_s17 = sphi %s3333_s17, %s17_s17   ;;  %s3286_s16 = sphi %s3331_s16, %s9278_s16   ;;  %s3282_s15 = sphi %s3329_s15, %s9277_s15   ;;  %s3278_s14 = sphi %s3327_s14, %s9276_s14   ;;  %s3274_s13 = sphi %s3325_s13, %s9275_s13   ;;  %s3270_s12 = sphi %s3323_s12, %s9274_s12  }
   0x6   : > { %p27_p0 = scmp.ge.s32.totalorder %s26_s19, 2  ;;  %s38_s20 = sadd.s32 1, %s3278_s14 }
   0x7   : > { %p45_p1 = scmp.ne.s32.totalorder %s3278_s14, %s3274_s13  ;;  %p46_p2 = scmp.eq.s32.totalorder %s3290_s17, 0 }
   0x8   : > { %s9280_s19 = smov (%p27_p0, %s26_s19), 0  ;;  %p51_p4 = scmp.ne.s32.totalorder %s3274_s13, %s3270_s12 }
   0x9   : > { %p3359_p3 = por %p46_p2, %p45_p1  ;;  %s34_s22 = ssub.s32 %s3286_s16, %s9280_s19 }
   0xa   : > { %p3366_p5 = scmp.eq.s32.totalorder %s2970_s18, 0  ;;  %p36_p6 = scmp.eq.s32.totalorder %s34_s22, 0 }
   0xb   : > { %p2971_p7 = scmp.ge.s32.totalorder %s3290_s17, 1  ;;  %p130_p9 = scmp.lt.s32.totalorder %s3290_s17, 3 }
   0xc   : > { %s7804_s23 = scalar_select %p3366_p5, 1, 0 }
   0xd   : > { %p3373_p8 = por %p3366_p5, %p51_p4  ;;  %p3381_p10 = pnand %p2971_p7, %p130_p9 }
   0xe   : > { %s3379_s25 = scalar_select %p36_p6, %s3278_s14, %s38_s20  }
   0xf   : > { %p3114_p11 = pneg %p3381_p10  ;;  %s3292_s27 = smov [#allocation5]  }
  0x10   : > { %s142_s28 = sshll.u32 %s3292_s27, 4  ;;  %s3293_s30 = smov [#allocation7]   ;;  %s143_s28 = int_to_ptr.vmem [resolvable:$true] %s142_s28 }
  0x11   : > { %p3389_p12 = pnand %p3114_p11, %p3366_p5  ;;  %s156_s4 = sshll.u32 %s3293_s30, 4  ;;  %s157_s4 = int_to_ptr.vmem [resolvable:$true] %s156_s4 }
  0x12   : > { %s3195_s5 = scalar_lea.vmem %s143_s28, 12288  ;;  %p3203_p4 = scmp.lt.s32.totalorder %s143_s28, %s143_s28 }
  0x13   : > { %p3186_p13 = pneg %p3389_p12  ;;  %p3196_p0 = scmp.ne.s32.totalorder %s143_s28, %s3195_s5 }
  0x14   : > { %p3204_p6 = scmp.lt.s32.totalorder %s3195_s5, %s3195_s5 }
  0x15   : > { %p3198_p1 = pnand %p3196_p0, %p3186_p13 }
  0x16   : > { %p3205_p7 = por %p3204_p6, %p3203_p4 }
  0x17   : > { %p3199_p2 = pneg %p3198_p1 }
  0x19   : > { %p3206_p9 = pnand %p3205_p7, %p3199_p2 }
  0x1b   : > { %3209 = shalt.err (!%p3206_p9)
}
  0x1c   : > { %s3294_s6 = smov 128   ;;  %s3295_s7 = smov 8  }
  0x1d   : > { %3117 = dma.hbm_to_vmem [thread:$0]  (!%p3389_p12), %s7128_s1, 12288, %s143_s28, [#allocation6], %s3294_s6, %s3294_s6, %s3295_s7  }
  0x1e   : > { %s3221_s10 = scalar_lea.vmem %s157_s4, 16  ;;  %s3228_s11 = scalar_lea.vmem %s157_s4, 32 }
  0x1f   : > { %p3222_p11 = scmp.ne.s32.totalorder %s157_s4, %s3221_s10  ;;  %p3229_p5 = scmp.lt.s32.totalorder %s157_s4, %s157_s4 }
  0x20   : > { %p3230_p4 = scmp.lt.s32.totalorder %s3228_s11, %s3221_s10 }
  0x21   : > { %p3224_p0 = pnand %p3222_p11, %p3186_p13 }
  0x22   : > { %p3231_p2 = por %p3230_p4, %p3229_p5 }
  0x23   : > { %p3225_p1 = pneg %p3224_p0 }
  0x25   : > { %p3232_p6 = pnand %p3231_p2, %p3225_p1 }
  0x27   : > { %3235 = shalt.err (!%p3232_p6)
}
  0x28   : > { %3120 = dma.hbm_to_vmem [thread:$0]  (!%p3389_p12), %s7129_s2, 16, %s157_s4, [#allocation6]  }
  0x29   : > { %p2974_p7 = scmp.ge.s32.totalorder %s3290_s17, 2 }
  0x2b   : > { %163 = sbr.rel (%p2974_p7) target bundleno = 62 (0x3e), region = 24 }
  0x30   : > { %s167_s20 = sand.u32 1, %s3278_s14   ;;  %s3095_s22 = smul.u32 6144, %s3286_s16 }
  0x31   : > { %s3094_s27 = smul.u32 3072, %s167_s20  ;;  %s3296_s28 = smov 12288  }
  0x32   : > { %3102 = sst [smem:[#allocation9]] (%p3359_p3), %s3296_s28  ;;  %s181_s5 = scalar_lea.hbm %s7127_s0, %s3095_s22 }
  0x33   : > { %s3101_s29 = scalar_select %p3359_p3, [#allocation0], [#allocation10] }
  0x34   : > { %s171_s7 = scalar_lea.vmem [#allocation3], %s3094_s27  ;;  %s3297_s9 = smov 6144  }
  0x35   : > { %s186_s6 = sld [smem:[%s3101_s29]]   ;;  %s194_s8 = sshll.u32 %s171_s7, 4  ;;  %s195_s8 = int_to_ptr.vmem [resolvable:$true] %s194_s8 }
  0x36   : > { %3103 = sst [smem:[#allocation9 + $0x1]] (%p3359_p3), %s3297_s9  ;;  %s3298_s10 = smov 16  }
  0x37   : > { %3104 = sst [smem:[#allocation9 + $0x2]] (%p3359_p3), %s3298_s10  ;;  %s3299_s11 = smov 384  }
  0x38   : > { %3105 = sst [smem:[#allocation9 + $0x3]] (%p3359_p3), %s3299_s11  ;;  %s3300_s12 = smov 24  }
  0x39   : > { %3106 = sst [smem:[#allocation9 + $0x4]] (%p3359_p3), %s3299_s11  ;;  %s168_s27 = scalar_lea.sflag [#allocation4], %s167_s20 }
  0x3a   : > { %3107 = sst [smem:[#allocation9 + $0x5]] (%p3359_p3), %s3300_s12  ;;  %s3301_s28 = smov 131072  }
  0x3b   : > { %s2978_s18 = sshll.u32 %s186_s6, 26 }
  0x3c   : > { %s2979_s22 = sadd.s32 134217728, %s2978_s18 }
  0x3d   : > { %3108 = dma.general (%p3359_p3), %s181_s5, 49152, %s195_s8, %s168_s27, %s3301_s28, [#allocation9], %s2979_s22, 0  }
  0x3e PF: > { %219 = sbr.rel (%p3381_p10) target bundleno = 996 (0x3e4), region = 32 }
  0x43   : > { %s221_s29 = sand.u32 1, %s3274_s13  }
  0x44   : > { %s3096_s30 = smul.u32 3072, %s221_s29  ;;  %s222_s4 = scalar_lea.sflag [#allocation4], %s221_s29 }
  0x46   : > { %s3436_s7 = scalar_lea.vmem [#allocation3], %s3096_s30 }
  0x47   : > { %3261 = dma.done.wait (%p3373_p8), %s222_s4, 49152  }
  0x48   : > { %3263 = vsyncadd (%p3373_p8), %s222_s4, 4294918144  ;;  %p7808_p5 = scmp.ne.s32.totalorder %s7804_s23, 0 }
  0x4a   : > { %3265 = dma.done.wait (%p7808_p5), [#allocation6], 12304  }
  0x4b   : > { %3267 = vsyncadd (%p7808_p5), [#allocation6], 4294954992  ;;  %p2983_p3 = scmp.ne.s32.totalorder %s3282_s15, 0 }
  0x4d   : > { %264 = sbr.rel (%p2983_p3) target bundleno = 86 (0x56), region = 48 }
  0x52   : > { %v3302_v0 = vmov 0.0  }
  0x53   : > { %265 = vst [vmem:[#allocation2 + $0x28] sm:$0xff] %v3302_v0  ;;  %266 = vst [vmem:[#allocation2 + $0x10] sm:$0xff] %v3302_v0 }
  0x54   : > { %267 = vst [vmem:[#allocation2 + $0x8] sm:$0xff] %v3302_v0  ;;  %268 = vst [vmem:[#allocation2] sm:$0xff] %v3302_v0 }
  0x55   : > { %269 = vst [vmem:[#allocation2 + $0x18] sm:$0xff] %v3302_v0  ;;  %270 = vst [vmem:[#allocation2 + $0x20] sm:$0xff] %v3302_v0 }
  0x56 PF: > { %v3448_v1 = vld [vmem:[%s3436_s7] sm:$0xff]  ;;  %v3451_v2 = vld [vmem:[%s3436_s7 + $0x8] sm:$0xff]  ;;  %v3454_v3 = vld [vmem:[%s3436_s7 + $0x10] sm:$0xff]  ;;  %vm2485_vm0 = vcmask 1041409   ;;  %vm2487_vm1 = vcmask 1042434   ;;  %vm2489_vm2 = vcmask 1043459  }
  0x57   : > { %v3457_v4 = vld [vmem:[%s3436_s7 + $0x18] sm:$0xff]  ;;  %v3460_v5 = vld [vmem:[%s3436_s7 + $0x20] sm:$0xff]  ;;  %v3463_v6 = vld [vmem:[%s3436_s7 + $0x28] sm:$0xff]  ;;  %vm2491_vm3 = vcmask 1044484   ;;  %vm2493_vm4 = vcmask 1045509   ;;  %vm2495_vm5 = vcmask 1046534  }
  0x58   : > { %v3469_v10 = vld [vmem:[%s3436_s7 + $0x30] sm:$0xff]  ;;  %v3472_v11 = vld [vmem:[%s3436_s7 + $0x38] sm:$0xff]  ;;  %v3475_v12 = vld [vmem:[%s3436_s7 + $0x40] sm:$0xff]  ;;  %vm2497_vm6 = vcmask 1047559   ;;  %p2984_p8 = scmp.ne.s32.totalorder %s3282_s15, 1 }
  0x59   : > { %v3482_v17 = vld [vmem:[%s3436_s7 + $0x48] sm:$0xff]  ;;  %v3485_v18 = vld [vmem:[%s3436_s7 + $0x50] sm:$0xff]  ;;  %v3488_v19 = vld [vmem:[%s3436_s7 + $0x58] sm:$0xff] }
  0x5a   : > { %v3495_v24 = vld [vmem:[%s3436_s7 + $0x60] sm:$0xff]  ;;  %v3498_v25 = vld [vmem:[%s3436_s7 + $0x68] sm:$0xff]  ;;  %v3505_v30 = vld [vmem:[%s3436_s7 + $0x70] sm:$0xff] }
  0x5b   : > { %v3508_v31 = vld [vmem:[%s3436_s7 + $0x78] sm:$0xff]  ;;  %v3515_v36 = vld [vmem:[%s3436_s7 + $0x80] sm:$0xff]  ;;  %v3518_v37 = vld [vmem:[%s3436_s7 + $0x88] sm:$0xff] }
  0x5c   : > { %v3525_v42 = vld [vmem:[%s3436_s7 + $0x90] sm:$0xff]  ;;  %v3528_v43 = vld [vmem:[%s3436_s7 + $0x98] sm:$0xff]  ;;  %v3535_v48 = vld [vmem:[%s3436_s7 + $0xa0] sm:$0xff] }
  0x5d   : > { %v3538_v49 = vld [vmem:[%s3436_s7 + $0xa8] sm:$0xff]  ;;  %v3545_v54 = vld [vmem:[%s3436_s7 + $0xb0] sm:$0xff]  ;;  %v3548_v55 = vld [vmem:[%s3436_s7 + $0xb8] sm:$0xff] }
  0x5e   : > { %v3555_v60 = vld [vmem:[%s3436_s7 + $0xc0] sm:$0xff]  ;;  %v3558_v61 = vld [vmem:[%s3436_s7 + $0xc8] sm:$0xff]  ;;  %v3565_v57 = vld [vmem:[%s3436_s7 + $0xd0] sm:$0xff] }
  0x5f   : > { %v3568_v53 = vld [vmem:[%s3436_s7 + $0xd8] sm:$0xff]  ;;  %v3575_v63 = vld [vmem:[%s3436_s7 + $0xe0] sm:$0xff]  ;;  %v3578_v51 = vld [vmem:[%s3436_s7 + $0xe8] sm:$0xff] }
  0x60   : > { %v3585_v58 = vld [vmem:[%s3436_s7 + $0xf0] sm:$0xff]  ;;  %v3588_v47 = vld [vmem:[%s3436_s7 + $0xf8] sm:$0xff]  ;;  %v3595_v0 = vld [vmem:[%s3436_s7 + $0x100] sm:$0xff] }
  0x61   : > { %v3598_v45 = vld [vmem:[%s3436_s7 + $0x108] sm:$0xff]  ;;  %v3605_v62 = vld [vmem:[%s3436_s7 + $0x110] sm:$0xff]  ;;  %v3608_v41 = vld [vmem:[%s3436_s7 + $0x118] sm:$0xff] }
  0x62   : > { %7809 = vst [vmem:[#allocation13_spill] sm:$0xff] %v3598_v45  ;;  %7810 = vst [vmem:[#allocation14_spill] sm:$0xff] %v3605_v62  ;;  %v3615_v59 = vld [vmem:[%s3436_s7 + $0x120] sm:$0xff]  ;;  %v3618_v39 = vld [vmem:[%s3436_s7 + $0x128] sm:$0xff]  ;;  %v8145_v62 = vunpack.c.l.bf16 %v3457_v4 }
  0x63   : > { %7811 = vst [vmem:[#allocation15_spill] sm:$0xff] %v3608_v41  ;;  %7812 = vst [vmem:[#allocation16_spill] sm:$0xff] %v3615_v59  ;;  %v3625_v56 = vld [vmem:[%s3436_s7 + $0x130] sm:$0xff]  ;;  %v3628_v35 = vld [vmem:[%s3436_s7 + $0x138] sm:$0xff] }
  0x64   : > { %7813 = vst [vmem:[#allocation17_spill] sm:$0xff] %v3618_v39  ;;  %7814 = vst [vmem:[#allocation18_spill] sm:$0xff] %v3625_v56  ;;  %v3635_v52 = vld [vmem:[%s3436_s7 + $0x140] sm:$0xff]  ;;  %v3638_v33 = vld [vmem:[%s3436_s7 + $0x148] sm:$0xff] }
  0x65   : > { %7815 = vst [vmem:[#allocation19_spill] sm:$0xff] %v3628_v35  ;;  %7816 = vst [vmem:[#allocation20_spill] sm:$0xff] %v3635_v52  ;;  %v3645_v50 = vld [vmem:[%s3436_s7 + $0x150] sm:$0xff]  ;;  %v3648_v29 = vld [vmem:[%s3436_s7 + $0x158] sm:$0xff] }
  0x66   : > { %7817 = vst [vmem:[#allocation21_spill] sm:$0xff] %v3638_v33  ;;  %7818 = vst [vmem:[#allocation22_spill] sm:$0xff] %v3645_v50  ;;  %v3655_v46 = vld [vmem:[%s3436_s7 + $0x160] sm:$0xff]  ;;  %v3658_v27 = vld [vmem:[%s3436_s7 + $0x168] sm:$0xff] }
  0x67   : > { %7819 = vst [vmem:[#allocation23_spill] sm:$0xff] %v3648_v29  ;;  %7820 = vst [vmem:[#allocation24_spill] sm:$0xff] %v3655_v46  ;;  %v3665_v44 = vld [vmem:[%s3436_s7 + $0x170] sm:$0xff]  ;;  %v3668_v15 = vld [vmem:[%s3436_s7 + $0x178] sm:$0xff] }
  0x68   : > { %7821 = vst [vmem:[#allocation25_spill] sm:$0xff] %v3658_v27  ;;  %7822 = vst [vmem:[#allocation26_spill] sm:$0xff] %v3665_v44  ;;  %v3675_v40 = vld [vmem:[%s3436_s7 + $0x180] sm:$0xff]  ;;  %v3678_v14 = vld [vmem:[%s3436_s7 + $0x188] sm:$0xff] }
  0x69   : > { %7823 = vst [vmem:[#allocation27_spill] sm:$0xff] %v3668_v15  ;;  %7824 = vst [vmem:[#allocation28_spill] sm:$0xff] %v3678_v14  ;;  %v3685_v38 = vld [vmem:[%s3436_s7 + $0x190] sm:$0xff]  ;;  %v3688_v13 = vld [vmem:[%s3436_s7 + $0x198] sm:$0xff] }
  0x6a   : > { %7825 = vst [vmem:[#allocation29_spill] sm:$0xff] %v3685_v38  ;;  %v3695_v34 = vld [vmem:[%s3436_s7 + $0x1a0] sm:$0xff]  ;;  %v3698_v9 = vld [vmem:[%s3436_s7 + $0x1a8] sm:$0xff]  ;;  %v3705_v32 = vld [vmem:[%s3436_s7 + $0x1b0] sm:$0xff] }
  0x6b   : > { %7826 = vst [vmem:[#allocation30_spill] sm:$0xff] %v3695_v34  ;;  %7827 = vst [vmem:[#allocation31_spill] sm:$0xff] %v3698_v9  ;;  %v3708_v8 = vld [vmem:[%s3436_s7 + $0x1b8] sm:$0xff]  ;;  %v3715_v28 = vld [vmem:[%s3436_s7 + $0x1c0] sm:$0xff] }
  0x6c   : > { %7828 = vst [vmem:[#allocation32_spill] sm:$0xff] %v3708_v8  ;;  %7829 = vst [vmem:[#allocation33_spill] sm:$0xff] %v3715_v28  ;;  %v3718_v7 = vld [vmem:[%s3436_s7 + $0x1c8] sm:$0xff]  ;;  %v3725_v26 = vld [vmem:[%s3436_s7 + $0x1d0] sm:$0xff] }
  0x6d   : > { %7830 = vst [vmem:[#allocation34_spill] sm:$0xff] %v3725_v26  ;;  %v3728_v44 = vld [vmem:[%s3436_s7 + $0x1d8] sm:$0xff]  ;;  %v3735_v23 = vld [vmem:[%s3436_s7 + $0x1e0] sm:$0xff]  ;;  %v3738_v27 = vld [vmem:[%s3436_s7 + $0x1e8] sm:$0xff] }
  0x6e   : > { %7831 = vst [vmem:[#allocation35_spill] sm:$0xff] %v3728_v44  ;;  %7832 = vst [vmem:[#allocation36_spill] sm:$0xff] %v3738_v27  ;;  %v3745_v22 = vld [vmem:[%s3436_s7 + $0x1f0] sm:$0xff]  ;;  %v3748_v46 = vld [vmem:[%s3436_s7 + $0x1f8] sm:$0xff] }
  0x6f   : > { %7833 = vst [vmem:[#allocation37_spill] sm:$0xff] %v3745_v22  ;;  %v3755_v15 = vld [vmem:[%s3436_s7 + $0x200] sm:$0xff]  ;;  %v3758_v34 = vld [vmem:[%s3436_s7 + $0x208] sm:$0xff]  ;;  %v3765_v20 = vld [vmem:[%s3436_s7 + $0x210] sm:$0xff] }
  0x70   : > { %7834 = vst [vmem:[#allocation38_spill] sm:$0xff] %v3755_v15  ;;  %7835 = vst [vmem:[#allocation39_spill] sm:$0xff] %v3758_v34  ;;  %v3768_v29 = vld [vmem:[%s3436_s7 + $0x218] sm:$0xff]  ;;  %v3775_v16 = vld [vmem:[%s3436_s7 + $0x220] sm:$0xff] }
  0x71   : > { %7836 = vst [vmem:[#allocation40_spill] sm:$0xff] %v3768_v29  ;;  %7837 = vst [vmem:[#allocation41_spill] sm:$0xff] %v3775_v16  ;;  %v3778_v50 = vld [vmem:[%s3436_s7 + $0x228] sm:$0xff]  ;;  %v3785_v9 = vld [vmem:[%s3436_s7 + $0x230] sm:$0xff] }
  0x72   : > { %7838 = vst [vmem:[#allocation42_spill] sm:$0xff] %v3785_v9  ;;  %v3788_v26 = vld [vmem:[%s3436_s7 + $0x238] sm:$0xff]  ;;  %v3795_v14 = vld [vmem:[%s3436_s7 + $0x240] sm:$0xff]  ;;  %v3798_v33 = vld [vmem:[%s3436_s7 + $0x248] sm:$0xff] }
  0x73   : > { %7839 = vst [vmem:[#allocation43_spill] sm:$0xff] %v3788_v26  ;;  %7840 = vst [vmem:[#allocation44_spill] sm:$0xff] %v3798_v33  ;;  %v3805_v38 = vld [vmem:[%s3436_s7 + $0x250] sm:$0xff]  ;;  %v3808_v52 = vld [vmem:[%s3436_s7 + $0x258] sm:$0xff] }
  0x74   : > { %7841 = vst [vmem:[#allocation45_spill] sm:$0xff] %v3805_v38  ;;  %v3815_v44 = vld [vmem:[%s3436_s7 + $0x260] sm:$0xff]  ;;  %v3818_v15 = vld [vmem:[%s3436_s7 + $0x268] sm:$0xff]  ;;  %v3825_v8 = vld [vmem:[%s3436_s7 + $0x270] sm:$0xff] }
  0x75   : > { %7842 = vst [vmem:[#allocation46_spill] sm:$0xff] %v3815_v44  ;;  %7843 = vst [vmem:[#allocation47_spill] sm:$0xff] %v3818_v15  ;;  %v3828_v35 = vld [vmem:[%s3436_s7 + $0x278] sm:$0xff]  ;;  %v3835_v28 = vld [vmem:[%s3436_s7 + $0x280] sm:$0xff] }
  0x76   : > { %7844 = vst [vmem:[#allocation48_spill] sm:$0xff] %v3828_v35  ;;  %7845 = vst [vmem:[#allocation49_spill] sm:$0xff] %v3835_v28  ;;  %v3838_v56 = vld [vmem:[%s3436_s7 + $0x288] sm:$0xff]  ;;  %v3845_v34 = vld [vmem:[%s3436_s7 + $0x290] sm:$0xff] }
  0x77   : > { %7846 = vst [vmem:[#allocation50_spill] sm:$0xff] %v3838_v56  ;;  %7847 = vst [vmem:[#allocation51_spill] sm:$0xff] %v3845_v34  ;;  %v3848_v9 = vld [vmem:[%s3436_s7 + $0x298] sm:$0xff]  ;;  %v3855_v27 = vld [vmem:[%s3436_s7 + $0x2a0] sm:$0xff] }
  0x78   : > { %7848 = vst [vmem:[#allocation52_spill] sm:$0xff] %v3848_v9  ;;  %7849 = vst [vmem:[#allocation53_spill] sm:$0xff] %v3855_v27  ;;  %v3858_v39 = vld [vmem:[%s3436_s7 + $0x2a8] sm:$0xff]  ;;  %v3865_v22 = vld [vmem:[%s3436_s7 + $0x2b0] sm:$0xff] }
  0x79   : > { %7850 = vst [vmem:[#allocation54_spill] sm:$0xff] %v3858_v39  ;;  %7851 = vst [vmem:[#allocation55_spill] sm:$0xff] %v3865_v22  ;;  %v3868_v59 = vld [vmem:[%s3436_s7 + $0x2b8] sm:$0xff]  ;;  %v3875_v26 = vld [vmem:[%s3436_s7 + $0x2c0] sm:$0xff] }
  0x7a   : > { %7852 = vst [vmem:[#allocation56_spill] sm:$0xff] %v3868_v59  ;;  %7853 = vst [vmem:[#allocation57_spill] sm:$0xff] %v3875_v26  ;;  %v3878_v44 = vld [vmem:[%s3436_s7 + $0x2c8] sm:$0xff]  ;;  %v3885_v29 = vld [vmem:[%s3436_s7 + $0x2d0] sm:$0xff] }
  0x7b   : > { %7854 = vst [vmem:[#allocation58_spill] sm:$0xff] %v3878_v44  ;;  %7855 = vst [vmem:[#allocation59_spill] sm:$0xff] %v3885_v29  ;;  %v3888_v41 = vld [vmem:[%s3436_s7 + $0x2d8] sm:$0xff]  ;;  %v3895_v16 = vld [vmem:[%s3436_s7 + $0x2e0] sm:$0xff] }
  0x7c   : > { %7856 = vst [vmem:[#allocation60_spill] sm:$0xff] %v3888_v41  ;;  %7857 = vst [vmem:[#allocation61_spill] sm:$0xff] %v3895_v16  ;;  %v3898_v56 = vld [vmem:[%s3436_s7 + $0x2e8] sm:$0xff]  ;;  %v3905_v15 = vld [vmem:[%s3436_s7 + $0x2f0] sm:$0xff] }
  0x7d   : > { %7858 = vst [vmem:[#allocation62_spill] sm:$0xff] %v3898_v56  ;;  %7859 = vst [vmem:[#allocation63_spill] sm:$0xff] %v3905_v15  ;;  %v3908_v34 = vld [vmem:[%s3436_s7 + $0x2f8] sm:$0xff]  ;;  %v3915_v33 = vld [vmem:[%s3436_s7 + $0x300] sm:$0xff] }
  0x7e   : > { %7860 = vst [vmem:[#allocation64_spill] sm:$0xff] %v3908_v34  ;;  %7861 = vst [vmem:[#allocation65_spill] sm:$0xff] %v3915_v33  ;;  %v3918_v27 = vld [vmem:[%s3436_s7 + $0x308] sm:$0xff]  ;;  %v3925_v38 = vld [vmem:[%s3436_s7 + $0x310] sm:$0xff] }
  0x7f   : > { %7862 = vst [vmem:[#allocation66_spill] sm:$0xff] %v3918_v27  ;;  %7863 = vst [vmem:[#allocation67_spill] sm:$0xff] %v3925_v38  ;;  %v3928_v59 = vld [vmem:[%s3436_s7 + $0x318] sm:$0xff]  ;;  %v3935_v9 = vld [vmem:[%s3436_s7 + $0x320] sm:$0xff] }
  0x80   : > { %7864 = vst [vmem:[#allocation68_spill] sm:$0xff] %v3928_v59  ;;  %7865 = vst [vmem:[#allocation69_spill] sm:$0xff] %v3935_v9  ;;  %v3938_v26 = vld [vmem:[%s3436_s7 + $0x328] sm:$0xff]  ;;  %v3945_v35 = vld [vmem:[%s3436_s7 + $0x330] sm:$0xff] }
  0x81   : > { %7866 = vst [vmem:[#allocation70_spill] sm:$0xff] %v3938_v26  ;;  %7867 = vst [vmem:[#allocation71_spill] sm:$0xff] %v3945_v35  ;;  %v3948_v29 = vld [vmem:[%s3436_s7 + $0x338] sm:$0xff]  ;;  %v3955_v28 = vld [vmem:[%s3436_s7 + $0x340] sm:$0xff] }
  0x82   : > { %7868 = vst [vmem:[#allocation72_spill] sm:$0xff] %v3948_v29  ;;  %7869 = vst [vmem:[#allocation73_spill] sm:$0xff] %v3955_v28  ;;  %v3958_v56 = vld [vmem:[%s3436_s7 + $0x348] sm:$0xff]  ;;  %v3965_v44 = vld [vmem:[%s3436_s7 + $0x350] sm:$0xff] }
  0x83   : > { %7870 = vst [vmem:[#allocation74_spill] sm:$0xff] %v3958_v56  ;;  %7871 = vst [vmem:[#allocation75_spill] sm:$0xff] %v3965_v44  ;;  %v3968_v15 = vld [vmem:[%s3436_s7 + $0x358] sm:$0xff]  ;;  %v3975_v39 = vld [vmem:[%s3436_s7 + $0x360] sm:$0xff] }
  0x84   : > { %7872 = vst [vmem:[#allocation76_spill] sm:$0xff] %v3968_v15  ;;  %7873 = vst [vmem:[#allocation77_spill] sm:$0xff] %v3975_v39  ;;  %v3978_v33 = vld [vmem:[%s3436_s7 + $0x368] sm:$0xff]  ;;  %v3985_v22 = vld [vmem:[%s3436_s7 + $0x370] sm:$0xff] }
  0x85   : > { %7874 = vst [vmem:[#allocation78_spill] sm:$0xff] %v3978_v33  ;;  %7875 = vst [vmem:[#allocation79_spill] sm:$0xff] %v3985_v22  ;;  %v3988_v59 = vld [vmem:[%s3436_s7 + $0x378] sm:$0xff]  ;;  %v3995_v34 = vld [vmem:[%s3436_s7 + $0x380] sm:$0xff] }
  0x86   : > { %7876 = vst [vmem:[#allocation80_spill] sm:$0xff] %v3988_v59  ;;  %7877 = vst [vmem:[#allocation81_spill] sm:$0xff] %v3995_v34  ;;  %v3998_v9 = vld [vmem:[%s3436_s7 + $0x388] sm:$0xff]  ;;  %v4005_v41 = vld [vmem:[%s3436_s7 + $0x390] sm:$0xff] }
  0x87   : > { %7878 = vst [vmem:[#allocation82_spill] sm:$0xff] %v3998_v9  ;;  %7879 = vst [vmem:[#allocation83_spill] sm:$0xff] %v4005_v41  ;;  %v4008_v35 = vld [vmem:[%s3436_s7 + $0x398] sm:$0xff]  ;;  %v4015_v16 = vld [vmem:[%s3436_s7 + $0x3a0] sm:$0xff] }
  0x88   : > { %7880 = vst [vmem:[#allocation84_spill] sm:$0xff] %v4008_v35  ;;  %7881 = vst [vmem:[#allocation85_spill] sm:$0xff] %v4015_v16  ;;  %v4018_v56 = vld [vmem:[%s3436_s7 + $0x3a8] sm:$0xff]  ;;  %v4025_v26 = vld [vmem:[%s3436_s7 + $0x3b0] sm:$0xff] }
  0x89   : > { %7882 = vst [vmem:[#allocation86_spill] sm:$0xff] %v4018_v56  ;;  %7883 = vst [vmem:[#allocation87_spill] sm:$0xff] %v4025_v26  ;;  %v4028_v44 = vld [vmem:[%s3436_s7 + $0x3b8] sm:$0xff]  ;;  %v4035_v27 = vld [vmem:[%s3436_s7 + $0x3c0] sm:$0xff] }
  0x8a   : > { %7884 = vst [vmem:[#allocation88_spill] sm:$0xff] %v4028_v44  ;;  %7885 = vst [vmem:[#allocation89_spill] sm:$0xff] %v4035_v27  ;;  %v4038_v39 = vld [vmem:[%s3436_s7 + $0x3c8] sm:$0xff]  ;;  %v4045_v38 = vld [vmem:[%s3436_s7 + $0x3d0] sm:$0xff] }
  0x8b   : > { %7886 = vst [vmem:[#allocation90_spill] sm:$0xff] %v4038_v39  ;;  %7887 = vst [vmem:[#allocation91_spill] sm:$0xff] %v4045_v38  ;;  %v4048_v59 = vld [vmem:[%s3436_s7 + $0x3d8] sm:$0xff]  ;;  %v4055_v15 = vld [vmem:[%s3436_s7 + $0x3e0] sm:$0xff] }
  0x8c   : > { %7888 = vst [vmem:[#allocation92_spill] sm:$0xff] %v4048_v59  ;;  %7889 = vst [vmem:[#allocation93_spill] sm:$0xff] %v4055_v15  ;;  %v4058_v34 = vld [vmem:[%s3436_s7 + $0x3e8] sm:$0xff]  ;;  %v4065_v29 = vld [vmem:[%s3436_s7 + $0x3f0] sm:$0xff] }
  0x8d   : > { %7890 = vst [vmem:[#allocation94_spill] sm:$0xff] %v4058_v34  ;;  %7891 = vst [vmem:[#allocation95_spill] sm:$0xff] %v4065_v29  ;;  %v4068_v41 = vld [vmem:[%s3436_s7 + $0x3f8] sm:$0xff]  ;;  %v4075_v28 = vld [vmem:[%s3436_s7 + $0x400] sm:$0xff] }
  0x8e   : > { %7892 = vst [vmem:[#allocation96_spill] sm:$0xff] %v4068_v41  ;;  %7893 = vst [vmem:[#allocation97_spill] sm:$0xff] %v4075_v28  ;;  %v4078_v56 = vld [vmem:[%s3436_s7 + $0x408] sm:$0xff]  ;;  %v4085_v9 = vld [vmem:[%s3436_s7 + $0x410] sm:$0xff] }
  0x8f   : > { %7894 = vst [vmem:[#allocation98_spill] sm:$0xff] %v4078_v56  ;;  %7895 = vst [vmem:[#allocation99_spill] sm:$0xff] %v4085_v9  ;;  %v4088_v26 = vld [vmem:[%s3436_s7 + $0x418] sm:$0xff]  ;;  %v4095_v33 = vld [vmem:[%s3436_s7 + $0x420] sm:$0xff] }
  0x90   : > { %7896 = vst [vmem:[#allocation100_spill] sm:$0xff] %v4088_v26  ;;  %7897 = vst [vmem:[#allocation101_spill] sm:$0xff] %v4095_v33  ;;  %v4098_v27 = vld [vmem:[%s3436_s7 + $0x428] sm:$0xff]  ;;  %v4105_v22 = vld [vmem:[%s3436_s7 + $0x430] sm:$0xff] }
  0x91   : > { %7898 = vst [vmem:[#allocation102_spill] sm:$0xff] %v4098_v27  ;;  %7899 = vst [vmem:[#allocation103_spill] sm:$0xff] %v4105_v22  ;;  %v4108_v59 = vld [vmem:[%s3436_s7 + $0x438] sm:$0xff]  ;;  %v4115_v44 = vld [vmem:[%s3436_s7 + $0x440] sm:$0xff] }
  0x92   : > { %7900 = vst [vmem:[#allocation104_spill] sm:$0xff] %v4108_v59  ;;  %7901 = vst [vmem:[#allocation105_spill] sm:$0xff] %v4115_v44  ;;  %v4118_v15 = vld [vmem:[%s3436_s7 + $0x448] sm:$0xff]  ;;  %v4125_v35 = vld [vmem:[%s3436_s7 + $0x450] sm:$0xff] }
  0x93   : > { %7902 = vst [vmem:[#allocation106_spill] sm:$0xff] %v4118_v15  ;;  %7903 = vst [vmem:[#allocation107_spill] sm:$0xff] %v4125_v35  ;;  %v4128_v29 = vld [vmem:[%s3436_s7 + $0x458] sm:$0xff]  ;;  %v4135_v16 = vld [vmem:[%s3436_s7 + $0x460] sm:$0xff] }
  0x94   : > { %7904 = vst [vmem:[#allocation108_spill] sm:$0xff] %v4128_v29  ;;  %7905 = vst [vmem:[#allocation109_spill] sm:$0xff] %v4135_v16  ;;  %v4138_v56 = vld [vmem:[%s3436_s7 + $0x468] sm:$0xff]  ;;  %v4145_v34 = vld [vmem:[%s3436_s7 + $0x470] sm:$0xff] }
  0x95   : > { %7906 = vst [vmem:[#allocation110_spill] sm:$0xff] %v4138_v56  ;;  %7907 = vst [vmem:[#allocation111_spill] sm:$0xff] %v4145_v34  ;;  %v4148_v9 = vld [vmem:[%s3436_s7 + $0x478] sm:$0xff]  ;;  %v4155_v39 = vld [vmem:[%s3436_s7 + $0x480] sm:$0xff] }
  0x96   : > { %7908 = vst [vmem:[#allocation112_spill] sm:$0xff] %v4148_v9  ;;  %7909 = vst [vmem:[#allocation113_spill] sm:$0xff] %v4155_v39  ;;  %v4158_v33 = vld [vmem:[%s3436_s7 + $0x488] sm:$0xff]  ;;  %v4165_v38 = vld [vmem:[%s3436_s7 + $0x490] sm:$0xff] }
  0x97   : > { %7910 = vst [vmem:[#allocation114_spill] sm:$0xff] %v4158_v33  ;;  %7911 = vst [vmem:[#allocation115_spill] sm:$0xff] %v4165_v38  ;;  %v4168_v59 = vld [vmem:[%s3436_s7 + $0x498] sm:$0xff]  ;;  %v4175_v26 = vld [vmem:[%s3436_s7 + $0x4a0] sm:$0xff] }
  0x98   : > { %7912 = vst [vmem:[#allocation116_spill] sm:$0xff] %v4168_v59  ;;  %7913 = vst [vmem:[#allocation117_spill] sm:$0xff] %v4175_v26  ;;  %v4178_v44 = vld [vmem:[%s3436_s7 + $0x4a8] sm:$0xff]  ;;  %v4185_v41 = vld [vmem:[%s3436_s7 + $0x4b0] sm:$0xff] }
  0x99   : > { %7914 = vst [vmem:[#allocation118_spill] sm:$0xff] %v4178_v44  ;;  %7915 = vst [vmem:[#allocation119_spill] sm:$0xff] %v4185_v41  ;;  %v4188_v35 = vld [vmem:[%s3436_s7 + $0x4b8] sm:$0xff]  ;;  %v4195_v28 = vld [vmem:[%s3436_s7 + $0x4c0] sm:$0xff] }
  0x9a   : > { %7916 = vst [vmem:[#allocation120_spill] sm:$0xff] %v4188_v35  ;;  %7917 = vst [vmem:[#allocation121_spill] sm:$0xff] %v4195_v28  ;;  %v4198_v56 = vld [vmem:[%s3436_s7 + $0x4c8] sm:$0xff]  ;;  %v4205_v15 = vld [vmem:[%s3436_s7 + $0x4d0] sm:$0xff] }
  0x9b   : > { %7918 = vst [vmem:[#allocation122_spill] sm:$0xff] %v4198_v56  ;;  %7919 = vst [vmem:[#allocation123_spill] sm:$0xff] %v4205_v15  ;;  %v4208_v34 = vld [vmem:[%s3436_s7 + $0x4d8] sm:$0xff]  ;;  %v4215_v27 = vld [vmem:[%s3436_s7 + $0x4e0] sm:$0xff] }
  0x9c   : > { %7920 = vst [vmem:[#allocation124_spill] sm:$0xff] %v4208_v34  ;;  %7921 = vst [vmem:[#allocation125_spill] sm:$0xff] %v4215_v27  ;;  %v4218_v39 = vld [vmem:[%s3436_s7 + $0x4e8] sm:$0xff]  ;;  %v4225_v22 = vld [vmem:[%s3436_s7 + $0x4f0] sm:$0xff] }
  0x9d   : > { %7922 = vst [vmem:[#allocation126_spill] sm:$0xff] %v4218_v39  ;;  %7923 = vst [vmem:[#allocation127_spill] sm:$0xff] %v4225_v22  ;;  %v4228_v59 = vld [vmem:[%s3436_s7 + $0x4f8] sm:$0xff]  ;;  %v4235_v9 = vld [vmem:[%s3436_s7 + $0x500] sm:$0xff] }
  0x9e   : > { %7924 = vst [vmem:[#allocation128_spill] sm:$0xff] %v4228_v59  ;;  %7925 = vst [vmem:[#allocation129_spill] sm:$0xff] %v4235_v9  ;;  %v4238_v26 = vld [vmem:[%s3436_s7 + $0x508] sm:$0xff]  ;;  %v4245_v29 = vld [vmem:[%s3436_s7 + $0x510] sm:$0xff] }
  0x9f   : > { %7926 = vst [vmem:[#allocation130_spill] sm:$0xff] %v4238_v26  ;;  %7927 = vst [vmem:[#allocation131_spill] sm:$0xff] %v4245_v29  ;;  %v4248_v41 = vld [vmem:[%s3436_s7 + $0x518] sm:$0xff]  ;;  %v4255_v16 = vld [vmem:[%s3436_s7 + $0x520] sm:$0xff] }
  0xa0   : > { %7928 = vst [vmem:[#allocation132_spill] sm:$0xff] %v4248_v41  ;;  %7929 = vst [vmem:[#allocation133_spill] sm:$0xff] %v4255_v16  ;;  %v4258_v28 = vld [vmem:[%s3436_s7 + $0x528] sm:$0xff]  ;;  %v4265_v21 = vld [vmem:[%s3436_s7 + $0x530] sm:$0xff] }
  0xa1   : > { %7930 = vst [vmem:[#allocation134_spill] sm:$0xff] %v4258_v28  ;;  %7931 = vst [vmem:[#allocation135_spill] sm:$0xff] %v4265_v21  ;;  %v4268_v15 = vld [vmem:[%s3436_s7 + $0x538] sm:$0xff]  ;;  %v4275_v33 = vld [vmem:[%s3436_s7 + $0x540] sm:$0xff] }
  0xa2   : > { %7932 = vst [vmem:[#allocation136_spill] sm:$0xff] %v4268_v15  ;;  %7933 = vst [vmem:[#allocation137_spill] sm:$0xff] %v4275_v33  ;;  %v4278_v27 = vld [vmem:[%s3436_s7 + $0x548] sm:$0xff]  ;;  %v4285_v38 = vld [vmem:[%s3436_s7 + $0x550] sm:$0xff] }
  0xa3   : > { %7934 = vst [vmem:[#allocation138_spill] sm:$0xff] %v4278_v27  ;;  %7935 = vst [vmem:[#allocation139_spill] sm:$0xff] %v4285_v38  ;;  %v4288_v22 = vld [vmem:[%s3436_s7 + $0x558] sm:$0xff]  ;;  %v4295_v44 = vld [vmem:[%s3436_s7 + $0x560] sm:$0xff] }
  0xa4   : > { %7936 = vst [vmem:[#allocation140_spill] sm:$0xff] %v4288_v22  ;;  %7937 = vst [vmem:[#allocation141_spill] sm:$0xff] %v4295_v44  ;;  %v4298_v9 = vld [vmem:[%s3436_s7 + $0x568] sm:$0xff]  ;;  %v4305_v35 = vld [vmem:[%s3436_s7 + $0x570] sm:$0xff] }
  0xa5   : > { %7938 = vst [vmem:[#allocation142_spill] sm:$0xff] %v4298_v9  ;;  %7939 = vst [vmem:[#allocation143_spill] sm:$0xff] %v4305_v35  ;;  %v4308_v29 = vld [vmem:[%s3436_s7 + $0x578] sm:$0xff]  ;;  %v4315_v56 = vld [vmem:[%s3436_s7 + $0x580] sm:$0xff] }
  0xa6   : > { %7940 = vst [vmem:[#allocation144_spill] sm:$0xff] %v4308_v29  ;;  %7941 = vst [vmem:[#allocation145_spill] sm:$0xff] %v4315_v56  ;;  %v4318_v16 = vld [vmem:[%s3436_s7 + $0x588] sm:$0xff]  ;;  %v4325_v34 = vld [vmem:[%s3436_s7 + $0x590] sm:$0xff] }
  0xa7   : > { %7942 = vst [vmem:[#allocation146_spill] sm:$0xff] %v4318_v16  ;;  %7943 = vst [vmem:[#allocation147_spill] sm:$0xff] %v4325_v34  ;;  %v4328_v21 = vld [vmem:[%s3436_s7 + $0x598] sm:$0xff]  ;;  %v4335_v39 = vld [vmem:[%s3436_s7 + $0x5a0] sm:$0xff] }
  0xa8   : > { %7944 = vst [vmem:[#allocation148_spill] sm:$0xff] %v4328_v21  ;;  %7945 = vst [vmem:[#allocation149_spill] sm:$0xff] %v4335_v39  ;;  %v4338_v33 = vld [vmem:[%s3436_s7 + $0x5a8] sm:$0xff]  ;;  %v4345_v59 = vld [vmem:[%s3436_s7 + $0x5b0] sm:$0xff] }
  0xa9   : > { %7946 = vst [vmem:[#allocation150_spill] sm:$0xff] %v4338_v33  ;;  %7947 = vst [vmem:[#allocation151_spill] sm:$0xff] %v4345_v59  ;;  %v4348_v38 = vld [vmem:[%s3436_s7 + $0x5b8] sm:$0xff]  ;;  %v4355_v26 = vld [vmem:[%s3436_s7 + $0x5c0] sm:$0xff] }
  0xaa   : > { %7948 = vst [vmem:[#allocation152_spill] sm:$0xff] %v4348_v38  ;;  %7949 = vst [vmem:[#allocation153_spill] sm:$0xff] %v4355_v26  ;;  %v4358_v44 = vld [vmem:[%s3436_s7 + $0x5c8] sm:$0xff]  ;;  %v4365_v41 = vld [vmem:[%s3436_s7 + $0x5d0] sm:$0xff] }
  0xab   : > { %7950 = vst [vmem:[#allocation154_spill] sm:$0xff] %v4358_v44  ;;  %7951 = vst [vmem:[#allocation155_spill] sm:$0xff] %v4365_v41  ;;  %v4368_v35 = vld [vmem:[%s3436_s7 + $0x5d8] sm:$0xff]  ;;  %v4375_v28 = vld [vmem:[%s3436_s7 + $0x5e0] sm:$0xff] }
  0xac   : > { %7952 = vst [vmem:[#allocation156_spill] sm:$0xff] %v4368_v35  ;;  %7953 = vst [vmem:[#allocation157_spill] sm:$0xff] %v4375_v28  ;;  %v4378_v56 = vld [vmem:[%s3436_s7 + $0x5e8] sm:$0xff]  ;;  %v4385_v15 = vld [vmem:[%s3436_s7 + $0x5f0] sm:$0xff] }
  0xad   : > { %7954 = vst [vmem:[#allocation158_spill] sm:$0xff] %v4378_v56  ;;  %7955 = vst [vmem:[#allocation159_spill] sm:$0xff] %v4385_v15  ;;  %v4388_v34 = vld [vmem:[%s3436_s7 + $0x5f8] sm:$0xff]  ;;  %v4395_v27 = vld [vmem:[%s3436_s7 + $0x600] sm:$0xff] }
  0xae   : > { %7956 = vst [vmem:[#allocation160_spill] sm:$0xff] %v4388_v34  ;;  %7957 = vst [vmem:[#allocation161_spill] sm:$0xff] %v4395_v27  ;;  %v4398_v39 = vld [vmem:[%s3436_s7 + $0x608] sm:$0xff]  ;;  %v4405_v22 = vld [vmem:[%s3436_s7 + $0x610] sm:$0xff] }
  0xaf   : > { %7958 = vst [vmem:[#allocation162_spill] sm:$0xff] %v4398_v39  ;;  %7959 = vst [vmem:[#allocation163_spill] sm:$0xff] %v4405_v22  ;;  %v4408_v59 = vld [vmem:[%s3436_s7 + $0x618] sm:$0xff]  ;;  %v4415_v9 = vld [vmem:[%s3436_s7 + $0x620] sm:$0xff] }
  0xb0   : > { %7960 = vst [vmem:[#allocation164_spill] sm:$0xff] %v4408_v59  ;;  %7961 = vst [vmem:[#allocation165_spill] sm:$0xff] %v4415_v9  ;;  %v4418_v26 = vld [vmem:[%s3436_s7 + $0x628] sm:$0xff]  ;;  %v4425_v29 = vld [vmem:[%s3436_s7 + $0x630] sm:$0xff] }
  0xb1   : > { %7962 = vst [vmem:[#allocation166_spill] sm:$0xff] %v4418_v26  ;;  %7963 = vst [vmem:[#allocation167_spill] sm:$0xff] %v4425_v29  ;;  %v4428_v41 = vld [vmem:[%s3436_s7 + $0x638] sm:$0xff]  ;;  %v4435_v16 = vld [vmem:[%s3436_s7 + $0x640] sm:$0xff] }
  0xb2   : > { %7964 = vst [vmem:[#allocation168_spill] sm:$0xff] %v4428_v41  ;;  %7965 = vst [vmem:[#allocation169_spill] sm:$0xff] %v4435_v16  ;;  %v4438_v28 = vld [vmem:[%s3436_s7 + $0x648] sm:$0xff]  ;;  %v4445_v21 = vld [vmem:[%s3436_s7 + $0x650] sm:$0xff] }
  0xb3   : > { %7966 = vst [vmem:[#allocation170_spill] sm:$0xff] %v4438_v28  ;;  %7967 = vst [vmem:[#allocation171_spill] sm:$0xff] %v4445_v21  ;;  %v4448_v15 = vld [vmem:[%s3436_s7 + $0x658] sm:$0xff]  ;;  %v4455_v33 = vld [vmem:[%s3436_s7 + $0x660] sm:$0xff] }
  0xb4   : > { %7968 = vst [vmem:[#allocation172_spill] sm:$0xff] %v4448_v15  ;;  %7969 = vst [vmem:[#allocation173_spill] sm:$0xff] %v4455_v33  ;;  %v4458_v27 = vld [vmem:[%s3436_s7 + $0x668] sm:$0xff]  ;;  %v4465_v38 = vld [vmem:[%s3436_s7 + $0x670] sm:$0xff] }
  0xb5   : > { %7970 = vst [vmem:[#allocation174_spill] sm:$0xff] %v4458_v27  ;;  %7971 = vst [vmem:[#allocation175_spill] sm:$0xff] %v4465_v38  ;;  %v4468_v59 = vld [vmem:[%s3436_s7 + $0x678] sm:$0xff]  ;;  %v4475_v34 = vld [vmem:[%s3436_s7 + $0x680] sm:$0xff] }
  0xb6   : > { %7972 = vst [vmem:[#allocation176_spill] sm:$0xff] %v4468_v59  ;;  %7973 = vst [vmem:[#allocation177_spill] sm:$0xff] %v4475_v34  ;;  %v4478_v9 = vld [vmem:[%s3436_s7 + $0x688] sm:$0xff]  ;;  %v4485_v35 = vld [vmem:[%s3436_s7 + $0x690] sm:$0xff] }
  0xb7   : > { %7974 = vst [vmem:[#allocation178_spill] sm:$0xff] %v4478_v9  ;;  %7975 = vst [vmem:[#allocation179_spill] sm:$0xff] %v4485_v35  ;;  %v4488_v29 = vld [vmem:[%s3436_s7 + $0x698] sm:$0xff]  ;;  %v4495_v56 = vld [vmem:[%s3436_s7 + $0x6a0] sm:$0xff] }
  0xb8   : > { %7976 = vst [vmem:[#allocation180_spill] sm:$0xff] %v4488_v29  ;;  %7977 = vst [vmem:[#allocation181_spill] sm:$0xff] %v4495_v56  ;;  %v4498_v16 = vld [vmem:[%s3436_s7 + $0x6a8] sm:$0xff]  ;;  %v4505_v44 = vld [vmem:[%s3436_s7 + $0x6b0] sm:$0xff] }
  0xb9   : > { %7978 = vst [vmem:[#allocation182_spill] sm:$0xff] %v4498_v16  ;;  %7979 = vst [vmem:[#allocation183_spill] sm:$0xff] %v4505_v44  ;;  %v4508_v21 = vld [vmem:[%s3436_s7 + $0x6b8] sm:$0xff]  ;;  %v4515_v39 = vld [vmem:[%s3436_s7 + $0x6c0] sm:$0xff] }
  0xba   : > { %7980 = vst [vmem:[#allocation184_spill] sm:$0xff] %v4508_v21  ;;  %7981 = vst [vmem:[#allocation185_spill] sm:$0xff] %v4515_v39  ;;  %v4518_v33 = vld [vmem:[%s3436_s7 + $0x6c8] sm:$0xff]  ;;  %v4525_v22 = vld [vmem:[%s3436_s7 + $0x6d0] sm:$0xff] }
  0xbb   : > { %7982 = vst [vmem:[#allocation186_spill] sm:$0xff] %v4518_v33  ;;  %7983 = vst [vmem:[#allocation187_spill] sm:$0xff] %v4525_v22  ;;  %v4528_v38 = vld [vmem:[%s3436_s7 + $0x6d8] sm:$0xff]  ;;  %v4535_v26 = vld [vmem:[%s3436_s7 + $0x6e0] sm:$0xff] }
  0xbc   : > { %7984 = vst [vmem:[#allocation188_spill] sm:$0xff] %v4528_v38  ;;  %7985 = vst [vmem:[#allocation189_spill] sm:$0xff] %v4535_v26  ;;  %v4538_v34 = vld [vmem:[%s3436_s7 + $0x6e8] sm:$0xff]  ;;  %v4545_v41 = vld [vmem:[%s3436_s7 + $0x6f0] sm:$0xff] }
  0xbd   : > { %7986 = vst [vmem:[#allocation190_spill] sm:$0xff] %v4538_v34  ;;  %7987 = vst [vmem:[#allocation191_spill] sm:$0xff] %v4545_v41  ;;  %v4548_v35 = vld [vmem:[%s3436_s7 + $0x6f8] sm:$0xff]  ;;  %v4555_v28 = vld [vmem:[%s3436_s7 + $0x700] sm:$0xff] }
  0xbe   : > { %7988 = vst [vmem:[#allocation192_spill] sm:$0xff] %v4548_v35  ;;  %7989 = vst [vmem:[#allocation193_spill] sm:$0xff] %v4555_v28  ;;  %v4558_v56 = vld [vmem:[%s3436_s7 + $0x708] sm:$0xff]  ;;  %v4565_v15 = vld [vmem:[%s3436_s7 + $0x710] sm:$0xff] }
  0xbf   : > { %7990 = vst [vmem:[#allocation194_spill] sm:$0xff] %v4558_v56  ;;  %7991 = vst [vmem:[#allocation195_spill] sm:$0xff] %v4565_v15  ;;  %v4568_v44 = vld [vmem:[%s3436_s7 + $0x718] sm:$0xff]  ;;  %v4575_v27 = vld [vmem:[%s3436_s7 + $0x720] sm:$0xff] }
  0xc0   : > { %7992 = vst [vmem:[#allocation196_spill] sm:$0xff] %v4568_v44  ;;  %7993 = vst [vmem:[#allocation197_spill] sm:$0xff] %v4575_v27  ;;  %v4578_v39 = vld [vmem:[%s3436_s7 + $0x728] sm:$0xff]  ;;  %v4585_v59 = vld [vmem:[%s3436_s7 + $0x730] sm:$0xff] }
  0xc1   : > { %7994 = vst [vmem:[#allocation198_spill] sm:$0xff] %v4578_v39  ;;  %7995 = vst [vmem:[#allocation199_spill] sm:$0xff] %v4585_v59  ;;  %v4588_v22 = vld [vmem:[%s3436_s7 + $0x738] sm:$0xff]  ;;  %v4595_v9 = vld [vmem:[%s3436_s7 + $0x740] sm:$0xff] }
  0xc2   : > { %7996 = vst [vmem:[#allocation200_spill] sm:$0xff] %v4588_v22  ;;  %7997 = vst [vmem:[#allocation201_spill] sm:$0xff] %v4595_v9  ;;  %v4598_v26 = vld [vmem:[%s3436_s7 + $0x748] sm:$0xff]  ;;  %v4605_v29 = vld [vmem:[%s3436_s7 + $0x750] sm:$0xff] }
  0xc3   : > { %7998 = vst [vmem:[#allocation202_spill] sm:$0xff] %v4598_v26  ;;  %7999 = vst [vmem:[#allocation203_spill] sm:$0xff] %v4605_v29  ;;  %v4608_v41 = vld [vmem:[%s3436_s7 + $0x758] sm:$0xff]  ;;  %v4615_v16 = vld [vmem:[%s3436_s7 + $0x760] sm:$0xff] }
  0xc4   : > { %8000 = vst [vmem:[#allocation204_spill] sm:$0xff] %v4608_v41  ;;  %8001 = vst [vmem:[#allocation205_spill] sm:$0xff] %v4615_v16  ;;  %v4618_v28 = vld [vmem:[%s3436_s7 + $0x768] sm:$0xff]  ;;  %v4625_v21 = vld [vmem:[%s3436_s7 + $0x770] sm:$0xff] }
  0xc5   : > { %8002 = vst [vmem:[#allocation206_spill] sm:$0xff] %v4618_v28  ;;  %8003 = vst [vmem:[#allocation207_spill] sm:$0xff] %v4625_v21  ;;  %v4628_v15 = vld [vmem:[%s3436_s7 + $0x778] sm:$0xff]  ;;  %v4635_v33 = vld [vmem:[%s3436_s7 + $0x780] sm:$0xff] }
  0xc6   : > { %8004 = vst [vmem:[#allocation208_spill] sm:$0xff] %v4628_v15  ;;  %8005 = vst [vmem:[#allocation209_spill] sm:$0xff] %v4635_v33  ;;  %v4638_v27 = vld [vmem:[%s3436_s7 + $0x788] sm:$0xff]  ;;  %v4645_v38 = vld [vmem:[%s3436_s7 + $0x790] sm:$0xff] }
  0xc7   : > { %8006 = vst [vmem:[#allocation210_spill] sm:$0xff] %v4638_v27  ;;  %8007 = vst [vmem:[#allocation211_spill] sm:$0xff] %v4645_v38  ;;  %v4648_v59 = vld [vmem:[%s3436_s7 + $0x798] sm:$0xff]  ;;  %v4655_v34 = vld [vmem:[%s3436_s7 + $0x7a0] sm:$0xff] }
  0xc8   : > { %8008 = vst [vmem:[#allocation212_spill] sm:$0xff] %v4648_v59  ;;  %8009 = vst [vmem:[#allocation213_spill] sm:$0xff] %v4655_v34  ;;  %v4658_v9 = vld [vmem:[%s3436_s7 + $0x7a8] sm:$0xff]  ;;  %v4665_v35 = vld [vmem:[%s3436_s7 + $0x7b0] sm:$0xff] }
  0xc9   : > { %8010 = vst [vmem:[#allocation214_spill] sm:$0xff] %v4658_v9  ;;  %8011 = vst [vmem:[#allocation215_spill] sm:$0xff] %v4665_v35  ;;  %v4668_v29 = vld [vmem:[%s3436_s7 + $0x7b8] sm:$0xff]  ;;  %v4675_v56 = vld [vmem:[%s3436_s7 + $0x7c0] sm:$0xff] }
  0xca   : > { %8012 = vst [vmem:[#allocation216_spill] sm:$0xff] %v4668_v29  ;;  %8013 = vst [vmem:[#allocation217_spill] sm:$0xff] %v4675_v56  ;;  %v4678_v16 = vld [vmem:[%s3436_s7 + $0x7c8] sm:$0xff]  ;;  %v4685_v44 = vld [vmem:[%s3436_s7 + $0x7d0] sm:$0xff] }
  0xcb   : > { %8014 = vst [vmem:[#allocation218_spill] sm:$0xff] %v4678_v16  ;;  %8015 = vst [vmem:[#allocation219_spill] sm:$0xff] %v4685_v44  ;;  %v4688_v21 = vld [vmem:[%s3436_s7 + $0x7d8] sm:$0xff]  ;;  %v4695_v39 = vld [vmem:[%s3436_s7 + $0x7e0] sm:$0xff] }
  0xcc   : > { %8016 = vst [vmem:[#allocation220_spill] sm:$0xff] %v4688_v21  ;;  %8017 = vst [vmem:[#allocation221_spill] sm:$0xff] %v4695_v39  ;;  %v4698_v33 = vld [vmem:[%s3436_s7 + $0x7e8] sm:$0xff]  ;;  %v4705_v22 = vld [vmem:[%s3436_s7 + $0x7f0] sm:$0xff] }
  0xcd   : > { %8018 = vst [vmem:[#allocation222_spill] sm:$0xff] %v4698_v33  ;;  %8019 = vst [vmem:[#allocation223_spill] sm:$0xff] %v4705_v22  ;;  %v4708_v59 = vld [vmem:[%s3436_s7 + $0x7f8] sm:$0xff]  ;;  %v4715_v15 = vld [vmem:[%s3436_s7 + $0x800] sm:$0xff] }
  0xce   : > { %8020 = vst [vmem:[#allocation224_spill] sm:$0xff] %v4708_v59  ;;  %8021 = vst [vmem:[#allocation225_spill] sm:$0xff] %v4715_v15  ;;  %v4718_v34 = vld [vmem:[%s3436_s7 + $0x808] sm:$0xff]  ;;  %v4725_v41 = vld [vmem:[%s3436_s7 + $0x810] sm:$0xff] }
  0xcf   : > { %8022 = vst [vmem:[#allocation226_spill] sm:$0xff] %v4718_v34  ;;  %8023 = vst [vmem:[#allocation227_spill] sm:$0xff] %v4725_v41  ;;  %v4728_v35 = vld [vmem:[%s3436_s7 + $0x818] sm:$0xff]  ;;  %v4735_v28 = vld [vmem:[%s3436_s7 + $0x820] sm:$0xff] }
  0xd0   : > { %8024 = vst [vmem:[#allocation228_spill] sm:$0xff] %v4728_v35  ;;  %8025 = vst [vmem:[#allocation229_spill] sm:$0xff] %v4735_v28  ;;  %v4738_v16 = vld [vmem:[%s3436_s7 + $0x828] sm:$0xff]  ;;  %v4745_v9 = vld [vmem:[%s3436_s7 + $0x830] sm:$0xff] }
  0xd1   : > { %8026 = vst [vmem:[#allocation230_spill] sm:$0xff] %v4738_v16  ;;  %8027 = vst [vmem:[#allocation231_spill] sm:$0xff] %v4745_v9  ;;  %v4748_v44 = vld [vmem:[%s3436_s7 + $0x838] sm:$0xff]  ;;  %v4755_v27 = vld [vmem:[%s3436_s7 + $0x840] sm:$0xff] }
  0xd2   : > { %8028 = vst [vmem:[#allocation232_spill] sm:$0xff] %v4748_v44  ;;  %8029 = vst [vmem:[#allocation233_spill] sm:$0xff] %v4755_v27  ;;  %v4758_v39 = vld [vmem:[%s3436_s7 + $0x848] sm:$0xff]  ;;  %v4765_v38 = vld [vmem:[%s3436_s7 + $0x850] sm:$0xff] }
  0xd3   : > { %8030 = vst [vmem:[#allocation234_spill] sm:$0xff] %v4758_v39  ;;  %8031 = vst [vmem:[#allocation235_spill] sm:$0xff] %v4765_v38  ;;  %v4768_v59 = vld [vmem:[%s3436_s7 + $0x858] sm:$0xff]  ;;  %v4775_v21 = vld [vmem:[%s3436_s7 + $0x860] sm:$0xff] }
  0xd4   : > { %8032 = vst [vmem:[#allocation236_spill] sm:$0xff] %v4768_v59  ;;  %8033 = vst [vmem:[#allocation237_spill] sm:$0xff] %v4775_v21  ;;  %v4778_v15 = vld [vmem:[%s3436_s7 + $0x868] sm:$0xff]  ;;  %v4785_v29 = vld [vmem:[%s3436_s7 + $0x870] sm:$0xff] }
  0xd5   : > { %8034 = vst [vmem:[#allocation238_spill] sm:$0xff] %v4778_v15  ;;  %8035 = vst [vmem:[#allocation239_spill] sm:$0xff] %v4785_v29  ;;  %v4788_v41 = vld [vmem:[%s3436_s7 + $0x878] sm:$0xff]  ;;  %v4795_v56 = vld [vmem:[%s3436_s7 + $0x880] sm:$0xff] }
  0xd6   : > { %8036 = vst [vmem:[#allocation240_spill] sm:$0xff] %v4788_v41  ;;  %8037 = vst [vmem:[#allocation241_spill] sm:$0xff] %v4795_v56  ;;  %v4798_v16 = vld [vmem:[%s3436_s7 + $0x888] sm:$0xff]  ;;  %v4805_v34 = vld [vmem:[%s3436_s7 + $0x890] sm:$0xff] }
  0xd7   : > { %8038 = vst [vmem:[#allocation242_spill] sm:$0xff] %v4798_v16  ;;  %8039 = vst [vmem:[#allocation243_spill] sm:$0xff] %v4805_v34  ;;  %v4808_v9 = vld [vmem:[%s3436_s7 + $0x898] sm:$0xff]  ;;  %v4815_v33 = vld [vmem:[%s3436_s7 + $0x8a0] sm:$0xff] }
  0xd8   : > { %8040 = vst [vmem:[#allocation244_spill] sm:$0xff] %v4808_v9  ;;  %8041 = vst [vmem:[#allocation245_spill] sm:$0xff] %v4815_v33  ;;  %v4818_v27 = vld [vmem:[%s3436_s7 + $0x8a8] sm:$0xff]  ;;  %v4825_v22 = vld [vmem:[%s3436_s7 + $0x8b0] sm:$0xff] }
  0xd9   : > { %8042 = vst [vmem:[#allocation246_spill] sm:$0xff] %v4818_v27  ;;  %8043 = vst [vmem:[#allocation247_spill] sm:$0xff] %v4825_v22  ;;  %v4828_v59 = vld [vmem:[%s3436_s7 + $0x8b8] sm:$0xff]  ;;  %v4835_v44 = vld [vmem:[%s3436_s7 + $0x8c0] sm:$0xff] }
  0xda   : > { %8044 = vst [vmem:[#allocation248_spill] sm:$0xff] %v4828_v59  ;;  %8045 = vst [vmem:[#allocation249_spill] sm:$0xff] %v4835_v44  ;;  %v4838_v21 = vld [vmem:[%s3436_s7 + $0x8c8] sm:$0xff]  ;;  %v4845_v35 = vld [vmem:[%s3436_s7 + $0x8d0] sm:$0xff] }
  0xdb   : > { %8046 = vst [vmem:[#allocation250_spill] sm:$0xff] %v4838_v21  ;;  %8047 = vst [vmem:[#allocation251_spill] sm:$0xff] %v4845_v35  ;;  %v4848_v29 = vld [vmem:[%s3436_s7 + $0x8d8] sm:$0xff]  ;;  %v4855_v28 = vld [vmem:[%s3436_s7 + $0x8e0] sm:$0xff] }
  0xdc   : > { %8048 = vst [vmem:[#allocation252_spill] sm:$0xff] %v4848_v29  ;;  %8049 = vst [vmem:[#allocation253_spill] sm:$0xff] %v4855_v28  ;;  %v4858_v16 = vld [vmem:[%s3436_s7 + $0x8e8] sm:$0xff]  ;;  %v4865_v15 = vld [vmem:[%s3436_s7 + $0x8f0] sm:$0xff] }
  0xdd   : > { %8050 = vst [vmem:[#allocation254_spill] sm:$0xff] %v4858_v16  ;;  %8051 = vst [vmem:[#allocation255_spill] sm:$0xff] %v4865_v15  ;;  %v4868_v34 = vld [vmem:[%s3436_s7 + $0x8f8] sm:$0xff]  ;;  %v4875_v39 = vld [vmem:[%s3436_s7 + $0x900] sm:$0xff] }
  0xde   : > { %8052 = vst [vmem:[#allocation256_spill] sm:$0xff] %v4868_v34  ;;  %8053 = vst [vmem:[#allocation257_spill] sm:$0xff] %v4875_v39  ;;  %v4878_v33 = vld [vmem:[%s3436_s7 + $0x908] sm:$0xff]  ;;  %v4885_v38 = vld [vmem:[%s3436_s7 + $0x910] sm:$0xff] }
  0xdf   : > { %8054 = vst [vmem:[#allocation258_spill] sm:$0xff] %v4878_v33  ;;  %8055 = vst [vmem:[#allocation259_spill] sm:$0xff] %v4885_v38  ;;  %v4888_v59 = vld [vmem:[%s3436_s7 + $0x918] sm:$0xff]  ;;  %v4895_v9 = vld [vmem:[%s3436_s7 + $0x920] sm:$0xff] }
  0xe0   : > { %8056 = vst [vmem:[#allocation260_spill] sm:$0xff] %v4888_v59  ;;  %8057 = vst [vmem:[#allocation261_spill] sm:$0xff] %v4895_v9  ;;  %v4898_v44 = vld [vmem:[%s3436_s7 + $0x928] sm:$0xff]  ;;  %v4905_v41 = vld [vmem:[%s3436_s7 + $0x930] sm:$0xff] }
  0xe1   : > { %8058 = vst [vmem:[#allocation262_spill] sm:$0xff] %v4898_v44  ;;  %8059 = vst [vmem:[#allocation263_spill] sm:$0xff] %v4905_v41  ;;  %v4908_v35 = vld [vmem:[%s3436_s7 + $0x938] sm:$0xff]  ;;  %v4915_v56 = vld [vmem:[%s3436_s7 + $0x940] sm:$0xff] }
  0xe2   : > { %8060 = vst [vmem:[#allocation264_spill] sm:$0xff] %v4908_v35  ;;  %8061 = vst [vmem:[#allocation265_spill] sm:$0xff] %v4915_v56  ;;  %v4918_v16 = vld [vmem:[%s3436_s7 + $0x948] sm:$0xff]  ;;  %v4925_v21 = vld [vmem:[%s3436_s7 + $0x950] sm:$0xff] }
  0xe3   : > { %8062 = vst [vmem:[#allocation266_spill] sm:$0xff] %v4918_v16  ;;  %8063 = vst [vmem:[#allocation267_spill] sm:$0xff] %v4925_v21  ;;  %v4928_v15 = vld [vmem:[%s3436_s7 + $0x958] sm:$0xff]  ;;  %v4935_v27 = vld [vmem:[%s3436_s7 + $0x960] sm:$0xff] }
  0xe4   : > { %8064 = vst [vmem:[#allocation268_spill] sm:$0xff] %v4928_v15  ;;  %8065 = vst [vmem:[#allocation269_spill] sm:$0xff] %v4935_v27  ;;  %v4938_v39 = vld [vmem:[%s3436_s7 + $0x968] sm:$0xff]  ;;  %v4945_v22 = vld [vmem:[%s3436_s7 + $0x970] sm:$0xff] }
  0xe5   : > { %8066 = vst [vmem:[#allocation270_spill] sm:$0xff] %v4938_v39  ;;  %8067 = vst [vmem:[#allocation271_spill] sm:$0xff] %v4945_v22  ;;  %v4948_v59 = vld [vmem:[%s3436_s7 + $0x978] sm:$0xff]  ;;  %v4955_v34 = vld [vmem:[%s3436_s7 + $0x980] sm:$0xff] }
  0xe6   : > { %8068 = vst [vmem:[#allocation272_spill] sm:$0xff] %v4948_v59  ;;  %8069 = vst [vmem:[#allocation273_spill] sm:$0xff] %v4955_v34  ;;  %v4958_v9 = vld [vmem:[%s3436_s7 + $0x988] sm:$0xff]  ;;  %v4965_v29 = vld [vmem:[%s3436_s7 + $0x990] sm:$0xff] }
  0xe7   : > { %8070 = vst [vmem:[#allocation274_spill] sm:$0xff] %v4958_v9  ;;  %8071 = vst [vmem:[#allocation275_spill] sm:$0xff] %v4965_v29  ;;  %v4968_v41 = vld [vmem:[%s3436_s7 + $0x998] sm:$0xff]  ;;  %v4975_v28 = vld [vmem:[%s3436_s7 + $0x9a0] sm:$0xff] }
  0xe8   : > { %8072 = vst [vmem:[#allocation276_spill] sm:$0xff] %v4968_v41  ;;  %8073 = vst [vmem:[#allocation277_spill] sm:$0xff] %v4975_v28  ;;  %v4978_v16 = vld [vmem:[%s3436_s7 + $0x9a8] sm:$0xff]  ;;  %v4985_v44 = vld [vmem:[%s3436_s7 + $0x9b0] sm:$0xff] }
  0xe9   : > { %8074 = vst [vmem:[#allocation278_spill] sm:$0xff] %v4978_v16  ;;  %8075 = vst [vmem:[#allocation279_spill] sm:$0xff] %v4985_v44  ;;  %v4988_v21 = vld [vmem:[%s3436_s7 + $0x9b8] sm:$0xff]  ;;  %v4995_v33 = vld [vmem:[%s3436_s7 + $0x9c0] sm:$0xff] }
  0xea   : > { %8076 = vst [vmem:[#allocation280_spill] sm:$0xff] %v4988_v21  ;;  %8077 = vst [vmem:[#allocation281_spill] sm:$0xff] %v4995_v33  ;;  %v4998_v27 = vld [vmem:[%s3436_s7 + $0x9c8] sm:$0xff]  ;;  %v5005_v38 = vld [vmem:[%s3436_s7 + $0x9d0] sm:$0xff] }
  0xeb   : > { %8078 = vst [vmem:[#allocation282_spill] sm:$0xff] %v4998_v27  ;;  %8079 = vst [vmem:[#allocation283_spill] sm:$0xff] %v5005_v38  ;;  %v5008_v59 = vld [vmem:[%s3436_s7 + $0x9d8] sm:$0xff]  ;;  %v5015_v15 = vld [vmem:[%s3436_s7 + $0x9e0] sm:$0xff] }
  0xec   : > { %8080 = vst [vmem:[#allocation284_spill] sm:$0xff] %v5008_v59  ;;  %8081 = vst [vmem:[#allocation285_spill] sm:$0xff] %v5015_v15  ;;  %v5018_v34 = vld [vmem:[%s3436_s7 + $0x9e8] sm:$0xff]  ;;  %v5025_v35 = vld [vmem:[%s3436_s7 + $0x9f0] sm:$0xff] }
  0xed   : > { %8082 = vst [vmem:[#allocation286_spill] sm:$0xff] %v5018_v34  ;;  %8083 = vst [vmem:[#allocation287_spill] sm:$0xff] %v5025_v35  ;;  %v5028_v29 = vld [vmem:[%s3436_s7 + $0x9f8] sm:$0xff]  ;;  %v5035_v56 = vld [vmem:[%s3436_s7 + $0xa00] sm:$0xff] }
  0xee   : > { %8084 = vst [vmem:[#allocation288_spill] sm:$0xff] %v5028_v29  ;;  %8085 = vst [vmem:[#allocation289_spill] sm:$0xff] %v5035_v56  ;;  %v5038_v16 = vld [vmem:[%s3436_s7 + $0xa08] sm:$0xff]  ;;  %v5045_v9 = vld [vmem:[%s3436_s7 + $0xa10] sm:$0xff] }
  0xef   : > { %8086 = vst [vmem:[#allocation290_spill] sm:$0xff] %v5038_v16  ;;  %8087 = vst [vmem:[#allocation291_spill] sm:$0xff] %v5045_v9  ;;  %v5048_v44 = vld [vmem:[%s3436_s7 + $0xa18] sm:$0xff]  ;;  %v5055_v39 = vld [vmem:[%s3436_s7 + $0xa20] sm:$0xff] }
  0xf0   : > { %8088 = vst [vmem:[#allocation292_spill] sm:$0xff] %v5048_v44  ;;  %8089 = vst [vmem:[#allocation293_spill] sm:$0xff] %v5055_v39  ;;  %v5058_v33 = vld [vmem:[%s3436_s7 + $0xa28] sm:$0xff]  ;;  %v5065_v22 = vld [vmem:[%s3436_s7 + $0xa30] sm:$0xff] }
  0xf1   : > { %8090 = vst [vmem:[#allocation294_spill] sm:$0xff] %v5058_v33  ;;  %8091 = vst [vmem:[#allocation295_spill] sm:$0xff] %v5065_v22  ;;  %v5068_v59 = vld [vmem:[%s3436_s7 + $0xa38] sm:$0xff]  ;;  %v5075_v21 = vld [vmem:[%s3436_s7 + $0xa40] sm:$0xff] }
  0xf2   : > { %8092 = vst [vmem:[#allocation296_spill] sm:$0xff] %v5068_v59  ;;  %8093 = vst [vmem:[#allocation297_spill] sm:$0xff] %v5075_v21  ;;  %v5078_v15 = vld [vmem:[%s3436_s7 + $0xa48] sm:$0xff]  ;;  %v5085_v41 = vld [vmem:[%s3436_s7 + $0xa50] sm:$0xff] }
  0xf3   : > { %8094 = vst [vmem:[#allocation298_spill] sm:$0xff] %v5078_v15  ;;  %8095 = vst [vmem:[#allocation299_spill] sm:$0xff] %v5085_v41  ;;  %v5088_v35 = vld [vmem:[%s3436_s7 + $0xa58] sm:$0xff]  ;;  %v5095_v28 = vld [vmem:[%s3436_s7 + $0xa60] sm:$0xff] }
  0xf4   : > { %8096 = vst [vmem:[#allocation300_spill] sm:$0xff] %v5088_v35  ;;  %8097 = vst [vmem:[#allocation301_spill] sm:$0xff] %v5095_v28  ;;  %v5098_v16 = vld [vmem:[%s3436_s7 + $0xa68] sm:$0xff]  ;;  %v5105_v34 = vld [vmem:[%s3436_s7 + $0xa70] sm:$0xff] }
  0xf5   : > { %8098 = vst [vmem:[#allocation302_spill] sm:$0xff] %v5098_v16  ;;  %8099 = vst [vmem:[#allocation303_spill] sm:$0xff] %v5105_v34  ;;  %v5108_v9 = vld [vmem:[%s3436_s7 + $0xa78] sm:$0xff]  ;;  %v5115_v27 = vld [vmem:[%s3436_s7 + $0xa80] sm:$0xff] }
  0xf6   : > { %8100 = vst [vmem:[#allocation304_spill] sm:$0xff] %v5108_v9  ;;  %8101 = vst [vmem:[#allocation305_spill] sm:$0xff] %v5115_v27  ;;  %v5118_v39 = vld [vmem:[%s3436_s7 + $0xa88] sm:$0xff]  ;;  %v5125_v38 = vld [vmem:[%s3436_s7 + $0xa90] sm:$0xff] }
  0xf7   : > { %8102 = vst [vmem:[#allocation306_spill] sm:$0xff] %v5118_v39  ;;  %8103 = vst [vmem:[#allocation307_spill] sm:$0xff] %v5125_v38  ;;  %v5128_v59 = vld [vmem:[%s3436_s7 + $0xa98] sm:$0xff]  ;;  %v5135_v44 = vld [vmem:[%s3436_s7 + $0xaa0] sm:$0xff] }
  0xf8   : > { %8104 = vst [vmem:[#allocation308_spill] sm:$0xff] %v5128_v59  ;;  %8105 = vst [vmem:[#allocation309_spill] sm:$0xff] %v5135_v44  ;;  %v5138_v21 = vld [vmem:[%s3436_s7 + $0xaa8] sm:$0xff]  ;;  %v5145_v29 = vld [vmem:[%s3436_s7 + $0xab0] sm:$0xff] }
  0xf9   : > { %8106 = vst [vmem:[#allocation310_spill] sm:$0xff] %v5138_v21  ;;  %8107 = vst [vmem:[#allocation311_spill] sm:$0xff] %v5145_v29  ;;  %v5148_v41 = vld [vmem:[%s3436_s7 + $0xab8] sm:$0xff]  ;;  %v5155_v56 = vld [vmem:[%s3436_s7 + $0xac0] sm:$0xff] }
  0xfa   : > { %8108 = vst [vmem:[#allocation312_spill] sm:$0xff] %v5148_v41  ;;  %8109 = vst [vmem:[#allocation313_spill] sm:$0xff] %v5155_v56  ;;  %v5158_v16 = vld [vmem:[%s3436_s7 + $0xac8] sm:$0xff]  ;;  %v5165_v15 = vld [vmem:[%s3436_s7 + $0xad0] sm:$0xff] }
  0xfb   : > { %8110 = vst [vmem:[#allocation314_spill] sm:$0xff] %v5158_v16  ;;  %8111 = vst [vmem:[#allocation315_spill] sm:$0xff] %v5165_v15  ;;  %v5168_v34 = vld [vmem:[%s3436_s7 + $0xad8] sm:$0xff]  ;;  %v5175_v33 = vld [vmem:[%s3436_s7 + $0xae0] sm:$0xff] }
  0xfc   : > { %8112 = vst [vmem:[#allocation316_spill] sm:$0xff] %v5168_v34  ;;  %8113 = vst [vmem:[#allocation317_spill] sm:$0xff] %v5175_v33  ;;  %v5178_v27 = vld [vmem:[%s3436_s7 + $0xae8] sm:$0xff]  ;;  %v5185_v22 = vld [vmem:[%s3436_s7 + $0xaf0] sm:$0xff] }
  0xfd   : > { %8114 = vst [vmem:[#allocation318_spill] sm:$0xff] %v5178_v27  ;;  %8115 = vst [vmem:[#allocation319_spill] sm:$0xff] %v5185_v22  ;;  %v5188_v59 = vld [vmem:[%s3436_s7 + $0xaf8] sm:$0xff]  ;;  %v5195_v9 = vld [vmem:[%s3436_s7 + $0xb00] sm:$0xff] }
  0xfe   : > { %8116 = vst [vmem:[#allocation320_spill] sm:$0xff] %v5188_v59  ;;  %8117 = vst [vmem:[#allocation321_spill] sm:$0xff] %v5195_v9  ;;  %v5198_v44 = vld [vmem:[%s3436_s7 + $0xb08] sm:$0xff]  ;;  %v5205_v35 = vld [vmem:[%s3436_s7 + $0xb10] sm:$0xff] }
  0xff   : > { %8118 = vst [vmem:[#allocation322_spill] sm:$0xff] %v5198_v44  ;;  %8119 = vst [vmem:[#allocation323_spill] sm:$0xff] %v5205_v35  ;;  %v5208_v29 = vld [vmem:[%s3436_s7 + $0xb18] sm:$0xff]  ;;  %v5215_v28 = vld [vmem:[%s3436_s7 + $0xb20] sm:$0xff] }
 0x100   : > { %8120 = vst [vmem:[#allocation324_spill] sm:$0xff] %v5208_v29  ;;  %8121 = vst [vmem:[#allocation325_spill] sm:$0xff] %v5215_v28  ;;  %v5218_v56 = vld [vmem:[%s3436_s7 + $0xb28] sm:$0xff]  ;;  %v5225_v26 = vld [vmem:[%s3436_s7 + $0xb30] sm:$0xff] }
 0x101   : > { %8122 = vst [vmem:[#allocation326_spill] sm:$0xff] %v5218_v56  ;;  %8123 = vst [vmem:[#allocation327_spill] sm:$0xff] %v5225_v26  ;;  %v5228_v15 = vld [vmem:[%s3436_s7 + $0xb38] sm:$0xff]  ;;  %v5235_v39 = vld [vmem:[%s3436_s7 + $0xb40] sm:$0xff] }
 0x102   : > { %8124 = vst [vmem:[#allocation328_spill] sm:$0xff] %v5228_v15  ;;  %8125 = vst [vmem:[#allocation329_spill] sm:$0xff] %v5235_v39  ;;  %v5238_v33 = vld [vmem:[%s3436_s7 + $0xb48] sm:$0xff]  ;;  %v5245_v38 = vld [vmem:[%s3436_s7 + $0xb50] sm:$0xff]  ;;  %v8149_v15 = vunpack.c.l.bf16 %v3460_v5 }
 0x103   : > { %8126 = vst [vmem:[#allocation330_spill] sm:$0xff] %v5238_v33  ;;  %8127 = vst [vmem:[#allocation331_spill] sm:$0xff] %v5245_v38  ;;  %v5248_v22 = vld [vmem:[%s3436_s7 + $0xb58] sm:$0xff]  ;;  %v5255_v21 = vld [vmem:[%s3436_s7 + $0xb60] sm:$0xff]  ;;  %v8151_v33 = vunpack.c.h.bf16 %v3460_v5  ;;  %v8159_v5 = vunpack.c.h.bf16 %v3688_v13 }
 0x104   : > { %8128 = vst [vmem:[#allocation332_spill] sm:$0xff] %v5248_v22  ;;  %8129 = vst [vmem:[#allocation333_spill] sm:$0xff] %v5255_v21  ;;  %v5258_v9 = vld [vmem:[%s3436_s7 + $0xb68] sm:$0xff]  ;;  %v5265_v41 = vld [vmem:[%s3436_s7 + $0xb70] sm:$0xff]  ;;  %v8148_v22 = vunpack.c.l.bf16 %v3451_v2 }
 0x105   : > { %8130 = vst [vmem:[#allocation334_spill] sm:$0xff] %v5258_v9  ;;  %8131 = vst [vmem:[#allocation335_spill] sm:$0xff] %v5265_v41  ;;  %v5268_v35 = vld [vmem:[%s3436_s7 + $0xb78] sm:$0xff]  ;;  %v5275_v16 = vld [vmem:[%s3436_s7 + $0xb80] sm:$0xff] }
 0x106   : > { %8132 = vst [vmem:[#allocation336_spill] sm:$0xff] %v5268_v35  ;;  %8133 = vst [vmem:[#allocation337_spill] sm:$0xff] %v5275_v16  ;;  %v5278_v28 = vld [vmem:[%s3436_s7 + $0xb88] sm:$0xff]  ;;  %v5285_v34 = vld [vmem:[%s3436_s7 + $0xb90] sm:$0xff] }
 0x107   : > { %8134 = vst [vmem:[#allocation338_spill] sm:$0xff] %v5278_v28  ;;  %8135 = vst [vmem:[#allocation339_spill] sm:$0xff] %v5285_v34  ;;  %v5288_v26 = vld [vmem:[%s3436_s7 + $0xb98] sm:$0xff]  ;;  %v5295_v27 = vld [vmem:[%s3436_s7 + $0xba0] sm:$0xff]  ;;  %v8144_v34 = vunpack.c.l.bf16 %v3448_v1 }
 0x108   : > { %8136 = vst [vmem:[#allocation340_spill] sm:$0xff] %v5295_v27  ;;  %v5298_v39 = vld [vmem:[%s3436_s7 + $0xba8] sm:$0xff]  ;;  %v5305_v59 = vld [vmem:[%s3436_s7 + $0xbb0] sm:$0xff]  ;;  %v5308_v38 = vld [vmem:[%s3436_s7 + $0xbb8] sm:$0xff]  ;;  %v8150_v27 = vunpack.c.h.bf16 %v3451_v2  ;;  %v8158_v2 = vunpack.c.h.bf16 %v3675_v40 }
 0x109   : > { %8137 = vst [vmem:[#allocation341_spill] sm:$0xff] %v5298_v39  ;;  %8138 = vst [vmem:[#allocation342_spill] sm:$0xff] %v5305_v59  ;;  %v5315_v44 = vld [vmem:[%s3436_s7 + $0xbc0] sm:$0xff]  ;;  %v5318_v21 = vld [vmem:[%s3436_s7 + $0xbc8] sm:$0xff]  ;;  %v8146_v59 = vunpack.c.h.bf16 %v3448_v1  ;;  %v8147_v39 = vunpack.c.h.bf16 %v3457_v4  ;;  %v8154_v1 = vunpack.c.h.bf16 %v3454_v3  ;;  %v8155_v4 = vunpack.c.h.bf16 %v3463_v6 }
 0x10a   : > { %v5325_v29 = vld [vmem:[%s3436_s7 + $0xbd0] sm:$0xff]  ;;  %v5328_v41 = vld [vmem:[%s3436_s7 + $0xbd8] sm:$0xff]  ;;  %v5335_v28 = vld [vmem:[%s3436_s7 + $0xbe0] sm:$0xff]  ;;  %v1492_v35 = vadd.f32 %v8151_v33, %v8150_v27  ;;  %v8160_v27 = vunpack.c.l.bf16 %v3469_v10 }
 0x10b   : > { %8139 = vst [vmem:[#allocation343_spill] sm:$0xff] %v5325_v29  ;;  %8140 = vst [vmem:[#allocation344_spill] sm:$0xff] %v5328_v41  ;;  %v5338_v56 = vld [vmem:[%s3436_s7 + $0xbe8] sm:$0xff]  ;;  %v5345_v45 = vld [vmem:[%s3436_s7 + $0xbf0] sm:$0xff]  ;;  %v1429_v29 = vadd.f32 %v8145_v62, %v8144_v34  ;;  %v1450_v16 = vadd.f32 %v8147_v39, %v8146_v59  ;;  %v1534_v39 = vadd.f32 %v8155_v4, %v8154_v1  ;;  %v8156_v59 = vunpack.c.l.bf16 %v3675_v40 }
 0x10c   : > { %8141 = vst [vmem:[#allocation345_spill] sm:$0xff] %v5335_v28  ;;  %8142 = vst [vmem:[#allocation346_spill] sm:$0xff] %v5338_v56  ;;  %v5348_v9 = vld [vmem:[%s3436_s7 + $0xbf8] sm:$0xff]  ;;  %v1471_v56 = vadd.f32 %v8149_v15, %v8148_v22  ;;  %v8153_v28 = vunpack.c.l.bf16 %v3463_v6  ;;  %v8157_v62 = vunpack.c.l.bf16 %v3688_v13  ;;  %v1576_v22 = vadd.f32 %v8159_v5, %v8158_v2 }
 0x10d   : > { %8143 = vst [vmem:[#allocation347_spill] sm:$0xff] %v5345_v45  ;;  %v8152_v45 = vunpack.c.l.bf16 %v3454_v3  ;;  %v1430_v33 = vadd.f32 %v1429_v29, %v8160_v27  ;;  %v8162_v3 = vunpack.c.l.bf16 %v3472_v11  ;;  %v8163_v1 = vunpack.c.h.bf16 %v3472_v11 }
 0x10e   : > { %v1555_v15 = vadd.f32 %v8157_v62, %v8156_v59  ;;  %v8164_v41 = vunpack.c.l.bf16 %v3475_v12  ;;  %v8165_v40 = vunpack.c.h.bf16 %v3475_v12  ;;  %v8166_v13 = vunpack.c.l.bf16 %v3705_v32 }
 0x10f   : > { %v1513_v34 = vadd.f32 %v8153_v28, %v8152_v45  ;;  %v8161_v28 = vunpack.c.h.bf16 %v3469_v10  ;;  %v1472_v6 = vadd.f32 %v1471_v56, %v8162_v3  ;;  %v1493_v4 = vadd.f32 %v1492_v35, %v8163_v1 }
 0x110   : > { %v1535_v62 = vadd.f32 %v1534_v39, %v8165_v40  ;;  %v1556_v2 = vadd.f32 %v1555_v15, %v8166_v13  ;;  %v8167_v29 = vunpack.c.h.bf16 %v3705_v32  ;;  %v8168_v10 = vunpack.c.l.bf16 %v3482_v17 }
 0x111   : > { %v1451_v45 = vadd.f32 %v1450_v16, %v8161_v28  ;;  %v1514_v59 = vadd.f32 %v1513_v34, %v8164_v41  ;;  %v8169_v56 = vunpack.c.h.bf16 %v3482_v17  ;;  %v8170_v11 = vunpack.c.l.bf16 %v3485_v18 }
 0x112   : > { %v1577_v5 = vadd.f32 %v1576_v22, %v8167_v29  ;;  %v1431_v16 = vadd.f32 %v1430_v33, %v8168_v10  ;;  %v8171_v41 = vunpack.c.h.bf16 %v3485_v18  ;;  %v8172_v12 = vunpack.c.l.bf16 %v3488_v19 }
 0x113   : > { %v1452_v27 = vadd.f32 %v1451_v45, %v8169_v56  ;;  %v1473_v35 = vadd.f32 %v1472_v6, %v8170_v11  ;;  %v8173_v15 = vunpack.c.h.bf16 %v3488_v19  ;;  %v8174_v32 = vunpack.c.l.bf16 %v3718_v7 }
 0x114   : > { %v1494_v34 = vadd.f32 %v1493_v4, %v8171_v41  ;;  %v1515_v39 = vadd.f32 %v1514_v59, %v8172_v12  ;;  %v8175_v33 = vunpack.c.h.bf16 %v3718_v7  ;;  %v8176_v17 = vunpack.c.l.bf16 %v3495_v24 }
 0x115   : > { %v1536_v28 = vadd.f32 %v1535_v62, %v8173_v15  ;;  %v1557_v22 = vadd.f32 %v1556_v2, %v8174_v32  ;;  %v8177_v6 = vunpack.c.h.bf16 %v3495_v24  ;;  %v8178_v18 = vunpack.c.l.bf16 %v3498_v25 }
 0x116   : > { %v1578_v3 = vadd.f32 %v1577_v5, %v8175_v33  ;;  %v1432_v45 = vadd.f32 %v1431_v16, %v8176_v17  ;;  %v8179_v59 = vunpack.c.h.bf16 %v3498_v25  ;;  %v8180_v19 = vunpack.c.l.bf16 %v3505_v30 }
 0x117   : > { %v1453_v1 = vadd.f32 %v1452_v27, %v8177_v6  ;;  %v1474_v4 = vadd.f32 %v1473_v35, %v8178_v18  ;;  %v8181_v13 = vunpack.c.h.bf16 %v3505_v30  ;;  %v8182_v7 = vunpack.c.l.bf16 %v3735_v23 }
 0x118   : > { %v1495_v40 = vadd.f32 %v1494_v34, %v8179_v59  ;;  %v1516_v62 = vadd.f32 %v1515_v39, %v8180_v19  ;;  %v8183_v5 = vunpack.c.h.bf16 %v3735_v23  ;;  %v8184_v24 = vunpack.c.l.bf16 %v3508_v31 }
 0x119   : > { %v1537_v2 = vadd.f32 %v1536_v28, %v8181_v13  ;;  %v1558_v29 = vadd.f32 %v1557_v22, %v8182_v7  ;;  %v8185_v56 = vunpack.c.h.bf16 %v3508_v31  ;;  %v8186_v25 = vunpack.c.l.bf16 %v3515_v36 }
 0x11a   : > { %v1579_v10 = vadd.f32 %v1578_v3, %v8183_v5  ;;  %v1433_v16 = vadd.f32 %v1432_v45, %v8184_v24  ;;  %v8187_v35 = vunpack.c.h.bf16 %v3515_v36  ;;  %v8188_v30 = vunpack.c.l.bf16 %v3518_v37 }
 0x11b   : > { %v1454_v27 = vadd.f32 %v1453_v1, %v8185_v56  ;;  %v1475_v11 = vadd.f32 %v1474_v4, %v8186_v25  ;;  %v8189_v12 = vunpack.c.h.bf16 %v3518_v37  ;;  %v8190_v23 = vunpack.c.l.bf16 %v3748_v46 }
 0x11c   : > { %v1496_v41 = vadd.f32 %v1495_v40, %v8187_v35  ;;  %v1517_v34 = vadd.f32 %v1516_v62, %v8188_v30  ;;  %v8191_v28 = vunpack.c.h.bf16 %v3748_v46  ;;  %v8192_v31 = vunpack.c.l.bf16 %v3525_v42 }
 0x11d   : > { %v1538_v39 = vadd.f32 %v1537_v2, %v8189_v12  ;;  %v1559_v15 = vadd.f32 %v1558_v29, %v8190_v23  ;;  %v8193_v33 = vunpack.c.h.bf16 %v3525_v42  ;;  %v8194_v36 = vunpack.c.l.bf16 %v3528_v43 }
 0x11e   : > { %v1580_v32 = vadd.f32 %v1579_v10, %v8191_v28  ;;  %v1434_v22 = vadd.f32 %v1433_v16, %v8192_v31  ;;  %v8195_v45 = vunpack.c.h.bf16 %v3528_v43  ;;  %v8196_v37 = vunpack.c.l.bf16 %v3535_v48 }
 0x11f   : > { %v1455_v3 = vadd.f32 %v1454_v27, %v8193_v33  ;;  %v1476_v17 = vadd.f32 %v1475_v11, %v8194_v36  ;;  %v8197_v18 = vunpack.c.h.bf16 %v3535_v48  ;;  %v8198_v46 = vunpack.c.l.bf16 %v3765_v20 }
 0x120   : > { %v1497_v6 = vadd.f32 %v1496_v41, %v8195_v45  ;;  %v1518_v1 = vadd.f32 %v1517_v34, %v8196_v37  ;;  %v8199_v40 = vunpack.c.h.bf16 %v3765_v20  ;;  %v8200_v42 = vunpack.c.l.bf16 %v3538_v49 }
 0x121   : > { %v1539_v4 = vadd.f32 %v1538_v39, %v8197_v18  ;;  %v1560_v59 = vadd.f32 %v1559_v15, %v8198_v46  ;;  %v8201_v13 = vunpack.c.h.bf16 %v3538_v49  ;;  %v8202_v43 = vunpack.c.l.bf16 %v3545_v54 }
 0x122   : > { %v1581_v19 = vadd.f32 %v1580_v32, %v8199_v40  ;;  %v1435_v62 = vadd.f32 %v1434_v22, %v8200_v42  ;;  %v8203_v29 = vunpack.c.h.bf16 %v3545_v54  ;;  %v8204_v48 = vunpack.c.l.bf16 %v3548_v55 }
 0x123   : > { %v1456_v2 = vadd.f32 %v1455_v3, %v8201_v13  ;;  %v1477_v7 = vadd.f32 %v1476_v17, %v8202_v43  ;;  %v8205_v24 = vunpack.c.h.bf16 %v3548_v55  ;;  %v8206_v20 = vunpack.c.l.bf16 %v3778_v50 }
 0x124   : > { %v1498_v5 = vadd.f32 %v1497_v6, %v8203_v29  ;;  %v1519_v10 = vadd.f32 %v1518_v1, %v8204_v48  ;;  %v8207_v27 = vunpack.c.h.bf16 %v3778_v50  ;;  %v8208_v49 = vunpack.c.l.bf16 %v3555_v60 }
 0x125   : > { %v1540_v16 = vadd.f32 %v1539_v4, %v8205_v24  ;;  %v1561_v56 = vadd.f32 %v1560_v59, %v8206_v20  ;;  %v8209_v35 = vunpack.c.h.bf16 %v3555_v60  ;;  %v8210_v54 = vunpack.c.l.bf16 %v3558_v61 }
 0x126   : > { %v1582_v25 = vadd.f32 %v1581_v19, %v8207_v27  ;;  %v1436_v11 = vadd.f32 %v1435_v62, %v8208_v49  ;;  %v8211_v34 = vunpack.c.h.bf16 %v3558_v61  ;;  %v8212_v55 = vunpack.c.l.bf16 %v3565_v57 }
 0x127   : > { %v1457_v41 = vadd.f32 %v1456_v2, %v8209_v35  ;;  %v1478_v30 = vadd.f32 %v1477_v7, %v8210_v54  ;;  %v8213_v23 = vunpack.c.h.bf16 %v3565_v57  ;;  %v8214_v50 = vunpack.c.l.bf16 %v3795_v14 }
 0x128   : > { %v1499_v12 = vadd.f32 %v1498_v5, %v8211_v34  ;;  %v1520_v39 = vadd.f32 %v1519_v10, %v8212_v55  ;;  %v8215_v32 = vunpack.c.h.bf16 %v3795_v14  ;;  %v8216_v60 = vunpack.c.l.bf16 %v3568_v53 }
 0x129   : > { %v1541_v15 = vadd.f32 %v1540_v16, %v8213_v23  ;;  %v1562_v28 = vadd.f32 %v1561_v56, %v8214_v50  ;;  %v8217_v33 = vunpack.c.h.bf16 %v3568_v53  ;;  %v8218_v61 = vunpack.c.l.bf16 %v3575_v63 }
 0x12a   : > { %v1583_v31 = vadd.f32 %v1582_v25, %v8215_v32  ;;  %v1437_v22 = vadd.f32 %v1436_v11, %v8216_v60  ;;  %v8219_v17 = vunpack.c.h.bf16 %v3575_v63  ;;  %v8220_v57 = vunpack.c.l.bf16 %v3578_v51  ;;  %v8247_v32 = vld [vmem:[#allocation17_spill] sm:$0xff] }
 0x12b   : > { %v1458_v3 = vadd.f32 %v1457_v41, %v8217_v33  ;;  %v1479_v36 = vadd.f32 %v1478_v30, %v8218_v61  ;;  %v8221_v37 = vunpack.c.h.bf16 %v3578_v51  ;;  %v8222_v14 = vunpack.c.l.bf16 %v3808_v52 }
 0x12c   : > { %v1500_v45 = vadd.f32 %v1499_v12, %v8219_v17  ;;  %v1521_v6 = vadd.f32 %v1520_v39, %v8220_v57  ;;  %v8223_v4 = vunpack.c.h.bf16 %v3808_v52  ;;  %v8224_v53 = vunpack.c.l.bf16 %v3585_v58  ;;  %v8244_v39 = vld [vmem:[#allocation16_spill] sm:$0xff]  ;;  %v8253_v57 = vld [vmem:[#allocation53_spill] sm:$0xff] }
 0x12d   : > { %v1542_v1 = vadd.f32 %v1541_v15, %v8221_v37  ;;  %v1563_v18 = vadd.f32 %v1562_v28, %v8222_v14  ;;  %v8225_v40 = vunpack.c.h.bf16 %v3585_v58  ;;  %v8226_v63 = vunpack.c.l.bf16 %v3588_v47  ;;  %v8232_v58 = vld [vmem:[#allocation13_spill] sm:$0xff] }
 0x12e   : > { %v1584_v46 = vadd.f32 %v1583_v31, %v8223_v4  ;;  %v1438_v59 = vadd.f32 %v1437_v22, %v8224_v53  ;;  %v8227_v62 = vunpack.c.h.bf16 %v3588_v47  ;;  %v8228_v51 = vunpack.c.l.bf16 %v3595_v0  ;;  %v8235_v47 = vld [vmem:[#allocation14_spill] sm:$0xff] }
 0x12f   : > { %v1459_v19 = vadd.f32 %v1458_v3, %v8225_v40  ;;  %v1480_v42 = vadd.f32 %v1479_v36, %v8226_v63  ;;  %v8229_v43 = vunpack.c.h.bf16 %v3595_v0  ;;  %v8230_v52 = vunpack.c.l.bf16 %v3825_v8  ;;  %v8238_v0 = vld [vmem:[#allocation15_spill] sm:$0xff]  ;;  %v8250_v3 = vld [vmem:[#allocation18_spill] sm:$0xff]  ;;  %v8259_v40 = vld [vmem:[#allocation20_spill] sm:$0xff] }
 0x130   : > { %v1501_v13 = vadd.f32 %v1500_v45, %v8227_v62  ;;  %v1522_v2 = vadd.f32 %v1521_v6, %v8228_v51  ;;  %v8231_v5 = vunpack.c.h.bf16 %v3825_v8  ;;  %v8233_v10 = vunpack.c.l.bf16 %v8232_v58  ;;  %v8241_v8 = vld [vmem:[#allocation50_spill] sm:$0xff] }
 0x131   : > { %v1543_v7 = vadd.f32 %v1542_v1, %v8229_v43  ;;  %v1564_v29 = vadd.f32 %v1563_v18, %v8230_v52  ;;  %v8234_v16 = vunpack.c.h.bf16 %v8232_v58  ;;  %v8236_v56 = vunpack.c.l.bf16 %v8235_v47  ;;  %v8256_v18 = vld [vmem:[#allocation19_spill] sm:$0xff]  ;;  %v8265_v52 = vld [vmem:[#allocation56_spill] sm:$0xff] }
 0x132   : > { %v1585_v48 = vadd.f32 %v1584_v46, %v8231_v5  ;;  %v1439_v24 = vadd.f32 %v1438_v59, %v8233_v10  ;;  %v8237_v25 = vunpack.c.h.bf16 %v8235_v47  ;;  %v8239_v11 = vunpack.c.l.bf16 %v8238_v0  ;;  %v8268_v10 = vld [vmem:[#allocation22_spill] sm:$0xff] }
 0x133   : > { %v1460_v20 = vadd.f32 %v1459_v19, %v8234_v16  ;;  %v1481_v27 = vadd.f32 %v1480_v42, %v8236_v56  ;;  %v8240_v41 = vunpack.c.h.bf16 %v8238_v0  ;;  %v8242_v30 = vunpack.c.l.bf16 %v8241_v8  ;;  %v8271_v56 = vld [vmem:[#allocation23_spill] sm:$0xff] }
 0x134   : > { %v1502_v49 = vadd.f32 %v1501_v13, %v8237_v25  ;;  %v1523_v35 = vadd.f32 %v1522_v2, %v8239_v11  ;;  %v8243_v12 = vunpack.c.h.bf16 %v8241_v8  ;;  %v8245_v23 = vunpack.c.l.bf16 %v8244_v39  ;;  %v8262_v13 = vld [vmem:[#allocation21_spill] sm:$0xff]  ;;  %v8274_v11 = vld [vmem:[#allocation24_spill] sm:$0xff] }
 0x135   : > { %v1544_v54 = vadd.f32 %v1543_v7, %v8240_v41  ;;  %v1565_v34 = vadd.f32 %v1564_v29, %v8242_v30  ;;  %v8246_v50 = vunpack.c.h.bf16 %v8244_v39  ;;  %v8248_v31 = vunpack.c.l.bf16 %v8247_v32  ;;  %v8277_v30 = vld [vmem:[#allocation59_spill] sm:$0xff] }
 0x136   : > { %v1586_v55 = vadd.f32 %v1585_v48, %v8243_v12  ;;  %v1440_v15 = vadd.f32 %v1439_v24, %v8245_v23  ;;  %v8249_v22 = vunpack.c.h.bf16 %v8247_v32  ;;  %v8251_v61 = vunpack.c.l.bf16 %v8250_v3  ;;  %v8280_v23 = vld [vmem:[#allocation25_spill] sm:$0xff] }
 0x137   : > { %v1461_v28 = vadd.f32 %v1460_v20, %v8246_v50  ;;  %v1482_v60 = vadd.f32 %v1481_v27, %v8248_v31  ;;  %v8252_v17 = vunpack.c.h.bf16 %v8250_v3  ;;  %v8254_v6 = vunpack.c.l.bf16 %v8253_v57  ;;  %v8283_v31 = vld [vmem:[#allocation26_spill] sm:$0xff] }
 0x138   : > { %v1503_v33 = vadd.f32 %v1502_v49, %v8249_v22  ;;  %v1524_v36 = vadd.f32 %v1523_v35, %v8251_v61  ;;  %v8255_v1 = vunpack.c.h.bf16 %v8253_v57  ;;  %v8257_v4 = vunpack.c.l.bf16 %v8256_v18  ;;  %v8286_v61 = vld [vmem:[#allocation27_spill] sm:$0xff] }
 0x139   : > { %v1545_v45 = vadd.f32 %v1544_v54, %v8252_v17  ;;  %v1566_v37 = vadd.f32 %v1565_v34, %v8254_v6  ;;  %v8258_v53 = vunpack.c.h.bf16 %v8256_v18  ;;  %v8260_v19 = vunpack.c.l.bf16 %v8259_v40  ;;  %v8289_v6 = vld [vmem:[#allocation62_spill] sm:$0xff] }
 0x13a   : > { %v1587_v14 = vadd.f32 %v1586_v55, %v8255_v1  ;;  %v1441_v46 = vadd.f32 %v1440_v15, %v8257_v4  ;;  %v8261_v42 = vunpack.c.h.bf16 %v8259_v40  ;;  %v8263_v51 = vunpack.c.l.bf16 %v8262_v13 }
 0x13b   : > { %v1462_v59 = vadd.f32 %v1461_v28, %v8258_v53  ;;  %v1483_v63 = vadd.f32 %v1482_v60, %v8260_v19  ;;  %v8264_v43 = vunpack.c.h.bf16 %v8262_v13  ;;  %v8266_v29 = vunpack.c.l.bf16 %v8265_v52 }
 0x13c   : > { %v1504_v62 = vadd.f32 %v1503_v33, %v8261_v42  ;;  %v1525_v2 = vadd.f32 %v1524_v36, %v8263_v51  ;;  %v8267_v48 = vunpack.c.h.bf16 %v8265_v52  ;;  %v8269_v24 = vunpack.c.l.bf16 %v8268_v10 }
 0x13d   : > { %v1546_v7 = vadd.f32 %v1545_v45, %v8264_v43  ;;  %v1567_v5 = vadd.f32 %v1566_v37, %v8266_v29  ;;  %v8270_v20 = vunpack.c.h.bf16 %v8268_v10  ;;  %v8272_v27 = vunpack.c.l.bf16 %v8271_v56 }
 0x13e   : > { %v1588_v58 = vadd.f32 %v1587_v14, %v8267_v48  ;;  %v1442_v16 = vadd.f32 %v1441_v46, %v8269_v24  ;;  %v8273_v49 = vunpack.c.h.bf16 %v8271_v56  ;;  %v8275_v35 = vunpack.c.l.bf16 %v8274_v11 }
 0x13f   : > { %v1463_v47 = vadd.f32 %v1462_v59, %v8270_v20  ;;  %v1484_v25 = vadd.f32 %v1483_v63, %v8272_v27  ;;  %v8276_v54 = vunpack.c.h.bf16 %v8274_v11  ;;  %v8278_v34 = vunpack.c.l.bf16 %v8277_v30 }
 0x140   : > { %v1505_v0 = vadd.f32 %v1504_v62, %v8273_v49  ;;  %v1526_v41 = vadd.f32 %v1525_v2, %v8275_v35  ;;  %v8279_v55 = vunpack.c.h.bf16 %v8277_v30  ;;  %v8281_v15 = vunpack.c.l.bf16 %v8280_v23 }
 0x141   : > { %v1547_v8 = vadd.f32 %v1546_v7, %v8276_v54  ;;  %v1568_v12 = vadd.f32 %v1567_v5, %v8278_v34  ;;  %v8282_v28 = vunpack.c.h.bf16 %v8280_v23  ;;  %v8284_v60 = vunpack.c.l.bf16 %v8283_v31 }
 0x142   : > { %v1589_v39 = vadd.f32 %v1588_v58, %v8279_v55  ;;  %v1443_v50 = vadd.f32 %v1442_v16, %v8281_v15  ;;  %v8285_v33 = vunpack.c.h.bf16 %v8283_v31  ;;  %v8287_v36 = vunpack.c.l.bf16 %v8286_v61 }
 0x143   : > { %v1464_v32 = vadd.f32 %v1463_v47, %v8282_v28  ;;  %v1485_v22 = vadd.f32 %v1484_v25, %v8284_v60  ;;  %v8288_v45 = vunpack.c.h.bf16 %v8286_v61  ;;  %v8290_v37 = vunpack.c.l.bf16 %v8289_v6 }
 0x144   : > { %v1506_v3 = vadd.f32 %v1505_v0, %v8285_v33  ;;  %v1527_v17 = vadd.f32 %v1526_v41, %v8287_v36  ;;  %v8291_v14 = vunpack.c.h.bf16 %v8289_v6  ;;  %v1444_v4 = vrot.slane %v1443_v50, 4  ;;  %v8296_v36 = vld [vmem:[#allocation30_spill] sm:$0xff] }
 0x145   : > { %v1548_v57 = vadd.f32 %v1547_v8, %v8288_v45  ;;  %v1569_v1 = vadd.f32 %v1568_v12, %v8290_v37  ;;  %v1465_v46 = vrot.slane %v1464_v32, 4  ;;  %v1486_v53 = vrot.slane %v1485_v22, 4 }
 0x146   : > { %v1590_v18 = vadd.f32 %v1589_v39, %v8291_v14  ;;  %v1507_v59 = vrot.slane %v1506_v3, 4  ;;  %v1528_v40 = vrot.slane %v1527_v17, 4  ;;  %v1445_v62 = vadd.f32 %v1444_v4, %v1443_v50 }
 0x147   : > { %v1549_v19 = vrot.slane %v1548_v57, 4  ;;  %v1570_v63 = vrot.slane %v1569_v1, 4  ;;  %v1466_v13 = vadd.f32 %v1465_v46, %v1464_v32  ;;  %v1487_v51 = vadd.f32 %v1486_v53, %v1485_v22 }
 0x148   : > { %v1591_v42 = vrot.slane %v1590_v18, 4  ;;  %v1508_v2 = vadd.f32 %v1507_v59, %v1506_v3  ;;  %v1529_v43 = vadd.f32 %v1528_v40, %v1527_v17  ;;  %v1446_v5 = vrot.slane %v1445_v62, 2  ;;  %v8294_v3 = vld [vmem:[#allocation28_spill] sm:$0xff] }
 0x149   : > { %v1550_v7 = vadd.f32 %v1549_v19, %v1548_v57  ;;  %v1571_v52 = vadd.f32 %v1570_v63, %v1569_v1  ;;  %v1467_v48 = vrot.slane %v1466_v13, 2  ;;  %v1488_v58 = vrot.slane %v1487_v51, 2  ;;  %v8300_v1 = vld [vmem:[#allocation29_spill] sm:$0xff] }
 0x14a   : > { %v1592_v29 = vadd.f32 %v1591_v42, %v1590_v18  ;;  %v1509_v10 = vrot.slane %v1508_v2, 2  ;;  %v1530_v24 = vrot.slane %v1529_v43, 2  ;;  %v1447_v56 = vadd.f32 %v1446_v5, %v1445_v62  ;;  %v8302_v18 = vld [vmem:[#allocation31_spill] sm:$0xff]  ;;  %v8306_v19 = vld [vmem:[#allocation65_spill] sm:$0xff]  ;;  %v8308_v42 = vld [vmem:[#allocation68_spill] sm:$0xff] }
 0x14b   : > { %v1551_v16 = vrot.slane %v1550_v7, 2  ;;  %v1572_v20 = vrot.slane %v1571_v52, 2  ;;  %v1468_v27 = vadd.f32 %v1467_v48, %v1466_v13  ;;  %v1489_v25 = vadd.f32 %v1488_v58, %v1487_v51 }
 0x14c   : > { %v1593_v47 = vrot.slane %v1592_v29, 2  ;;  %v1510_v49 = vadd.f32 %v1509_v10, %v1508_v2  ;;  %v1531_v0 = vadd.f32 %v1530_v24, %v1529_v43  ;;  %v1448_v54 = vrot.slane %v1447_v56, 1 }
 0x14d   : > { %v1552_v11 = vadd.f32 %v1551_v16, %v1550_v7  ;;  %v1573_v35 = vadd.f32 %v1572_v20, %v1571_v52  ;;  %v1469_v8 = vrot.slane %v1468_v27, 1  ;;  %v1490_v30 = vrot.slane %v1489_v25, 1  ;;  %v8312_v7 = vld [vmem:[#allocation66_spill] sm:$0xff]  ;;  %v8318_v16 = vld [vmem:[#allocation32_spill] sm:$0xff] }
 0x14e   : > { %v5622_v41 = vadd.f32 %v1593_v47, %v1592_v29  ;;  %v1511_v34 = vrot.slane %v1510_v49, 1  ;;  %v1532_v55 = vrot.slane %v1531_v0, 1  ;;  %v5625_v15 = vadd.f32 %v1448_v54, %v1447_v56  ;;  %v8314_v29 = vld [vmem:[#allocation69_spill] sm:$0xff]  ;;  %v8324_v54 = vld [vmem:[#allocation71_spill] sm:$0xff] }
 0x14f   : > { %v1553_v39 = vrot.slane %v1552_v11, 1  ;;  %v1574_v23 = vrot.slane %v1573_v35, 1  ;;  %v5627_v50 = vadd.f32 %v1469_v8, %v1468_v27  ;;  %v5629_v28 = vadd.f32 %v1490_v30, %v1489_v25  ;;  %v8321_v25 = vld [vmem:[#allocation33_spill] sm:$0xff] }
 0x150   : > { %v1595_v32 = vrot.slane %v5622_v41, 1  ;;  %v5632_v31 = vadd.f32 %v1511_v34, %v1510_v49  ;;  %v5634_v60 = vadd.f32 %v1532_v55, %v1531_v0  ;;  %v8295_v61 = vunpack.c.l.bf16 %v8294_v3 }
 0x151   : > { %v5636_v22 = vadd.f32 %v1553_v39, %v1552_v11  ;;  %v5638_v33 = vadd.f32 %v1574_v23, %v1573_v35  ;;  %v8297_v17 = vunpack.c.l.bf16 %v8296_v36  ;;  %v8298_v57 = vunpack.c.h.bf16 %v8294_v3  ;;  %v8327_v39 = vld [vmem:[#allocation72_spill] sm:$0xff] }
 0x152   : > { %8292 = vst [vmem:[#allocation13_spill] sm:$0xff] %v5634_v60  ;;  %v8299_v6 = vunpack.c.h.bf16 %v8296_v36  ;;  %v8301_v14 = vunpack.c.l.bf16 %v8300_v1  ;;  %v8303_v4 = vunpack.c.l.bf16 %v8302_v18  ;;  %v8304_v53 = vunpack.c.h.bf16 %v8300_v1  ;;  %v8333_v1 = vld [vmem:[#allocation35_spill] sm:$0xff] }
 0x153   : > { %8293 = vst [vmem:[#allocation14_spill] sm:$0xff] %v5636_v22  ;;  %v1597_v45 = vadd.f32 %v8297_v17, %v8295_v61  ;;  %v8305_v59 = vunpack.c.h.bf16 %v8302_v18  ;;  %v8307_v63 = vunpack.c.l.bf16 %v8306_v19  ;;  %v8309_v62 = vunpack.c.l.bf16 %v8308_v42  ;;  %v8330_v17 = vld [vmem:[#allocation34_spill] sm:$0xff] }
 0x154   : > { %v1618_v37 = vadd.f32 %v8299_v6, %v8298_v57  ;;  %v1639_v46 = vadd.f32 %v8303_v4, %v8301_v14  ;;  %v8310_v51 = vunpack.c.h.bf16 %v8306_v19  ;;  %v8311_v2 = vunpack.c.h.bf16 %v8308_v42  ;;  %v8339_v42 = vld [vmem:[#allocation75_spill] sm:$0xff] }
 0x155   : > { %v1660_v40 = vadd.f32 %v8305_v59, %v8304_v53  ;;  %v1681_v13 = vadd.f32 %v8309_v62, %v8307_v63  ;;  %v8313_v52 = vunpack.c.l.bf16 %v8312_v7  ;;  %v8315_v5 = vunpack.c.l.bf16 %v8314_v29  ;;  %v8336_v53 = vld [vmem:[#allocation74_spill] sm:$0xff] }
 0x156   : > { %v1702_v43 = vadd.f32 %v8311_v2, %v8310_v51  ;;  %v8316_v58 = vunpack.c.h.bf16 %v8312_v7  ;;  %v8317_v10 = vunpack.c.h.bf16 %v8314_v29  ;;  %v8319_v20 = vunpack.c.l.bf16 %v8318_v16 }
 0x157   : > { %v1723_v48 = vadd.f32 %v8315_v5, %v8313_v52  ;;  %v8320_v56 = vunpack.c.h.bf16 %v8318_v16  ;;  %v8322_v49 = vunpack.c.l.bf16 %v8321_v25  ;;  %v8323_v11 = vunpack.c.h.bf16 %v8321_v25 }
 0x158   : > { %v1744_v24 = vadd.f32 %v8317_v10, %v8316_v58  ;;  %v1598_v47 = vadd.f32 %v1597_v45, %v8319_v20  ;;  %v8325_v8 = vunpack.c.l.bf16 %v8324_v54  ;;  %v8326_v34 = vunpack.c.h.bf16 %v8324_v54  ;;  %v8348_v20 = vld [vmem:[#allocation77_spill] sm:$0xff] }
 0x159   : > { %v1619_v27 = vadd.f32 %v1618_v37, %v8320_v56  ;;  %v1640_v0 = vadd.f32 %v1639_v46, %v8322_v49  ;;  %v1661_v35 = vadd.f32 %v1660_v40, %v8323_v11  ;;  %v8328_v23 = vunpack.c.l.bf16 %v8327_v39  ;;  %v8351_v49 = vld [vmem:[#allocation78_spill] sm:$0xff] }
 0x15a   : > { %v1682_v30 = vadd.f32 %v1681_v13, %v8325_v8  ;;  %v1703_v55 = vadd.f32 %v1702_v43, %v8326_v34  ;;  %v8329_v61 = vunpack.c.h.bf16 %v8327_v39  ;;  %v8331_v45 = vunpack.c.l.bf16 %v8330_v17  ;;  %v8342_v43 = vld [vmem:[#allocation36_spill] sm:$0xff]  ;;  %v8354_v8 = vld [vmem:[#allocation38_spill] sm:$0xff] }
 0x15b   : > { %v1724_v3 = vadd.f32 %v1723_v48, %v8328_v23  ;;  %v8332_v6 = vunpack.c.h.bf16 %v8330_v17  ;;  %v8334_v14 = vunpack.c.l.bf16 %v8333_v1  ;;  %v8335_v4 = vunpack.c.h.bf16 %v8333_v1  ;;  %v8345_v48 = vld [vmem:[#allocation37_spill] sm:$0xff]  ;;  %v8357_v23 = vld [vmem:[#allocation39_spill] sm:$0xff] }
 0x15c   : > { %v1745_v36 = vadd.f32 %v1744_v24, %v8329_v61  ;;  %v1599_v57 = vadd.f32 %v1598_v47, %v8331_v45  ;;  %v8337_v59 = vunpack.c.l.bf16 %v8336_v53  ;;  %v8338_v19 = vunpack.c.h.bf16 %v8336_v53  ;;  %v8360_v45 = vld [vmem:[#allocation80_spill] sm:$0xff] }
 0x15d   : > { %v1620_v37 = vadd.f32 %v1619_v27, %v8332_v6  ;;  %v1641_v18 = vadd.f32 %v1640_v0, %v8334_v14  ;;  %v1662_v46 = vadd.f32 %v1661_v35, %v8335_v4  ;;  %v8340_v62 = vunpack.c.l.bf16 %v8339_v42  ;;  %v8363_v14 = vld [vmem:[#allocation81_spill] sm:$0xff] }
 0x15e   : > { %v1683_v40 = vadd.f32 %v1682_v30, %v8337_v59  ;;  %v1704_v63 = vadd.f32 %v1703_v55, %v8338_v19  ;;  %v8341_v51 = vunpack.c.h.bf16 %v8339_v42  ;;  %v8343_v7 = vunpack.c.l.bf16 %v8342_v43  ;;  %v8366_v59 = vld [vmem:[#allocation40_spill] sm:$0xff] }
 0x15f   : > { %v1725_v13 = vadd.f32 %v1724_v3, %v8340_v62  ;;  %v8344_v29 = vunpack.c.h.bf16 %v8342_v43  ;;  %v8346_v58 = vunpack.c.l.bf16 %v8345_v48  ;;  %v8347_v24 = vunpack.c.h.bf16 %v8345_v48  ;;  %v8369_v62 = vld [vmem:[#allocation41_spill] sm:$0xff] }
 0x160   : > { %v1746_v2 = vadd.f32 %v1745_v36, %v8341_v51  ;;  %v1600_v52 = vadd.f32 %v1599_v57, %v8343_v7  ;;  %v8349_v47 = vunpack.c.l.bf16 %v8348_v20  ;;  %v8350_v27 = vunpack.c.h.bf16 %v8348_v20  ;;  %v8372_v7 = vld [vmem:[#allocation83_spill] sm:$0xff] }
 0x161   : > { %v1621_v5 = vadd.f32 %v1620_v37, %v8344_v29  ;;  %v1642_v10 = vadd.f32 %v1641_v18, %v8346_v58  ;;  %v1663_v16 = vadd.f32 %v1662_v46, %v8347_v24  ;;  %v8352_v0 = vunpack.c.l.bf16 %v8351_v49  ;;  %v8375_v58 = vld [vmem:[#allocation84_spill] sm:$0xff] }
 0x162   : > { %v1684_v56 = vadd.f32 %v1683_v40, %v8349_v47  ;;  %v1705_v25 = vadd.f32 %v1704_v63, %v8350_v27  ;;  %v8353_v35 = vunpack.c.h.bf16 %v8351_v49  ;;  %v8355_v30 = vunpack.c.l.bf16 %v8354_v8  ;;  %v8378_v47 = vld [vmem:[#allocation42_spill] sm:$0xff] }
 0x163   : > { %v1726_v11 = vadd.f32 %v1725_v13, %v8352_v0  ;;  %v8356_v55 = vunpack.c.h.bf16 %v8354_v8  ;;  %v8358_v3 = vunpack.c.l.bf16 %v8357_v23  ;;  %v8359_v36 = vunpack.c.h.bf16 %v8357_v23  ;;  %v8381_v0 = vld [vmem:[#allocation43_spill] sm:$0xff] }
 0x164   : > { %v1747_v54 = vadd.f32 %v1746_v2, %v8353_v35  ;;  %v1601_v34 = vadd.f32 %v1600_v52, %v8355_v30  ;;  %v8361_v57 = vunpack.c.l.bf16 %v8360_v45  ;;  %v8362_v37 = vunpack.c.h.bf16 %v8360_v45  ;;  %v8384_v30 = vld [vmem:[#allocation86_spill] sm:$0xff] }
 0x165   : > { %v1622_v39 = vadd.f32 %v1621_v5, %v8356_v55  ;;  %v1643_v61 = vadd.f32 %v1642_v10, %v8358_v3  ;;  %v1664_v17 = vadd.f32 %v1663_v16, %v8359_v36  ;;  %v8364_v18 = vunpack.c.l.bf16 %v8363_v14  ;;  %v8387_v3 = vld [vmem:[#allocation87_spill] sm:$0xff] }
 0x166   : > { %v1685_v6 = vadd.f32 %v1684_v56, %v8361_v57  ;;  %v1706_v1 = vadd.f32 %v1705_v25, %v8362_v37  ;;  %v8365_v46 = vunpack.c.h.bf16 %v8363_v14  ;;  %v8367_v40 = vunpack.c.l.bf16 %v8366_v59  ;;  %v8390_v57 = vld [vmem:[#allocation44_spill] sm:$0xff] }
 0x167   : > { %v1727_v4 = vadd.f32 %v1726_v11, %v8364_v18  ;;  %v8368_v63 = vunpack.c.h.bf16 %v8366_v59  ;;  %v8370_v13 = vunpack.c.l.bf16 %v8369_v62  ;;  %v8371_v2 = vunpack.c.h.bf16 %v8369_v62  ;;  %v8393_v18 = vld [vmem:[#allocation45_spill] sm:$0xff] }
 0x168   : > { %v1748_v53 = vadd.f32 %v1747_v54, %v8365_v46  ;;  %v1602_v19 = vadd.f32 %v1601_v34, %v8367_v40  ;;  %v8373_v52 = vunpack.c.l.bf16 %v8372_v7  ;;  %v8374_v5 = vunpack.c.h.bf16 %v8372_v7  ;;  %v8396_v40 = vld [vmem:[#allocation89_spill] sm:$0xff] }
 0x169   : > { %v1623_v42 = vadd.f32 %v1622_v39, %v8368_v63  ;;  %v1644_v51 = vadd.f32 %v1643_v61, %v8370_v13  ;;  %v1665_v43 = vadd.f32 %v1664_v17, %v8371_v2  ;;  %v8376_v10 = vunpack.c.l.bf16 %v8375_v58  ;;  %v8399_v13 = vld [vmem:[#allocation90_spill] sm:$0xff] }
 0x16a   : > { %v1686_v29 = vadd.f32 %v1685_v6, %v8373_v52  ;;  %v1707_v48 = vadd.f32 %v1706_v1, %v8374_v5  ;;  %v8377_v16 = vunpack.c.h.bf16 %v8375_v58  ;;  %v8379_v56 = vunpack.c.l.bf16 %v8378_v47  ;;  %v8402_v52 = vld [vmem:[#allocation46_spill] sm:$0xff] }
 0x16b   : > { %v1728_v24 = vadd.f32 %v1727_v4, %v8376_v10  ;;  %v8380_v25 = vunpack.c.h.bf16 %v8378_v47  ;;  %v8382_v11 = vunpack.c.l.bf16 %v8381_v0  ;;  %v8383_v54 = vunpack.c.h.bf16 %v8381_v0  ;;  %v8405_v10 = vld [vmem:[#allocation47_spill] sm:$0xff] }
 0x16c   : > { %v1749_v20 = vadd.f32 %v1748_v53, %v8377_v16  ;;  %v1603_v27 = vadd.f32 %v1602_v19, %v8379_v56  ;;  %v8385_v34 = vunpack.c.l.bf16 %v8384_v30  ;;  %v8386_v39 = vunpack.c.h.bf16 %v8384_v30  ;;  %v8408_v56 = vld [vmem:[#allocation92_spill] sm:$0xff] }
 0x16d   : > { %v1624_v49 = vadd.f32 %v1623_v42, %v8380_v25  ;;  %v1645_v35 = vadd.f32 %v1644_v51, %v8382_v11  ;;  %v1666_v8 = vadd.f32 %v1665_v43, %v8383_v54  ;;  %v8388_v61 = vunpack.c.l.bf16 %v8387_v3  ;;  %v8411_v11 = vld [vmem:[#allocation93_spill] sm:$0xff] }
 0x16e   : > { %v1687_v55 = vadd.f32 %v1686_v29, %v8385_v34  ;;  %v1708_v23 = vadd.f32 %v1707_v48, %v8386_v39  ;;  %v8389_v17 = vunpack.c.h.bf16 %v8387_v3  ;;  %v8391_v6 = vunpack.c.l.bf16 %v8390_v57  ;;  %v8414_v34 = vld [vmem:[#allocation48_spill] sm:$0xff] }
 0x16f   : > { %v1729_v36 = vadd.f32 %v1728_v24, %v8388_v61  ;;  %v8392_v1 = vunpack.c.h.bf16 %v8390_v57  ;;  %v8394_v4 = vunpack.c.l.bf16 %v8393_v18  ;;  %v8395_v53 = vunpack.c.h.bf16 %v8393_v18  ;;  %v8417_v61 = vld [vmem:[#allocation49_spill] sm:$0xff] }
 0x170   : > { %v1750_v45 = vadd.f32 %v1749_v20, %v8389_v17  ;;  %v1604_v37 = vadd.f32 %v1603_v27, %v8391_v6  ;;  %v8397_v19 = vunpack.c.l.bf16 %v8396_v40  ;;  %v8398_v42 = vunpack.c.h.bf16 %v8396_v40  ;;  %v8420_v6 = vld [vmem:[#allocation95_spill] sm:$0xff] }
 0x171   : > { %v1625_v14 = vadd.f32 %v1624_v49, %v8392_v1  ;;  %v1646_v46 = vadd.f32 %v1645_v35, %v8394_v4  ;;  %v1667_v59 = vadd.f32 %v1666_v8, %v8395_v53  ;;  %v8400_v51 = vunpack.c.l.bf16 %v8399_v13  ;;  %v8423_v4 = vld [vmem:[#allocation96_spill] sm:$0xff] }
 0x172   : > { %v1688_v63 = vadd.f32 %v1687_v55, %v8397_v19  ;;  %v1709_v62 = vadd.f32 %v1708_v23, %v8398_v42  ;;  %v8401_v43 = vunpack.c.h.bf16 %v8399_v13  ;;  %v8403_v29 = vunpack.c.l.bf16 %v8402_v52  ;;  %v8426_v19 = vld [vmem:[#allocation51_spill] sm:$0xff] }
 0x173   : > { %v1730_v2 = vadd.f32 %v1729_v36, %v8400_v51  ;;  %v8404_v48 = vunpack.c.h.bf16 %v8402_v52  ;;  %v8406_v24 = vunpack.c.l.bf16 %v8405_v10  ;;  %v8407_v20 = vunpack.c.h.bf16 %v8405_v10  ;;  %v8429_v51 = vld [vmem:[#allocation52_spill] sm:$0xff] }
 0x174   : > { %v1751_v7 = vadd.f32 %v1750_v45, %v8401_v43  ;;  %v1605_v5 = vadd.f32 %v1604_v37, %v8403_v29  ;;  %v8409_v27 = vunpack.c.l.bf16 %v8408_v56  ;;  %v8410_v49 = vunpack.c.h.bf16 %v8408_v56  ;;  %v8432_v29 = vld [vmem:[#allocation98_spill] sm:$0xff] }
 0x175   : > { %v1626_v58 = vadd.f32 %v1625_v14, %v8404_v48  ;;  %v1647_v16 = vadd.f32 %v1646_v46, %v8406_v24  ;;  %v1668_v47 = vadd.f32 %v1667_v59, %v8407_v20  ;;  %v8412_v35 = vunpack.c.l.bf16 %v8411_v11  ;;  %v8435_v24 = vld [vmem:[#allocation99_spill] sm:$0xff] }
 0x176   : > { %v1689_v25 = vadd.f32 %v1688_v63, %v8409_v27  ;;  %v1710_v0 = vadd.f32 %v1709_v62, %v8410_v49  ;;  %v8413_v8 = vunpack.c.h.bf16 %v8411_v11  ;;  %v8415_v55 = vunpack.c.l.bf16 %v8414_v34  ;;  %v8438_v27 = vld [vmem:[#allocation54_spill] sm:$0xff] }
 0x177   : > { %v1731_v54 = vadd.f32 %v1730_v2, %v8412_v35  ;;  %v8416_v23 = vunpack.c.h.bf16 %v8414_v34  ;;  %v8418_v36 = vunpack.c.l.bf16 %v8417_v61  ;;  %v8419_v45 = vunpack.c.h.bf16 %v8417_v61  ;;  %v8441_v35 = vld [vmem:[#allocation55_spill] sm:$0xff] }
 0x178   : > { %v1752_v30 = vadd.f32 %v1751_v7, %v8413_v8  ;;  %v1606_v39 = vadd.f32 %v1605_v5, %v8415_v55  ;;  %v8421_v37 = vunpack.c.l.bf16 %v8420_v6  ;;  %v8422_v14 = vunpack.c.h.bf16 %v8420_v6  ;;  %v8444_v55 = vld [vmem:[#allocation101_spill] sm:$0xff] }
 0x179   : > { %v1627_v3 = vadd.f32 %v1626_v58, %v8416_v23  ;;  %v1648_v17 = vadd.f32 %v1647_v16, %v8418_v36  ;;  %v1669_v57 = vadd.f32 %v1668_v47, %v8419_v45  ;;  %v8424_v46 = vunpack.c.l.bf16 %v8423_v4  ;;  %v8447_v36 = vld [vmem:[#allocation102_spill] sm:$0xff] }
 0x17a   : > { %v1690_v1 = vadd.f32 %v1689_v25, %v8421_v37  ;;  %v1711_v18 = vadd.f32 %v1710_v0, %v8422_v14  ;;  %v8425_v59 = vunpack.c.h.bf16 %v8423_v4  ;;  %v8427_v63 = vunpack.c.l.bf16 %v8426_v19  ;;  %v8450_v37 = vld [vmem:[#allocation57_spill] sm:$0xff] }
 0x17b   : > { %v1732_v53 = vadd.f32 %v1731_v54, %v8424_v46  ;;  %v8428_v62 = vunpack.c.h.bf16 %v8426_v19  ;;  %v8430_v2 = vunpack.c.l.bf16 %v8429_v51  ;;  %v8431_v7 = vunpack.c.h.bf16 %v8429_v51  ;;  %v8453_v46 = vld [vmem:[#allocation58_spill] sm:$0xff] }
 0x17c   : > { %v1753_v40 = vadd.f32 %v1752_v30, %v8425_v59  ;;  %v1607_v42 = vadd.f32 %v1606_v39, %v8427_v63  ;;  %v8433_v5 = vunpack.c.l.bf16 %v8432_v29  ;;  %v8434_v58 = vunpack.c.h.bf16 %v8432_v29  ;;  %v8456_v63 = vld [vmem:[#allocation104_spill] sm:$0xff] }
 0x17d   : > { %v1628_v13 = vadd.f32 %v1627_v3, %v8428_v62  ;;  %v1649_v43 = vadd.f32 %v1648_v17, %v8430_v2  ;;  %v1670_v52 = vadd.f32 %v1669_v57, %v8431_v7  ;;  %v8436_v16 = vunpack.c.l.bf16 %v8435_v24  ;;  %v8459_v2 = vld [vmem:[#allocation105_spill] sm:$0xff] }
 0x17e   : > { %v1691_v48 = vadd.f32 %v1690_v1, %v8433_v5  ;;  %v1712_v10 = vadd.f32 %v1711_v18, %v8434_v58  ;;  %v8437_v47 = vunpack.c.h.bf16 %v8435_v24  ;;  %v8439_v25 = vunpack.c.l.bf16 %v8438_v27  ;;  %v8462_v5 = vld [vmem:[#allocation60_spill] sm:$0xff] }
 0x17f   : > { %v1733_v20 = vadd.f32 %v1732_v53, %v8436_v16  ;;  %v8440_v0 = vunpack.c.h.bf16 %v8438_v27  ;;  %v8442_v54 = vunpack.c.l.bf16 %v8441_v35  ;;  %v8443_v30 = vunpack.c.h.bf16 %v8441_v35  ;;  %v8465_v16 = vld [vmem:[#allocation61_spill] sm:$0xff] }
 0x180   : > { %v1754_v56 = vadd.f32 %v1753_v40, %v8437_v47  ;;  %v1608_v49 = vadd.f32 %v1607_v42, %v8439_v25  ;;  %v8445_v39 = vunpack.c.l.bf16 %v8444_v55  ;;  %v8446_v3 = vunpack.c.h.bf16 %v8444_v55  ;;  %v8468_v25 = vld [vmem:[#allocation107_spill] sm:$0xff] }
 0x181   : > { %v1629_v11 = vadd.f32 %v1628_v13, %v8440_v0  ;;  %v1650_v8 = vadd.f32 %v1649_v43, %v8442_v54  ;;  %v1671_v34 = vadd.f32 %v1670_v52, %v8443_v30  ;;  %v8448_v17 = vunpack.c.l.bf16 %v8447_v36  ;;  %v8471_v54 = vld [vmem:[#allocation108_spill] sm:$0xff] }
 0x182   : > { %v1692_v23 = vadd.f32 %v1691_v48, %v8445_v39  ;;  %v1713_v61 = vadd.f32 %v1712_v10, %v8446_v3  ;;  %v8449_v57 = vunpack.c.h.bf16 %v8447_v36  ;;  %v8451_v1 = vunpack.c.l.bf16 %v8450_v37  ;;  %v8474_v39 = vld [vmem:[#allocation63_spill] sm:$0xff] }
 0x183   : > { %v1734_v45 = vadd.f32 %v1733_v20, %v8448_v17  ;;  %v8452_v18 = vunpack.c.h.bf16 %v8450_v37  ;;  %v8454_v53 = vunpack.c.l.bf16 %v8453_v46  ;;  %v8455_v40 = vunpack.c.h.bf16 %v8453_v46  ;;  %v8477_v17 = vld [vmem:[#allocation64_spill] sm:$0xff] }
 0x184   : > { %v1755_v6 = vadd.f32 %v1754_v56, %v8449_v57  ;;  %v1609_v14 = vadd.f32 %v1608_v49, %v8451_v1  ;;  %v8457_v42 = vunpack.c.l.bf16 %v8456_v63  ;;  %v8458_v13 = vunpack.c.h.bf16 %v8456_v63  ;;  %v8480_v1 = vld [vmem:[#allocation110_spill] sm:$0xff] }
 0x185   : > { %v1630_v4 = vadd.f32 %v1629_v11, %v8452_v18  ;;  %v1651_v59 = vadd.f32 %v1650_v8, %v8454_v53  ;;  %v1672_v19 = vadd.f32 %v1671_v34, %v8455_v40  ;;  %v8460_v43 = vunpack.c.l.bf16 %v8459_v2  ;;  %v8483_v53 = vld [vmem:[#allocation111_spill] sm:$0xff] }
 0x186   : > { %v1693_v62 = vadd.f32 %v1692_v23, %v8457_v42  ;;  %v1714_v51 = vadd.f32 %v1713_v61, %v8458_v13  ;;  %v8461_v52 = vunpack.c.h.bf16 %v8459_v2  ;;  %v8463_v48 = vunpack.c.l.bf16 %v8462_v5 }
 0x187   : > { %v1735_v7 = vadd.f32 %v1734_v45, %v8460_v43  ;;  %v8464_v10 = vunpack.c.h.bf16 %v8462_v5  ;;  %v8466_v20 = vunpack.c.l.bf16 %v8465_v16  ;;  %v8467_v56 = vunpack.c.h.bf16 %v8465_v16 }
 0x188   : > { %v1756_v29 = vadd.f32 %v1755_v6, %v8461_v52  ;;  %v1610_v58 = vadd.f32 %v1609_v14, %v8463_v48  ;;  %v8469_v49 = vunpack.c.l.bf16 %v8468_v25  ;;  %v8470_v11 = vunpack.c.h.bf16 %v8468_v25 }
 0x189   : > { %v1631_v24 = vadd.f32 %v1630_v4, %v8464_v10  ;;  %v1652_v47 = vadd.f32 %v1651_v59, %v8466_v20  ;;  %v1673_v27 = vadd.f32 %v1672_v19, %v8467_v56  ;;  %v8472_v8 = vunpack.c.l.bf16 %v8471_v54 }
 0x18a   : > { %v1694_v0 = vadd.f32 %v1693_v62, %v8469_v49  ;;  %v1715_v35 = vadd.f32 %v1714_v51, %v8470_v11  ;;  %v8473_v34 = vunpack.c.h.bf16 %v8471_v54  ;;  %v8475_v23 = vunpack.c.l.bf16 %v8474_v39 }
 0x18b   : > { %v1736_v30 = vadd.f32 %v1735_v7, %v8472_v8  ;;  %v8476_v61 = vunpack.c.h.bf16 %v8474_v39  ;;  %v8478_v45 = vunpack.c.l.bf16 %v8477_v17  ;;  %v8479_v6 = vunpack.c.h.bf16 %v8477_v17 }
 0x18c   : > { %v1757_v55 = vadd.f32 %v1756_v29, %v8473_v34  ;;  %v1611_v3 = vadd.f32 %v1610_v58, %v8475_v23  ;;  %v8481_v14 = vunpack.c.l.bf16 %v8480_v1  ;;  %v8482_v4 = vunpack.c.h.bf16 %v8480_v1 }
 0x18d   : > { %v1632_v36 = vadd.f32 %v1631_v24, %v8476_v61  ;;  %v1653_v57 = vadd.f32 %v1652_v47, %v8478_v45  ;;  %v1674_v37 = vadd.f32 %v1673_v27, %v8479_v6  ;;  %v8484_v59 = vunpack.c.l.bf16 %v8483_v53 }
 0x18e   : > { %v1695_v18 = vadd.f32 %v1694_v0, %v8481_v14  ;;  %v1716_v46 = vadd.f32 %v1715_v35, %v8482_v4  ;;  %v8485_v19 = vunpack.c.h.bf16 %v8483_v53  ;;  %v1612_v42 = vrot.slane %v1611_v3, 4 }
 0x18f   : > { %v1737_v40 = vadd.f32 %v1736_v30, %v8484_v59  ;;  %v1633_v62 = vrot.slane %v1632_v36, 4  ;;  %v1654_v13 = vrot.slane %v1653_v57, 4  ;;  %v1675_v51 = vrot.slane %v1674_v37, 4 }
 0x190   : > { %v1758_v63 = vadd.f32 %v1757_v55, %v8485_v19  ;;  %v1696_v2 = vrot.slane %v1695_v18, 4  ;;  %v1717_v43 = vrot.slane %v1716_v46, 4  ;;  %v1613_v29 = vadd.f32 %v1612_v42, %v1611_v3 }
 0x191   : > { %v1738_v7 = vrot.slane %v1737_v40, 4  ;;  %v1634_v5 = vadd.f32 %v1633_v62, %v1632_v36  ;;  %v1655_v48 = vadd.f32 %v1654_v13, %v1653_v57  ;;  %v1676_v58 = vadd.f32 %v1675_v51, %v1674_v37 }
 0x192   : > { %v1759_v52 = vrot.slane %v1758_v63, 4  ;;  %v1697_v10 = vadd.f32 %v1696_v2, %v1695_v18  ;;  %v1718_v24 = vadd.f32 %v1717_v43, %v1716_v46  ;;  %v1614_v47 = vrot.slane %v1613_v29, 2  ;;  %v8494_v43 = vld [vmem:[#allocation113_spill] sm:$0xff] }
 0x193   : > { %v1739_v16 = vadd.f32 %v1738_v7, %v1737_v40  ;;  %v1635_v56 = vrot.slane %v1634_v5, 2  ;;  %v1656_v27 = vrot.slane %v1655_v48, 2  ;;  %v1677_v25 = vrot.slane %v1676_v58, 2 }
 0x194   : > { %v1760_v20 = vadd.f32 %v1759_v52, %v1758_v63  ;;  %v1698_v49 = vrot.slane %v1697_v10, 2  ;;  %v1719_v0 = vrot.slane %v1718_v24, 2  ;;  %v1615_v54 = vadd.f32 %v1614_v47, %v1613_v29  ;;  %v8490_v63 = vld [vmem:[#allocation70_spill] sm:$0xff]  ;;  %v8496_v52 = vld [vmem:[#allocation116_spill] sm:$0xff] }
 0x195   : > { %v1740_v11 = vrot.slane %v1739_v16, 2  ;;  %v1636_v8 = vadd.f32 %v1635_v56, %v1634_v5  ;;  %v1657_v30 = vadd.f32 %v1656_v27, %v1655_v48  ;;  %v1678_v34 = vadd.f32 %v1677_v25, %v1676_v58 }
 0x196   : > { %v1761_v35 = vrot.slane %v1760_v20, 2  ;;  %v1699_v55 = vadd.f32 %v1698_v49, %v1697_v10  ;;  %v1720_v39 = vadd.f32 %v1719_v0, %v1718_v24  ;;  %v1616_v61 = vrot.slane %v1615_v54, 1  ;;  %v8500_v24 = vld [vmem:[#allocation114_spill] sm:$0xff]  ;;  %v8506_v0 = vld [vmem:[#allocation115_spill] sm:$0xff] }
 0x197   : > { %v1741_v23 = vadd.f32 %v1740_v11, %v1739_v16  ;;  %v1637_v36 = vrot.slane %v1636_v8, 1  ;;  %v1658_v17 = vrot.slane %v1657_v30, 1  ;;  %v1679_v45 = vrot.slane %v1678_v34, 1 }
 0x198   : > { %v5896_v3 = vadd.f32 %v1761_v35, %v1760_v20  ;;  %v5901_v57 = vadd.f32 %v1595_v32, %v5622_v41  ;;  %v1700_v6 = vrot.slane %v1699_v55, 1  ;;  %v1721_v37 = vrot.slane %v1720_v39, 1  ;;  %v8488_v41 = vld [vmem:[#allocation67_spill] sm:$0xff]  ;;  %v8502_v20 = vld [vmem:[#allocation117_spill] sm:$0xff]  ;;  %v8508_v35 = vld [vmem:[#allocation118_spill] sm:$0xff] }
 0x199   : > { %v1742_v1 = vrot.slane %v1741_v23, 1  ;;  %v5903_v14 = vadd.f32 %v1616_v61, %v1615_v54  ;;  %v5905_v18 = vadd.f32 %v1637_v36, %v1636_v8  ;;  %v5907_v4 = vadd.f32 %v1658_v17, %v1657_v30 }
 0x19a   : > { %v1763_v46 = vrot.slane %v5896_v3, 1  ;;  %v5910_v53 = vadd.f32 %v1679_v45, %v1678_v34  ;;  %v5912_v59 = vadd.f32 %v1700_v6, %v1699_v55  ;;  %v5914_v40 = vadd.f32 %v1721_v37, %v1720_v39  ;;  %v8512_v39 = vld [vmem:[#allocation73_spill] sm:$0xff]  ;;  %v8515_v45 = vld [vmem:[#allocation119_spill] sm:$0xff] }
 0x19b   : > { %8486 = vst [vmem:[#allocation15_spill] sm:$0xff] %v5907_v4  ;;  %v5916_v19 = vadd.f32 %v1742_v1, %v1741_v23  ;;  %v8489_v32 = vunpack.c.l.bf16 %v8488_v41  ;;  %v8491_v42 = vunpack.c.l.bf16 %v8490_v63  ;;  %v8492_v13 = vunpack.c.h.bf16 %v8488_v41 }
 0x19c   : > { %8487 = vst [vmem:[#allocation50_spill] sm:$0xff] %v5910_v53  ;;  %v8493_v51 = vunpack.c.h.bf16 %v8490_v63  ;;  %v8495_v7 = vunpack.c.l.bf16 %v8494_v43  ;;  %v8497_v29 = vunpack.c.l.bf16 %v8496_v52  ;;  %v8498_v48 = vunpack.c.h.bf16 %v8494_v43  ;;  %v8521_v43 = vld [vmem:[#allocation121_spill] sm:$0xff] }
 0x19d   : > { %v1765_v62 = vadd.f32 %v8491_v42, %v8489_v32  ;;  %v8499_v58 = vunpack.c.h.bf16 %v8496_v52  ;;  %v8501_v16 = vunpack.c.l.bf16 %v8500_v24  ;;  %v8503_v47 = vunpack.c.l.bf16 %v8502_v20  ;;  %v8518_v32 = vld [vmem:[#allocation120_spill] sm:$0xff] }
 0x19e   : > { %v1786_v2 = vadd.f32 %v8493_v51, %v8492_v13  ;;  %v1807_v5 = vadd.f32 %v8497_v29, %v8495_v7  ;;  %v8504_v27 = vunpack.c.h.bf16 %v8500_v24  ;;  %v8505_v25 = vunpack.c.h.bf16 %v8502_v20 }
 0x19f   : > { %v1828_v10 = vadd.f32 %v8499_v58, %v8498_v48  ;;  %v1849_v56 = vadd.f32 %v8503_v47, %v8501_v16  ;;  %v8507_v11 = vunpack.c.l.bf16 %v8506_v0  ;;  %v8509_v54 = vunpack.c.l.bf16 %v8508_v35  ;;  %v8524_v48 = vld [vmem:[#allocation76_spill] sm:$0xff]  ;;  %v8527_v16 = vld [vmem:[#allocation122_spill] sm:$0xff] }
 0x1a0   : > { %v1870_v49 = vadd.f32 %v8505_v25, %v8504_v27  ;;  %v8510_v30 = vunpack.c.h.bf16 %v8506_v0  ;;  %v8511_v34 = vunpack.c.h.bf16 %v8508_v35  ;;  %v8513_v23 = vunpack.c.l.bf16 %v8512_v39  ;;  %v8530_v27 = vld [vmem:[#allocation123_spill] sm:$0xff]  ;;  %v8533_v35 = vld [vmem:[#allocation124_spill] sm:$0xff] }
 0x1a1   : > { %v1891_v8 = vadd.f32 %v8509_v54, %v8507_v11  ;;  %v8514_v36 = vunpack.c.h.bf16 %v8512_v39  ;;  %v8516_v6 = vunpack.c.l.bf16 %v8515_v45  ;;  %v8517_v1 = vunpack.c.h.bf16 %v8515_v45 }
 0x1a2   : > { %v1912_v55 = vadd.f32 %v8511_v34, %v8510_v30  ;;  %v1766_v61 = vadd.f32 %v1765_v62, %v8513_v23  ;;  %v8519_v63 = vunpack.c.l.bf16 %v8518_v32  ;;  %v8520_v13 = vunpack.c.h.bf16 %v8518_v32 }
 0x1a3   : > { %v1787_v17 = vadd.f32 %v1786_v2, %v8514_v36  ;;  %v1808_v37 = vadd.f32 %v1807_v5, %v8516_v6  ;;  %v1829_v41 = vadd.f32 %v1828_v10, %v8517_v1  ;;  %v8522_v7 = vunpack.c.l.bf16 %v8521_v43 }
 0x1a4   : > { %v1850_v42 = vadd.f32 %v1849_v56, %v8519_v63  ;;  %v1871_v51 = vadd.f32 %v1870_v49, %v8520_v13  ;;  %v8523_v62 = vunpack.c.h.bf16 %v8521_v43  ;;  %v8525_v2 = vunpack.c.l.bf16 %v8524_v48 }
 0x1a5   : > { %v1892_v52 = vadd.f32 %v1891_v8, %v8522_v7  ;;  %v8526_v5 = vunpack.c.h.bf16 %v8524_v48  ;;  %v8528_v10 = vunpack.c.l.bf16 %v8527_v16  ;;  %v8529_v47 = vunpack.c.h.bf16 %v8527_v16 }
 0x1a6   : > { %v1913_v29 = vadd.f32 %v1912_v55, %v8523_v62  ;;  %v1767_v58 = vadd.f32 %v1766_v61, %v8525_v2  ;;  %v8531_v25 = vunpack.c.l.bf16 %v8530_v27  ;;  %v8532_v0 = vunpack.c.h.bf16 %v8530_v27  ;;  %v8536_v55 = vld [vmem:[#allocation79_spill] sm:$0xff] }
 0x1a7   : > { %v1788_v24 = vadd.f32 %v1787_v17, %v8526_v5  ;;  %v1809_v20 = vadd.f32 %v1808_v37, %v8528_v10  ;;  %v1830_v56 = vadd.f32 %v1829_v41, %v8529_v47  ;;  %v8534_v54 = vunpack.c.l.bf16 %v8533_v35  ;;  %v8539_v17 = vld [vmem:[#allocation125_spill] sm:$0xff]  ;;  %v8542_v41 = vld [vmem:[#allocation126_spill] sm:$0xff] }
 0x1a8   : > { %v1851_v49 = vadd.f32 %v1850_v42, %v8531_v25  ;;  %v1872_v11 = vadd.f32 %v1871_v51, %v8532_v0  ;;  %v8535_v30 = vunpack.c.h.bf16 %v8533_v35  ;;  %v8537_v39 = vunpack.c.l.bf16 %v8536_v55  ;;  %v8545_v51 = vld [vmem:[#allocation127_spill] sm:$0xff] }
 0x1a9   : > { %v1893_v8 = vadd.f32 %v1892_v52, %v8534_v54  ;;  %v8538_v61 = vunpack.c.h.bf16 %v8536_v55  ;;  %v8540_v45 = vunpack.c.l.bf16 %v8539_v17  ;;  %v8541_v37 = vunpack.c.h.bf16 %v8539_v17 }
 0x1aa   : > { %v1914_v34 = vadd.f32 %v1913_v29, %v8535_v30  ;;  %v1768_v23 = vadd.f32 %v1767_v58, %v8537_v39  ;;  %v8543_v32 = vunpack.c.l.bf16 %v8542_v41  ;;  %v8544_v42 = vunpack.c.h.bf16 %v8542_v41  ;;  %v8548_v29 = vld [vmem:[#allocation82_spill] sm:$0xff] }
 0x1ab   : > { %v1789_v36 = vadd.f32 %v1788_v24, %v8538_v61  ;;  %v1810_v6 = vadd.f32 %v1809_v20, %v8540_v45  ;;  %v1831_v1 = vadd.f32 %v1830_v56, %v8541_v37  ;;  %v8546_v43 = vunpack.c.l.bf16 %v8545_v51  ;;  %v8551_v24 = vld [vmem:[#allocation128_spill] sm:$0xff]  ;;  %v8554_v56 = vld [vmem:[#allocation129_spill] sm:$0xff] }
 0x1ac   : > { %v1852_v63 = vadd.f32 %v1851_v49, %v8543_v32  ;;  %v1873_v13 = vadd.f32 %v1872_v11, %v8544_v42  ;;  %v8547_v52 = vunpack.c.h.bf16 %v8545_v51  ;;  %v8549_v48 = vunpack.c.l.bf16 %v8548_v29  ;;  %v8557_v11 = vld [vmem:[#allocation130_spill] sm:$0xff] }
 0x1ad   : > { %v1894_v7 = vadd.f32 %v1893_v8, %v8546_v43  ;;  %v8550_v58 = vunpack.c.h.bf16 %v8548_v29  ;;  %v8552_v16 = vunpack.c.l.bf16 %v8551_v24  ;;  %v8553_v20 = vunpack.c.h.bf16 %v8551_v24 }
 0x1ae   : > { %v1915_v62 = vadd.f32 %v1914_v34, %v8547_v52  ;;  %v1769_v2 = vadd.f32 %v1768_v23, %v8549_v48  ;;  %v8555_v27 = vunpack.c.l.bf16 %v8554_v56  ;;  %v8556_v49 = vunpack.c.h.bf16 %v8554_v56  ;;  %v8560_v34 = vld [vmem:[#allocation85_spill] sm:$0xff] }
 0x1af   : > { %v1790_v5 = vadd.f32 %v1789_v36, %v8550_v58  ;;  %v1811_v10 = vadd.f32 %v1810_v6, %v8552_v16  ;;  %v1832_v47 = vadd.f32 %v1831_v1, %v8553_v20  ;;  %v8558_v35 = vunpack.c.l.bf16 %v8557_v11  ;;  %v8563_v36 = vld [vmem:[#allocation131_spill] sm:$0xff]  ;;  %v8566_v1 = vld [vmem:[#allocation132_spill] sm:$0xff] }
 0x1b0   : > { %v1853_v25 = vadd.f32 %v1852_v63, %v8555_v27  ;;  %v1874_v0 = vadd.f32 %v1873_v13, %v8556_v49  ;;  %v8559_v8 = vunpack.c.h.bf16 %v8557_v11  ;;  %v8561_v55 = vunpack.c.l.bf16 %v8560_v34  ;;  %v8569_v13 = vld [vmem:[#allocation133_spill] sm:$0xff] }
 0x1b1   : > { %v1895_v54 = vadd.f32 %v1894_v7, %v8558_v35  ;;  %v8562_v23 = vunpack.c.h.bf16 %v8560_v34  ;;  %v8564_v17 = vunpack.c.l.bf16 %v8563_v36  ;;  %v8565_v6 = vunpack.c.h.bf16 %v8563_v36 }
 0x1b2   : > { %v1916_v30 = vadd.f32 %v1915_v62, %v8559_v8  ;;  %v1770_v39 = vadd.f32 %v1769_v2, %v8561_v55  ;;  %v8567_v41 = vunpack.c.l.bf16 %v8566_v1  ;;  %v8568_v63 = vunpack.c.h.bf16 %v8566_v1  ;;  %v8572_v62 = vld [vmem:[#allocation88_spill] sm:$0xff] }
 0x1b3   : > { %v1791_v61 = vadd.f32 %v1790_v5, %v8562_v23  ;;  %v1812_v45 = vadd.f32 %v1811_v10, %v8564_v17  ;;  %v1833_v37 = vadd.f32 %v1832_v47, %v8565_v6  ;;  %v8570_v51 = vunpack.c.l.bf16 %v8569_v13  ;;  %v8575_v5 = vld [vmem:[#allocation134_spill] sm:$0xff]  ;;  %v8578_v47 = vld [vmem:[#allocation135_spill] sm:$0xff] }
 0x1b4   : > { %v1854_v32 = vadd.f32 %v1853_v25, %v8567_v41  ;;  %v1875_v42 = vadd.f32 %v1874_v0, %v8568_v63  ;;  %v8571_v7 = vunpack.c.h.bf16 %v8569_v13  ;;  %v8573_v29 = vunpack.c.l.bf16 %v8572_v62  ;;  %v8581_v0 = vld [vmem:[#allocation136_spill] sm:$0xff] }
 0x1b5   : > { %v1896_v43 = vadd.f32 %v1895_v54, %v8570_v51  ;;  %v8574_v2 = vunpack.c.h.bf16 %v8572_v62  ;;  %v8576_v24 = vunpack.c.l.bf16 %v8575_v5  ;;  %v8577_v10 = vunpack.c.h.bf16 %v8575_v5 }
 0x1b6   : > { %v1917_v52 = vadd.f32 %v1916_v30, %v8571_v7  ;;  %v1771_v48 = vadd.f32 %v1770_v39, %v8573_v29  ;;  %v8579_v56 = vunpack.c.l.bf16 %v8578_v47  ;;  %v8580_v25 = vunpack.c.h.bf16 %v8578_v47  ;;  %v8584_v30 = vld [vmem:[#allocation91_spill] sm:$0xff] }
 0x1b7   : > { %v1792_v58 = vadd.f32 %v1791_v61, %v8574_v2  ;;  %v1813_v16 = vadd.f32 %v1812_v45, %v8576_v24  ;;  %v1834_v20 = vadd.f32 %v1833_v37, %v8577_v10  ;;  %v8582_v11 = vunpack.c.l.bf16 %v8581_v0  ;;  %v8587_v61 = vld [vmem:[#allocation137_spill] sm:$0xff]  ;;  %v8590_v37 = vld [vmem:[#allocation138_spill] sm:$0xff] }
 0x1b8   : > { %v1855_v27 = vadd.f32 %v1854_v32, %v8579_v56  ;;  %v1876_v49 = vadd.f32 %v1875_v42, %v8580_v25  ;;  %v8583_v54 = vunpack.c.h.bf16 %v8581_v0  ;;  %v8585_v34 = vunpack.c.l.bf16 %v8584_v30  ;;  %v8593_v42 = vld [vmem:[#allocation139_spill] sm:$0xff] }
 0x1b9   : > { %v1897_v35 = vadd.f32 %v1896_v43, %v8582_v11  ;;  %v8586_v39 = vunpack.c.h.bf16 %v8584_v30  ;;  %v8588_v36 = vunpack.c.l.bf16 %v8587_v61  ;;  %v8589_v45 = vunpack.c.h.bf16 %v8587_v61 }
 0x1ba   : > { %v1918_v8 = vadd.f32 %v1917_v52, %v8583_v54  ;;  %v1772_v55 = vadd.f32 %v1771_v48, %v8585_v34  ;;  %v8591_v1 = vunpack.c.l.bf16 %v8590_v37  ;;  %v8592_v32 = vunpack.c.h.bf16 %v8590_v37  ;;  %v8596_v52 = vld [vmem:[#allocation94_spill] sm:$0xff] }
 0x1bb   : > { %v1793_v23 = vadd.f32 %v1792_v58, %v8586_v39  ;;  %v1814_v17 = vadd.f32 %v1813_v16, %v8588_v36  ;;  %v1835_v6 = vadd.f32 %v1834_v20, %v8589_v45  ;;  %v8594_v13 = vunpack.c.l.bf16 %v8593_v42  ;;  %v8599_v58 = vld [vmem:[#allocation140_spill] sm:$0xff]  ;;  %v8602_v20 = vld [vmem:[#allocation141_spill] sm:$0xff] }
 0x1bc   : > { %v1856_v41 = vadd.f32 %v1855_v27, %v8591_v1  ;;  %v1877_v63 = vadd.f32 %v1876_v49, %v8592_v32  ;;  %v8595_v43 = vunpack.c.h.bf16 %v8593_v42  ;;  %v8597_v62 = vunpack.c.l.bf16 %v8596_v52  ;;  %v8605_v49 = vld [vmem:[#allocation142_spill] sm:$0xff] }
 0x1bd   : > { %v1898_v51 = vadd.f32 %v1897_v35, %v8594_v13  ;;  %v8598_v48 = vunpack.c.h.bf16 %v8596_v52  ;;  %v8600_v5 = vunpack.c.l.bf16 %v8599_v58  ;;  %v8601_v16 = vunpack.c.h.bf16 %v8599_v58 }
 0x1be   : > { %v1919_v7 = vadd.f32 %v1918_v8, %v8595_v43  ;;  %v1773_v29 = vadd.f32 %v1772_v55, %v8597_v62  ;;  %v8603_v47 = vunpack.c.l.bf16 %v8602_v20  ;;  %v8604_v27 = vunpack.c.h.bf16 %v8602_v20  ;;  %v8608_v8 = vld [vmem:[#allocation97_spill] sm:$0xff] }
 0x1bf   : > { %v1794_v2 = vadd.f32 %v1793_v23, %v8598_v48  ;;  %v1815_v24 = vadd.f32 %v1814_v17, %v8600_v5  ;;  %v1836_v10 = vadd.f32 %v1835_v6, %v8601_v16  ;;  %v8606_v0 = vunpack.c.l.bf16 %v8605_v49  ;;  %v8611_v23 = vld [vmem:[#allocation143_spill] sm:$0xff]  ;;  %v8614_v6 = vld [vmem:[#allocation144_spill] sm:$0xff] }
 0x1c0   : > { %v1857_v56 = vadd.f32 %v1856_v41, %v8603_v47  ;;  %v1878_v25 = vadd.f32 %v1877_v63, %v8604_v27  ;;  %v8607_v35 = vunpack.c.h.bf16 %v8605_v49  ;;  %v8609_v30 = vunpack.c.l.bf16 %v8608_v8  ;;  %v8617_v63 = vld [vmem:[#allocation145_spill] sm:$0xff] }
 0x1c1   : > { %v1899_v11 = vadd.f32 %v1898_v51, %v8606_v0  ;;  %v8610_v55 = vunpack.c.h.bf16 %v8608_v8  ;;  %v8612_v61 = vunpack.c.l.bf16 %v8611_v23  ;;  %v8613_v17 = vunpack.c.h.bf16 %v8611_v23 }
 0x1c2   : > { %v1920_v54 = vadd.f32 %v1919_v7, %v8607_v35  ;;  %v1774_v34 = vadd.f32 %v1773_v29, %v8609_v30  ;;  %v8615_v37 = vunpack.c.l.bf16 %v8614_v6  ;;  %v8616_v41 = vunpack.c.h.bf16 %v8614_v6  ;;  %v8620_v7 = vld [vmem:[#allocation100_spill] sm:$0xff] }
 0x1c3   : > { %v1795_v39 = vadd.f32 %v1794_v2, %v8610_v55  ;;  %v1816_v36 = vadd.f32 %v1815_v24, %v8612_v61  ;;  %v1837_v45 = vadd.f32 %v1836_v10, %v8613_v17  ;;  %v8618_v42 = vunpack.c.l.bf16 %v8617_v63  ;;  %v8623_v2 = vld [vmem:[#allocation146_spill] sm:$0xff]  ;;  %v8626_v10 = vld [vmem:[#allocation147_spill] sm:$0xff] }
 0x1c4   : > { %v1858_v1 = vadd.f32 %v1857_v56, %v8615_v37  ;;  %v1879_v32 = vadd.f32 %v1878_v25, %v8616_v41  ;;  %v8619_v51 = vunpack.c.h.bf16 %v8617_v63  ;;  %v8621_v52 = vunpack.c.l.bf16 %v8620_v7  ;;  %v8629_v25 = vld [vmem:[#allocation148_spill] sm:$0xff] }
 0x1c5   : > { %v1900_v13 = vadd.f32 %v1899_v11, %v8618_v42  ;;  %v8622_v29 = vunpack.c.h.bf16 %v8620_v7  ;;  %v8624_v58 = vunpack.c.l.bf16 %v8623_v2  ;;  %v8625_v24 = vunpack.c.h.bf16 %v8623_v2 }
 0x1c6   : > { %v1921_v43 = vadd.f32 %v1920_v54, %v8619_v51  ;;  %v1775_v62 = vadd.f32 %v1774_v34, %v8621_v52  ;;  %v8627_v20 = vunpack.c.l.bf16 %v8626_v10  ;;  %v8628_v56 = vunpack.c.h.bf16 %v8626_v10  ;;  %v8632_v54 = vld [vmem:[#allocation103_spill] sm:$0xff] }
 0x1c7   : > { %v1796_v48 = vadd.f32 %v1795_v39, %v8622_v29  ;;  %v1817_v5 = vadd.f32 %v1816_v36, %v8624_v58  ;;  %v1838_v16 = vadd.f32 %v1837_v45, %v8625_v24  ;;  %v8630_v49 = vunpack.c.l.bf16 %v8629_v25  ;;  %v8635_v39 = vld [vmem:[#allocation149_spill] sm:$0xff]  ;;  %v8638_v45 = vld [vmem:[#allocation150_spill] sm:$0xff] }
 0x1c8   : > { %v1859_v47 = vadd.f32 %v1858_v1, %v8627_v20  ;;  %v1880_v27 = vadd.f32 %v1879_v32, %v8628_v56  ;;  %v8631_v11 = vunpack.c.h.bf16 %v8629_v25  ;;  %v8633_v8 = vunpack.c.l.bf16 %v8632_v54  ;;  %v8641_v32 = vld [vmem:[#allocation151_spill] sm:$0xff] }
 0x1c9   : > { %v1901_v0 = vadd.f32 %v1900_v13, %v8630_v49  ;;  %v8634_v34 = vunpack.c.h.bf16 %v8632_v54  ;;  %v8636_v23 = vunpack.c.l.bf16 %v8635_v39  ;;  %v8637_v36 = vunpack.c.h.bf16 %v8635_v39 }
 0x1ca   : > { %v1922_v35 = vadd.f32 %v1921_v43, %v8631_v11  ;;  %v1776_v30 = vadd.f32 %v1775_v62, %v8633_v8  ;;  %v8639_v6 = vunpack.c.l.bf16 %v8638_v45  ;;  %v8640_v1 = vunpack.c.h.bf16 %v8638_v45  ;;  %v8644_v43 = vld [vmem:[#allocation106_spill] sm:$0xff] }
 0x1cb   : > { %v1797_v55 = vadd.f32 %v1796_v48, %v8634_v34  ;;  %v1818_v61 = vadd.f32 %v1817_v5, %v8636_v23  ;;  %v1839_v17 = vadd.f32 %v1838_v16, %v8637_v36  ;;  %v8642_v63 = vunpack.c.l.bf16 %v8641_v32  ;;  %v8647_v48 = vld [vmem:[#allocation152_spill] sm:$0xff]  ;;  %v8650_v16 = vld [vmem:[#allocation153_spill] sm:$0xff] }
 0x1cc   : > { %v1860_v37 = vadd.f32 %v1859_v47, %v8639_v6  ;;  %v1881_v41 = vadd.f32 %v1880_v27, %v8640_v1  ;;  %v8643_v13 = vunpack.c.h.bf16 %v8641_v32  ;;  %v8645_v7 = vunpack.c.l.bf16 %v8644_v43  ;;  %v8653_v27 = vld [vmem:[#allocation154_spill] sm:$0xff] }
 0x1cd   : > { %v1902_v42 = vadd.f32 %v1901_v0, %v8642_v63  ;;  %v8646_v62 = vunpack.c.h.bf16 %v8644_v43  ;;  %v8648_v2 = vunpack.c.l.bf16 %v8647_v48  ;;  %v8649_v5 = vunpack.c.h.bf16 %v8647_v48 }
 0x1ce   : > { %v1923_v51 = vadd.f32 %v1922_v35, %v8643_v13  ;;  %v1777_v52 = vadd.f32 %v1776_v30, %v8645_v7  ;;  %v8651_v10 = vunpack.c.l.bf16 %v8650_v16  ;;  %v8652_v47 = vunpack.c.h.bf16 %v8650_v16  ;;  %v8656_v35 = vld [vmem:[#allocation109_spill] sm:$0xff] }
 0x1cf   : > { %v1798_v29 = vadd.f32 %v1797_v55, %v8646_v62  ;;  %v1819_v58 = vadd.f32 %v1818_v61, %v8648_v2  ;;  %v1840_v24 = vadd.f32 %v1839_v17, %v8649_v5  ;;  %v8654_v25 = vunpack.c.l.bf16 %v8653_v27  ;;  %v8659_v55 = vld [vmem:[#allocation155_spill] sm:$0xff]  ;;  %v8662_v17 = vld [vmem:[#allocation156_spill] sm:$0xff] }
 0x1d0   : > { %v1861_v20 = vadd.f32 %v1860_v37, %v8651_v10  ;;  %v1882_v56 = vadd.f32 %v1881_v41, %v8652_v47  ;;  %v8655_v0 = vunpack.c.h.bf16 %v8653_v27  ;;  %v8657_v54 = vunpack.c.l.bf16 %v8656_v35  ;;  %v8665_v41 = vld [vmem:[#allocation157_spill] sm:$0xff] }
 0x1d1   : > { %v1903_v49 = vadd.f32 %v1902_v42, %v8654_v25  ;;  %v8658_v30 = vunpack.c.h.bf16 %v8656_v35  ;;  %v8660_v39 = vunpack.c.l.bf16 %v8659_v55  ;;  %v8661_v61 = vunpack.c.h.bf16 %v8659_v55 }
 0x1d2   : > { %v1924_v11 = vadd.f32 %v1923_v51, %v8655_v0  ;;  %v1778_v8 = vadd.f32 %v1777_v52, %v8657_v54  ;;  %v8663_v45 = vunpack.c.l.bf16 %v8662_v17  ;;  %v8664_v37 = vunpack.c.h.bf16 %v8662_v17  ;;  %v8668_v51 = vld [vmem:[#allocation112_spill] sm:$0xff] }
 0x1d3   : > { %v1799_v34 = vadd.f32 %v1798_v29, %v8658_v30  ;;  %v1820_v23 = vadd.f32 %v1819_v58, %v8660_v39  ;;  %v1841_v36 = vadd.f32 %v1840_v24, %v8661_v61  ;;  %v8666_v32 = vunpack.c.l.bf16 %v8665_v41  ;;  %v8671_v29 = vld [vmem:[#allocation158_spill] sm:$0xff]  ;;  %v8674_v24 = vld [vmem:[#allocation159_spill] sm:$0xff] }
 0x1d4   : > { %v1862_v6 = vadd.f32 %v1861_v20, %v8663_v45  ;;  %v1883_v1 = vadd.f32 %v1882_v56, %v8664_v37  ;;  %v8667_v42 = vunpack.c.h.bf16 %v8665_v41  ;;  %v8669_v43 = vunpack.c.l.bf16 %v8668_v51  ;;  %v8677_v56 = vld [vmem:[#allocation160_spill] sm:$0xff] }
 0x1d5   : > { %v1904_v63 = vadd.f32 %v1903_v49, %v8666_v32  ;;  %v8670_v52 = vunpack.c.h.bf16 %v8668_v51  ;;  %v8672_v48 = vunpack.c.l.bf16 %v8671_v29  ;;  %v8673_v58 = vunpack.c.h.bf16 %v8671_v29 }
 0x1d6   : > { %v1925_v13 = vadd.f32 %v1924_v11, %v8667_v42  ;;  %v1779_v7 = vadd.f32 %v1778_v8, %v8669_v43  ;;  %v8675_v16 = vunpack.c.l.bf16 %v8674_v24  ;;  %v8676_v20 = vunpack.c.h.bf16 %v8674_v24 }
 0x1d7   : > { %v1800_v62 = vadd.f32 %v1799_v34, %v8670_v52  ;;  %v1821_v2 = vadd.f32 %v1820_v23, %v8672_v48  ;;  %v1842_v5 = vadd.f32 %v1841_v36, %v8673_v58  ;;  %v8678_v27 = vunpack.c.l.bf16 %v8677_v56 }
 0x1d8   : > { %v1863_v10 = vadd.f32 %v1862_v6, %v8675_v16  ;;  %v1884_v47 = vadd.f32 %v1883_v1, %v8676_v20  ;;  %v8679_v49 = vunpack.c.h.bf16 %v8677_v56  ;;  %v1780_v11 = vrot.slane %v1779_v7, 4 }
 0x1d9   : > { %v1905_v25 = vadd.f32 %v1904_v63, %v8678_v27  ;;  %v1801_v35 = vrot.slane %v1800_v62, 4  ;;  %v1822_v54 = vrot.slane %v1821_v2, 4  ;;  %v1843_v8 = vrot.slane %v1842_v5, 4 }
 0x1da   : > { %v1926_v0 = vadd.f32 %v1925_v13, %v8679_v49  ;;  %v1864_v30 = vrot.slane %v1863_v10, 4  ;;  %v1885_v34 = vrot.slane %v1884_v47, 4  ;;  %v1781_v23 = vadd.f32 %v1780_v11, %v1779_v7 }
 0x1db   : > { %v1906_v55 = vrot.slane %v1905_v25, 4  ;;  %v1802_v61 = vadd.f32 %v1801_v35, %v1800_v62  ;;  %v1823_v36 = vadd.f32 %v1822_v54, %v1821_v2  ;;  %v1844_v17 = vadd.f32 %v1843_v8, %v1842_v5 }
 0x1dc   : > { %v1927_v39 = vrot.slane %v1926_v0, 4  ;;  %v1865_v45 = vadd.f32 %v1864_v30, %v1863_v10  ;;  %v1886_v6 = vadd.f32 %v1885_v34, %v1884_v47  ;;  %v1782_v41 = vrot.slane %v1781_v23, 2 }
 0x1dd   : > { %v1907_v37 = vadd.f32 %v1906_v55, %v1905_v25  ;;  %v1803_v32 = vrot.slane %v1802_v61, 2  ;;  %v1824_v63 = vrot.slane %v1823_v36, 2  ;;  %v1845_v42 = vrot.slane %v1844_v17, 2 }
 0x1de   : > { %v1928_v1 = vadd.f32 %v1927_v39, %v1926_v0  ;;  %v1866_v13 = vrot.slane %v1865_v45, 2  ;;  %v1887_v51 = vrot.slane %v1886_v6, 2  ;;  %v1783_v29 = vadd.f32 %v1782_v41, %v1781_v23  ;;  %v8685_v39 = vld [vmem:[#allocation164_spill] sm:$0xff] }
 0x1df   : > { %v1908_v43 = vrot.slane %v1907_v37, 2  ;;  %v1804_v48 = vadd.f32 %v1803_v32, %v1802_v61  ;;  %v1825_v58 = vadd.f32 %v1824_v63, %v1823_v36  ;;  %v1846_v24 = vadd.f32 %v1845_v42, %v1844_v17 }
 0x1e0   : > { %v1929_v52 = vrot.slane %v1928_v1, 2  ;;  %v1867_v7 = vadd.f32 %v1866_v13, %v1865_v45  ;;  %v1888_v62 = vadd.f32 %v1887_v51, %v1886_v6  ;;  %v1784_v16 = vrot.slane %v1783_v29, 1  ;;  %v8689_v6 = vld [vmem:[#allocation162_spill] sm:$0xff]  ;;  %v8695_v51 = vld [vmem:[#allocation163_spill] sm:$0xff] }
 0x1e1   : > { %v1909_v2 = vadd.f32 %v1908_v43, %v1907_v37  ;;  %v1805_v10 = vrot.slane %v1804_v48, 1  ;;  %v1826_v20 = vrot.slane %v1825_v58, 1  ;;  %v1847_v47 = vrot.slane %v1846_v24, 1 }
 0x1e2   : > { %v6174_v5 = vadd.f32 %v1929_v52, %v1928_v1  ;;  %v6179_v56 = vadd.f32 %v1763_v46, %v5896_v3  ;;  %v1868_v27 = vrot.slane %v1867_v7, 1  ;;  %v1889_v25 = vrot.slane %v1888_v62, 1  ;;  %v8683_v3 = vld [vmem:[#allocation161_spill] sm:$0xff]  ;;  %v8697_v52 = vld [vmem:[#allocation166_spill] sm:$0xff] }
 0x1e3   : > { %v1910_v49 = vrot.slane %v1909_v2, 1  ;;  %v6181_v0 = vadd.f32 %v1784_v16, %v1783_v29  ;;  %v6183_v11 = vadd.f32 %v1805_v10, %v1804_v48  ;;  %v6185_v35 = vadd.f32 %v1826_v20, %v1825_v58  ;;  %v8691_v1 = vld [vmem:[#allocation165_spill] sm:$0xff]  ;;  %v8703_v16 = vld [vmem:[#allocation212_spill] sm:$0xff] }
 0x1e4   : > { %v6188_v8 = vadd.f32 %v1847_v47, %v1846_v24  ;;  %v6190_v30 = vadd.f32 %v1868_v27, %v1867_v7  ;;  %v6192_v34 = vadd.f32 %v1889_v25, %v1888_v62  ;;  %v8684_v46 = vunpack.c.l.bf16 %v8683_v3  ;;  %v8701_v62 = vld [vmem:[#allocation209_spill] sm:$0xff] }
 0x1e5   : > { %8680 = vst [vmem:[#allocation16_spill] sm:$0xff] %v6181_v0  ;;  %8681 = vst [vmem:[#allocation17_spill] sm:$0xff] %v6183_v11  ;;  %v6194_v55 = vadd.f32 %v1910_v49, %v1909_v2  ;;  %v8686_v23 = vunpack.c.l.bf16 %v8685_v39  ;;  %v8687_v36 = vunpack.c.h.bf16 %v8683_v3  ;;  %v8688_v17 = vunpack.c.h.bf16 %v8685_v39  ;;  %v8707_v49 = vld [vmem:[#allocation167_spill] sm:$0xff] }
 0x1e6   : > { %v8690_v37 = vunpack.c.l.bf16 %v8689_v6  ;;  %v8692_v41 = vunpack.c.l.bf16 %v8691_v1  ;;  %v8693_v63 = vunpack.c.h.bf16 %v8689_v6  ;;  %v8694_v42 = vunpack.c.h.bf16 %v8691_v1 }
 0x1e7   : > { %8682 = vst [vmem:[#allocation18_spill] sm:$0xff] %v6194_v55  ;;  %v1933_v61 = vadd.f32 %v8686_v23, %v8684_v46  ;;  %v1954_v45 = vadd.f32 %v8688_v17, %v8687_v36  ;;  %v8696_v43 = vunpack.c.l.bf16 %v8695_v51  ;;  %v8698_v29 = vunpack.c.l.bf16 %v8697_v52  ;;  %v8710_v36 = vld [vmem:[#allocation168_spill] sm:$0xff] }
 0x1e8   : > { %v1975_v32 = vadd.f32 %v8692_v41, %v8690_v37  ;;  %v1996_v13 = vadd.f32 %v8694_v42, %v8693_v63  ;;  %v8699_v58 = vunpack.c.h.bf16 %v8695_v51  ;;  %v8700_v24 = vunpack.c.h.bf16 %v8697_v52  ;;  %v8713_v41 = vld [vmem:[#allocation169_spill] sm:$0xff]  ;;  %v8716_v52 = vld [vmem:[#allocation215_spill] sm:$0xff] }
 0x1e9   : > { %v2017_v48 = vadd.f32 %v8698_v29, %v8696_v43  ;;  %v8702_v2 = vunpack.c.l.bf16 %v8701_v62  ;;  %v8704_v10 = vunpack.c.l.bf16 %v8703_v16  ;;  %v8705_v47 = vunpack.c.h.bf16 %v8701_v62  ;;  %v8719_v62 = vld [vmem:[#allocation170_spill] sm:$0xff] }
 0x1ea   : > { %v2038_v7 = vadd.f32 %v8700_v24, %v8699_v58  ;;  %v8706_v27 = vunpack.c.h.bf16 %v8703_v16  ;;  %v8708_v3 = vunpack.c.l.bf16 %v8707_v49  ;;  %v8709_v39 = vunpack.c.h.bf16 %v8707_v49  ;;  %v8725_v49 = vld [vmem:[#allocation172_spill] sm:$0xff] }
 0x1eb   : > { %v2059_v20 = vadd.f32 %v8704_v10, %v8702_v2  ;;  %v8711_v17 = vunpack.c.l.bf16 %v8710_v36  ;;  %v8712_v37 = vunpack.c.h.bf16 %v8710_v36  ;;  %v8714_v63 = vunpack.c.l.bf16 %v8713_v41  ;;  %v8722_v10 = vld [vmem:[#allocation171_spill] sm:$0xff]  ;;  %v8728_v36 = vld [vmem:[#allocation218_spill] sm:$0xff] }
 0x1ec   : > { %v2080_v25 = vadd.f32 %v8706_v27, %v8705_v47  ;;  %v1934_v46 = vadd.f32 %v1933_v61, %v8708_v3  ;;  %v1955_v23 = vadd.f32 %v1954_v45, %v8709_v39  ;;  %v8715_v51 = vunpack.c.h.bf16 %v8713_v41  ;;  %v8731_v41 = vld [vmem:[#allocation173_spill] sm:$0xff] }
 0x1ed   : > { %v1976_v6 = vadd.f32 %v1975_v32, %v8711_v17  ;;  %v1997_v1 = vadd.f32 %v1996_v13, %v8712_v37  ;;  %v2018_v42 = vadd.f32 %v2017_v48, %v8714_v63  ;;  %v8717_v29 = vunpack.c.l.bf16 %v8716_v52 }
 0x1ee   : > { %v2039_v43 = vadd.f32 %v2038_v7, %v8715_v51  ;;  %v8718_v61 = vunpack.c.h.bf16 %v8716_v52  ;;  %v8720_v45 = vunpack.c.l.bf16 %v8719_v62  ;;  %v8721_v32 = vunpack.c.h.bf16 %v8719_v62  ;;  %v8734_v52 = vld [vmem:[#allocation174_spill] sm:$0xff]  ;;  %v8737_v62 = vld [vmem:[#allocation175_spill] sm:$0xff] }
 0x1ef   : > { %v2060_v58 = vadd.f32 %v2059_v20, %v8717_v29  ;;  %v8723_v13 = vunpack.c.l.bf16 %v8722_v10  ;;  %v8724_v48 = vunpack.c.h.bf16 %v8722_v10  ;;  %v8726_v7 = vunpack.c.l.bf16 %v8725_v49  ;;  %v8740_v10 = vld [vmem:[#allocation221_spill] sm:$0xff] }
 0x1f0   : > { %v2081_v24 = vadd.f32 %v2080_v25, %v8718_v61  ;;  %v1935_v2 = vadd.f32 %v1934_v46, %v8720_v45  ;;  %v1956_v16 = vadd.f32 %v1955_v23, %v8721_v32  ;;  %v8727_v20 = vunpack.c.h.bf16 %v8725_v49  ;;  %v8743_v49 = vld [vmem:[#allocation176_spill] sm:$0xff] }
 0x1f1   : > { %v1977_v47 = vadd.f32 %v1976_v6, %v8723_v13  ;;  %v1998_v27 = vadd.f32 %v1997_v1, %v8724_v48  ;;  %v2019_v3 = vadd.f32 %v2018_v42, %v8726_v7  ;;  %v8729_v25 = vunpack.c.l.bf16 %v8728_v36 }
 0x1f2   : > { %v2040_v39 = vadd.f32 %v2039_v43, %v8727_v20  ;;  %v8730_v46 = vunpack.c.h.bf16 %v8728_v36  ;;  %v8732_v23 = vunpack.c.l.bf16 %v8731_v41  ;;  %v8733_v6 = vunpack.c.h.bf16 %v8731_v41  ;;  %v8746_v36 = vld [vmem:[#allocation177_spill] sm:$0xff]  ;;  %v8749_v41 = vld [vmem:[#allocation178_spill] sm:$0xff] }
 0x1f3   : > { %v2061_v17 = vadd.f32 %v2060_v58, %v8729_v25  ;;  %v8735_v1 = vunpack.c.l.bf16 %v8734_v52  ;;  %v8736_v42 = vunpack.c.h.bf16 %v8734_v52  ;;  %v8738_v43 = vunpack.c.l.bf16 %v8737_v62  ;;  %v8752_v52 = vld [vmem:[#allocation224_spill] sm:$0xff] }
 0x1f4   : > { %v2082_v37 = vadd.f32 %v2081_v24, %v8730_v46  ;;  %v1936_v63 = vadd.f32 %v1935_v2, %v8732_v23  ;;  %v1957_v51 = vadd.f32 %v1956_v16, %v8733_v6  ;;  %v8739_v58 = vunpack.c.h.bf16 %v8737_v62  ;;  %v8755_v62 = vld [vmem:[#allocation179_spill] sm:$0xff] }
 0x1f5   : > { %v1978_v29 = vadd.f32 %v1977_v47, %v8735_v1  ;;  %v1999_v61 = vadd.f32 %v1998_v27, %v8736_v42  ;;  %v2020_v45 = vadd.f32 %v2019_v3, %v8738_v43  ;;  %v8741_v24 = vunpack.c.l.bf16 %v8740_v10 }
 0x1f6   : > { %v2041_v32 = vadd.f32 %v2040_v39, %v8739_v58  ;;  %v8742_v2 = vunpack.c.h.bf16 %v8740_v10  ;;  %v8744_v16 = vunpack.c.l.bf16 %v8743_v49  ;;  %v8745_v47 = vunpack.c.h.bf16 %v8743_v49  ;;  %v8758_v10 = vld [vmem:[#allocation180_spill] sm:$0xff]  ;;  %v8761_v49 = vld [vmem:[#allocation181_spill] sm:$0xff] }
 0x1f7   : > { %v2062_v13 = vadd.f32 %v2061_v17, %v8741_v24  ;;  %v8747_v27 = vunpack.c.l.bf16 %v8746_v36  ;;  %v8748_v3 = vunpack.c.h.bf16 %v8746_v36  ;;  %v8750_v39 = vunpack.c.l.bf16 %v8749_v41  ;;  %v8764_v36 = vld [vmem:[#allocation227_spill] sm:$0xff] }
 0x1f8   : > { %v2083_v48 = vadd.f32 %v2082_v37, %v8742_v2  ;;  %v1937_v7 = vadd.f32 %v1936_v63, %v8744_v16  ;;  %v1958_v20 = vadd.f32 %v1957_v51, %v8745_v47  ;;  %v8751_v17 = vunpack.c.h.bf16 %v8749_v41  ;;  %v8767_v41 = vld [vmem:[#allocation182_spill] sm:$0xff] }
 0x1f9   : > { %v1979_v25 = vadd.f32 %v1978_v29, %v8747_v27  ;;  %v2000_v46 = vadd.f32 %v1999_v61, %v8748_v3  ;;  %v2021_v23 = vadd.f32 %v2020_v45, %v8750_v39  ;;  %v8753_v37 = vunpack.c.l.bf16 %v8752_v52 }
 0x1fa   : > { %v2042_v6 = vadd.f32 %v2041_v32, %v8751_v17  ;;  %v8754_v63 = vunpack.c.h.bf16 %v8752_v52  ;;  %v8756_v51 = vunpack.c.l.bf16 %v8755_v62  ;;  %v8757_v29 = vunpack.c.h.bf16 %v8755_v62  ;;  %v8770_v52 = vld [vmem:[#allocation183_spill] sm:$0xff]  ;;  %v8773_v62 = vld [vmem:[#allocation184_spill] sm:$0xff] }
 0x1fb   : > { %v2063_v1 = vadd.f32 %v2062_v13, %v8753_v37  ;;  %v8759_v61 = vunpack.c.l.bf16 %v8758_v10  ;;  %v8760_v45 = vunpack.c.h.bf16 %v8758_v10  ;;  %v8762_v32 = vunpack.c.l.bf16 %v8761_v49  ;;  %v8776_v10 = vld [vmem:[#allocation230_spill] sm:$0xff] }
 0x1fc   : > { %v2084_v42 = vadd.f32 %v2083_v48, %v8754_v63  ;;  %v1938_v43 = vadd.f32 %v1937_v7, %v8756_v51  ;;  %v1959_v58 = vadd.f32 %v1958_v20, %v8757_v29  ;;  %v8763_v13 = vunpack.c.h.bf16 %v8761_v49  ;;  %v8779_v49 = vld [vmem:[#allocation185_spill] sm:$0xff] }
 0x1fd   : > { %v1980_v24 = vadd.f32 %v1979_v25, %v8759_v61  ;;  %v2001_v2 = vadd.f32 %v2000_v46, %v8760_v45  ;;  %v2022_v16 = vadd.f32 %v2021_v23, %v8762_v32  ;;  %v8765_v48 = vunpack.c.l.bf16 %v8764_v36 }
 0x1fe   : > { %v2043_v47 = vadd.f32 %v2042_v6, %v8763_v13  ;;  %v8766_v7 = vunpack.c.h.bf16 %v8764_v36  ;;  %v8768_v20 = vunpack.c.l.bf16 %v8767_v41  ;;  %v8769_v25 = vunpack.c.h.bf16 %v8767_v41  ;;  %v8782_v36 = vld [vmem:[#allocation186_spill] sm:$0xff]  ;;  %v8785_v41 = vld [vmem:[#allocation187_spill] sm:$0xff] }
 0x1ff   : > { %v2064_v27 = vadd.f32 %v2063_v1, %v8765_v48  ;;  %v8771_v46 = vunpack.c.l.bf16 %v8770_v52  ;;  %v8772_v23 = vunpack.c.h.bf16 %v8770_v52  ;;  %v8774_v6 = vunpack.c.l.bf16 %v8773_v62  ;;  %v8788_v52 = vld [vmem:[#allocation233_spill] sm:$0xff] }
 0x200   : > { %v2085_v3 = vadd.f32 %v2084_v42, %v8766_v7  ;;  %v1939_v39 = vadd.f32 %v1938_v43, %v8768_v20  ;;  %v1960_v17 = vadd.f32 %v1959_v58, %v8769_v25  ;;  %v8775_v1 = vunpack.c.h.bf16 %v8773_v62  ;;  %v8791_v62 = vld [vmem:[#allocation188_spill] sm:$0xff] }
 0x201   : > { %v1981_v37 = vadd.f32 %v1980_v24, %v8771_v46  ;;  %v2002_v63 = vadd.f32 %v2001_v2, %v8772_v23  ;;  %v2023_v51 = vadd.f32 %v2022_v16, %v8774_v6  ;;  %v8777_v42 = vunpack.c.l.bf16 %v8776_v10 }
 0x202   : > { %v2044_v29 = vadd.f32 %v2043_v47, %v8775_v1  ;;  %v8778_v43 = vunpack.c.h.bf16 %v8776_v10  ;;  %v8780_v58 = vunpack.c.l.bf16 %v8779_v49  ;;  %v8781_v24 = vunpack.c.h.bf16 %v8779_v49  ;;  %v8794_v10 = vld [vmem:[#allocation189_spill] sm:$0xff]  ;;  %v8797_v49 = vld [vmem:[#allocation190_spill] sm:$0xff] }
 0x203   : > { %v2065_v61 = vadd.f32 %v2064_v27, %v8777_v42  ;;  %v8783_v2 = vunpack.c.l.bf16 %v8782_v36  ;;  %v8784_v16 = vunpack.c.h.bf16 %v8782_v36  ;;  %v8786_v47 = vunpack.c.l.bf16 %v8785_v41  ;;  %v8800_v36 = vld [vmem:[#allocation236_spill] sm:$0xff] }
 0x204   : > { %v2086_v45 = vadd.f32 %v2085_v3, %v8778_v43  ;;  %v1940_v32 = vadd.f32 %v1939_v39, %v8780_v58  ;;  %v1961_v13 = vadd.f32 %v1960_v17, %v8781_v24  ;;  %v8787_v27 = vunpack.c.h.bf16 %v8785_v41  ;;  %v8803_v41 = vld [vmem:[#allocation191_spill] sm:$0xff] }
 0x205   : > { %v1982_v48 = vadd.f32 %v1981_v37, %v8783_v2  ;;  %v2003_v7 = vadd.f32 %v2002_v63, %v8784_v16  ;;  %v2024_v20 = vadd.f32 %v2023_v51, %v8786_v47  ;;  %v8789_v3 = vunpack.c.l.bf16 %v8788_v52 }
 0x206   : > { %v2045_v25 = vadd.f32 %v2044_v29, %v8787_v27  ;;  %v8790_v39 = vunpack.c.h.bf16 %v8788_v52  ;;  %v8792_v17 = vunpack.c.l.bf16 %v8791_v62  ;;  %v8793_v37 = vunpack.c.h.bf16 %v8791_v62  ;;  %v8806_v52 = vld [vmem:[#allocation192_spill] sm:$0xff]  ;;  %v8809_v62 = vld [vmem:[#allocation193_spill] sm:$0xff] }
 0x207   : > { %v2066_v46 = vadd.f32 %v2065_v61, %v8789_v3  ;;  %v8795_v63 = vunpack.c.l.bf16 %v8794_v10  ;;  %v8796_v51 = vunpack.c.h.bf16 %v8794_v10  ;;  %v8798_v29 = vunpack.c.l.bf16 %v8797_v49  ;;  %v8812_v10 = vld [vmem:[#allocation239_spill] sm:$0xff] }
 0x208   : > { %v2087_v23 = vadd.f32 %v2086_v45, %v8790_v39  ;;  %v1941_v6 = vadd.f32 %v1940_v32, %v8792_v17  ;;  %v1962_v1 = vadd.f32 %v1961_v13, %v8793_v37  ;;  %v8799_v61 = vunpack.c.h.bf16 %v8797_v49  ;;  %v8815_v49 = vld [vmem:[#allocation194_spill] sm:$0xff] }
 0x209   : > { %v1983_v42 = vadd.f32 %v1982_v48, %v8795_v63  ;;  %v2004_v43 = vadd.f32 %v2003_v7, %v8796_v51  ;;  %v2025_v58 = vadd.f32 %v2024_v20, %v8798_v29  ;;  %v8801_v45 = vunpack.c.l.bf16 %v8800_v36 }
 0x20a   : > { %v2046_v24 = vadd.f32 %v2045_v25, %v8799_v61  ;;  %v8802_v32 = vunpack.c.h.bf16 %v8800_v36  ;;  %v8804_v13 = vunpack.c.l.bf16 %v8803_v41  ;;  %v8805_v48 = vunpack.c.h.bf16 %v8803_v41  ;;  %v8818_v36 = vld [vmem:[#allocation195_spill] sm:$0xff]  ;;  %v8821_v41 = vld [vmem:[#allocation196_spill] sm:$0xff] }
 0x20b   : > { %v2067_v2 = vadd.f32 %v2066_v46, %v8801_v45  ;;  %v8807_v7 = vunpack.c.l.bf16 %v8806_v52  ;;  %v8808_v20 = vunpack.c.h.bf16 %v8806_v52  ;;  %v8810_v25 = vunpack.c.l.bf16 %v8809_v62  ;;  %v8824_v52 = vld [vmem:[#allocation242_spill] sm:$0xff] }
 0x20c   : > { %v2088_v16 = vadd.f32 %v2087_v23, %v8802_v32  ;;  %v1942_v47 = vadd.f32 %v1941_v6, %v8804_v13  ;;  %v1963_v27 = vadd.f32 %v1962_v1, %v8805_v48  ;;  %v8811_v46 = vunpack.c.h.bf16 %v8809_v62  ;;  %v8827_v62 = vld [vmem:[#allocation197_spill] sm:$0xff] }
 0x20d   : > { %v1984_v3 = vadd.f32 %v1983_v42, %v8807_v7  ;;  %v2005_v39 = vadd.f32 %v2004_v43, %v8808_v20  ;;  %v2026_v17 = vadd.f32 %v2025_v58, %v8810_v25  ;;  %v8813_v23 = vunpack.c.l.bf16 %v8812_v10 }
 0x20e   : > { %v2047_v37 = vadd.f32 %v2046_v24, %v8811_v46  ;;  %v8814_v6 = vunpack.c.h.bf16 %v8812_v10  ;;  %v8816_v1 = vunpack.c.l.bf16 %v8815_v49  ;;  %v8817_v42 = vunpack.c.h.bf16 %v8815_v49  ;;  %v8830_v10 = vld [vmem:[#allocation198_spill] sm:$0xff]  ;;  %v8833_v49 = vld [vmem:[#allocation199_spill] sm:$0xff] }
 0x20f   : > { %v2068_v63 = vadd.f32 %v2067_v2, %v8813_v23  ;;  %v8819_v43 = vunpack.c.l.bf16 %v8818_v36  ;;  %v8820_v58 = vunpack.c.h.bf16 %v8818_v36  ;;  %v8822_v24 = vunpack.c.l.bf16 %v8821_v41  ;;  %v8836_v36 = vld [vmem:[#allocation245_spill] sm:$0xff] }
 0x210   : > { %v2089_v51 = vadd.f32 %v2088_v16, %v8814_v6  ;;  %v1943_v29 = vadd.f32 %v1942_v47, %v8816_v1  ;;  %v1964_v61 = vadd.f32 %v1963_v27, %v8817_v42  ;;  %v8823_v2 = vunpack.c.h.bf16 %v8821_v41  ;;  %v8839_v41 = vld [vmem:[#allocation200_spill] sm:$0xff] }
 0x211   : > { %v1985_v45 = vadd.f32 %v1984_v3, %v8819_v43  ;;  %v2006_v32 = vadd.f32 %v2005_v39, %v8820_v58  ;;  %v2027_v13 = vadd.f32 %v2026_v17, %v8822_v24  ;;  %v8825_v16 = vunpack.c.l.bf16 %v8824_v52 }
 0x212   : > { %v2048_v48 = vadd.f32 %v2047_v37, %v8823_v2  ;;  %v8826_v47 = vunpack.c.h.bf16 %v8824_v52  ;;  %v8828_v27 = vunpack.c.l.bf16 %v8827_v62  ;;  %v8829_v3 = vunpack.c.h.bf16 %v8827_v62  ;;  %v8842_v52 = vld [vmem:[#allocation201_spill] sm:$0xff]  ;;  %v8845_v62 = vld [vmem:[#allocation202_spill] sm:$0xff] }
 0x213   : > { %v2069_v7 = vadd.f32 %v2068_v63, %v8825_v16  ;;  %v8831_v39 = vunpack.c.l.bf16 %v8830_v10  ;;  %v8832_v17 = vunpack.c.h.bf16 %v8830_v10  ;;  %v8834_v37 = vunpack.c.l.bf16 %v8833_v49  ;;  %v8848_v10 = vld [vmem:[#allocation248_spill] sm:$0xff] }
 0x214   : > { %v2090_v20 = vadd.f32 %v2089_v51, %v8826_v47  ;;  %v1944_v25 = vadd.f32 %v1943_v29, %v8828_v27  ;;  %v1965_v46 = vadd.f32 %v1964_v61, %v8829_v3  ;;  %v8835_v63 = vunpack.c.h.bf16 %v8833_v49  ;;  %v8851_v49 = vld [vmem:[#allocation203_spill] sm:$0xff] }
 0x215   : > { %v1986_v23 = vadd.f32 %v1985_v45, %v8831_v39  ;;  %v2007_v6 = vadd.f32 %v2006_v32, %v8832_v17  ;;  %v2028_v1 = vadd.f32 %v2027_v13, %v8834_v37  ;;  %v8837_v51 = vunpack.c.l.bf16 %v8836_v36 }
 0x216   : > { %v2049_v42 = vadd.f32 %v2048_v48, %v8835_v63  ;;  %v8838_v29 = vunpack.c.h.bf16 %v8836_v36  ;;  %v8840_v61 = vunpack.c.l.bf16 %v8839_v41  ;;  %v8841_v45 = vunpack.c.h.bf16 %v8839_v41  ;;  %v8854_v36 = vld [vmem:[#allocation204_spill] sm:$0xff]  ;;  %v8857_v41 = vld [vmem:[#allocation205_spill] sm:$0xff] }
 0x217   : > { %v2070_v43 = vadd.f32 %v2069_v7, %v8837_v51  ;;  %v8843_v32 = vunpack.c.l.bf16 %v8842_v52  ;;  %v8844_v13 = vunpack.c.h.bf16 %v8842_v52  ;;  %v8846_v48 = vunpack.c.l.bf16 %v8845_v62  ;;  %v8860_v52 = vld [vmem:[#allocation251_spill] sm:$0xff] }
 0x218   : > { %v2091_v58 = vadd.f32 %v2090_v20, %v8838_v29  ;;  %v1945_v24 = vadd.f32 %v1944_v25, %v8840_v61  ;;  %v1966_v2 = vadd.f32 %v1965_v46, %v8841_v45  ;;  %v8847_v7 = vunpack.c.h.bf16 %v8845_v62  ;;  %v8863_v62 = vld [vmem:[#allocation206_spill] sm:$0xff] }
 0x219   : > { %v1987_v16 = vadd.f32 %v1986_v23, %v8843_v32  ;;  %v2008_v47 = vadd.f32 %v2007_v6, %v8844_v13  ;;  %v2029_v27 = vadd.f32 %v2028_v1, %v8846_v48  ;;  %v8849_v20 = vunpack.c.l.bf16 %v8848_v10 }
 0x21a   : > { %v2050_v3 = vadd.f32 %v2049_v42, %v8847_v7  ;;  %v8850_v25 = vunpack.c.h.bf16 %v8848_v10  ;;  %v8852_v46 = vunpack.c.l.bf16 %v8851_v49  ;;  %v8853_v23 = vunpack.c.h.bf16 %v8851_v49  ;;  %v8866_v10 = vld [vmem:[#allocation207_spill] sm:$0xff]  ;;  %v8869_v49 = vld [vmem:[#allocation208_spill] sm:$0xff] }
 0x21b   : > { %v2071_v39 = vadd.f32 %v2070_v43, %v8849_v20  ;;  %v8855_v6 = vunpack.c.l.bf16 %v8854_v36  ;;  %v8856_v1 = vunpack.c.h.bf16 %v8854_v36  ;;  %v8858_v42 = vunpack.c.l.bf16 %v8857_v41  ;;  %v8872_v36 = vld [vmem:[#allocation254_spill] sm:$0xff] }
 0x21c   : > { %v2092_v17 = vadd.f32 %v2091_v58, %v8850_v25  ;;  %v1946_v37 = vadd.f32 %v1945_v24, %v8852_v46  ;;  %v1967_v63 = vadd.f32 %v1966_v2, %v8853_v23  ;;  %v8859_v43 = vunpack.c.h.bf16 %v8857_v41 }
 0x21d   : > { %v1988_v51 = vadd.f32 %v1987_v16, %v8855_v6  ;;  %v2009_v29 = vadd.f32 %v2008_v47, %v8856_v1  ;;  %v2030_v61 = vadd.f32 %v2029_v27, %v8858_v42  ;;  %v8861_v58 = vunpack.c.l.bf16 %v8860_v52 }
 0x21e   : > { %v2051_v45 = vadd.f32 %v2050_v3, %v8859_v43  ;;  %v8862_v24 = vunpack.c.h.bf16 %v8860_v52  ;;  %v8864_v2 = vunpack.c.l.bf16 %v8863_v62  ;;  %v8865_v16 = vunpack.c.h.bf16 %v8863_v62 }
 0x21f   : > { %v2072_v32 = vadd.f32 %v2071_v39, %v8861_v58  ;;  %v8867_v47 = vunpack.c.l.bf16 %v8866_v10  ;;  %v8868_v27 = vunpack.c.h.bf16 %v8866_v10  ;;  %v8870_v3 = vunpack.c.l.bf16 %v8869_v49 }
 0x220   : > { %v2093_v13 = vadd.f32 %v2092_v17, %v8862_v24  ;;  %v1947_v48 = vadd.f32 %v1946_v37, %v8864_v2  ;;  %v1968_v7 = vadd.f32 %v1967_v63, %v8865_v16  ;;  %v8871_v39 = vunpack.c.h.bf16 %v8869_v49 }
 0x221   : > { %v1989_v20 = vadd.f32 %v1988_v51, %v8867_v47  ;;  %v2010_v25 = vadd.f32 %v2009_v29, %v8868_v27  ;;  %v2031_v46 = vadd.f32 %v2030_v61, %v8870_v3  ;;  %v8873_v17 = vunpack.c.l.bf16 %v8872_v36 }
 0x222   : > { %v2052_v23 = vadd.f32 %v2051_v45, %v8871_v39  ;;  %v8874_v37 = vunpack.c.h.bf16 %v8872_v36  ;;  %v1948_v41 = vrot.slane %v1947_v48, 4  ;;  %v1969_v63 = vrot.slane %v1968_v7, 4 }
 0x223   : > { %v2073_v6 = vadd.f32 %v2072_v32, %v8873_v17  ;;  %v1990_v42 = vrot.slane %v1989_v20, 4  ;;  %v2011_v43 = vrot.slane %v2010_v25, 4  ;;  %v2032_v51 = vrot.slane %v2031_v46, 4 }
 0x224   : > { %v2094_v1 = vadd.f32 %v2093_v13, %v8874_v37  ;;  %v2053_v52 = vrot.slane %v2052_v23, 4  ;;  %v1949_v24 = vadd.f32 %v1948_v41, %v1947_v48  ;;  %v1970_v62 = vadd.f32 %v1969_v63, %v1968_v7 }
 0x225   : > { %v2074_v58 = vrot.slane %v2073_v6, 4  ;;  %v1991_v61 = vadd.f32 %v1990_v42, %v1989_v20  ;;  %v2012_v2 = vadd.f32 %v2011_v43, %v2010_v25  ;;  %v2033_v16 = vadd.f32 %v2032_v51, %v2031_v46 }
 0x226   : > { %v2095_v29 = vrot.slane %v2094_v1, 4  ;;  %v2054_v45 = vadd.f32 %v2053_v52, %v2052_v23  ;;  %v1950_v32 = vrot.slane %v1949_v24, 2  ;;  %v1971_v27 = vrot.slane %v1970_v62, 2 }
 0x227   : > { %v2075_v10 = vadd.f32 %v2074_v58, %v2073_v6  ;;  %v1992_v49 = vrot.slane %v1991_v61, 2  ;;  %v2013_v13 = vrot.slane %v2012_v2, 2  ;;  %v2034_v3 = vrot.slane %v2033_v16, 2 }
 0x228   : > { %v2096_v47 = vadd.f32 %v2095_v29, %v2094_v1  ;;  %v2055_v39 = vrot.slane %v2054_v45, 2  ;;  %v1951_v37 = vadd.f32 %v1950_v32, %v1949_v24  ;;  %v1972_v12 = vadd.f32 %v1971_v27, %v1970_v62 }
 0x229   : > { %v2076_v36 = vrot.slane %v2075_v10, 2  ;;  %v1993_v54 = vadd.f32 %v1992_v49, %v1991_v61  ;;  %v2014_v11 = vadd.f32 %v2013_v13, %v2012_v2  ;;  %v2035_v48 = vadd.f32 %v2034_v3, %v2033_v16  ;;  %v8885_v49 = vld [vmem:[#allocation211_spill] sm:$0xff] }
 0x22a   : > { %v2097_v17 = vrot.slane %v2096_v47, 2  ;;  %v2056_v7 = vadd.f32 %v2055_v39, %v2054_v45  ;;  %v1952_v46 = vrot.slane %v1951_v37, 1  ;;  %v1973_v23 = vrot.slane %v1972_v12, 1 }
 0x22b   : > { %v2077_v20 = vadd.f32 %v2076_v36, %v2075_v10  ;;  %v1994_v6 = vrot.slane %v1993_v54, 1  ;;  %v2015_v1 = vrot.slane %v2014_v11, 1  ;;  %v8875_v41 = vrot.slane %v6174_v5, 1  ;;  %v8881_v10 = vld [vmem:[#allocation213_spill] sm:$0xff] }
 0x22c   : > { %v6452_v25 = vadd.f32 %v2097_v17, %v2096_v47  ;;  %v2036_v42 = vrot.slane %v2035_v48, 1  ;;  %v2057_v43 = vrot.slane %v2056_v7, 1  ;;  %v6459_v52 = vadd.f32 %v1952_v46, %v1951_v37 }
 0x22d   : > { %v6457_v63 = vadd.f32 %v8875_v41, %v6174_v5  ;;  %v2078_v51 = vrot.slane %v2077_v20, 1  ;;  %v6461_v58 = vadd.f32 %v1973_v23, %v1972_v12  ;;  %v6463_v29 = vadd.f32 %v1994_v6, %v1993_v54  ;;  %v8879_v5 = vld [vmem:[#allocation210_spill] sm:$0xff] }
 0x22e   : > { %v6466_v62 = vadd.f32 %v2015_v1, %v2014_v11  ;;  %v6468_v61 = vadd.f32 %v2036_v42, %v2035_v48  ;;  %v6470_v2 = vadd.f32 %v2057_v43, %v2056_v7  ;;  %v8880_v45 = vunpack.c.l.bf16 %v8879_v5  ;;  %v8887_v11 = vld [vmem:[#allocation214_spill] sm:$0xff]  ;;  %v8891_v48 = vld [vmem:[#allocation257_spill] sm:$0xff] }
 0x22f   : > { %8876 = vst [vmem:[#allocation53_spill] sm:$0xff] %v6457_v63  ;;  %v6472_v16 = vadd.f32 %v2078_v51, %v2077_v20  ;;  %v8882_v47 = vunpack.c.l.bf16 %v8881_v10  ;;  %v8883_v12 = vunpack.c.h.bf16 %v8879_v5  ;;  %v8884_v54 = vunpack.c.h.bf16 %v8881_v10  ;;  %v8893_v20 = vld [vmem:[#allocation260_spill] sm:$0xff]  ;;  %v8897_v42 = vld [vmem:[#allocation258_spill] sm:$0xff]  ;;  %v8899_v51 = vld [vmem:[#allocation261_spill] sm:$0xff] }
 0x230   : > { %8877 = vst [vmem:[#allocation19_spill] sm:$0xff] %v6468_v61  ;;  %8878 = vst [vmem:[#allocation20_spill] sm:$0xff] %v6470_v2  ;;  %v8886_v13 = vunpack.c.l.bf16 %v8885_v49  ;;  %v8888_v3 = vunpack.c.l.bf16 %v8887_v11  ;;  %v8889_v36 = vunpack.c.h.bf16 %v8885_v49  ;;  %v8890_v17 = vunpack.c.h.bf16 %v8887_v11 }
 0x231   : > { %v2101_v32 = vadd.f32 %v8882_v47, %v8880_v45  ;;  %v2122_v27 = vadd.f32 %v8884_v54, %v8883_v12  ;;  %v8892_v7 = vunpack.c.l.bf16 %v8891_v48  ;;  %v8894_v46 = vunpack.c.l.bf16 %v8893_v20  ;;  %v8903_v54 = vld [vmem:[#allocation216_spill] sm:$0xff] }
 0x232   : > { %v2143_v39 = vadd.f32 %v8888_v3, %v8886_v13  ;;  %v2164_v37 = vadd.f32 %v8890_v17, %v8889_v36  ;;  %v8895_v6 = vunpack.c.h.bf16 %v8891_v48  ;;  %v8896_v1 = vunpack.c.h.bf16 %v8893_v20  ;;  %v8906_v36 = vld [vmem:[#allocation217_spill] sm:$0xff] }
 0x233   : > { %v2185_v23 = vadd.f32 %v8894_v46, %v8892_v7  ;;  %v8898_v43 = vunpack.c.l.bf16 %v8897_v42  ;;  %v8900_v5 = vunpack.c.l.bf16 %v8899_v51  ;;  %v8901_v10 = vunpack.c.h.bf16 %v8897_v42  ;;  %v8909_v46 = vld [vmem:[#allocation263_spill] sm:$0xff] }
 0x234   : > { %v2206_v41 = vadd.f32 %v8896_v1, %v8895_v6  ;;  %v8902_v47 = vunpack.c.h.bf16 %v8899_v51  ;;  %v8904_v49 = vunpack.c.l.bf16 %v8903_v54  ;;  %v8905_v11 = vunpack.c.h.bf16 %v8903_v54  ;;  %v8912_v51 = vld [vmem:[#allocation264_spill] sm:$0xff]  ;;  %v8915_v54 = vld [vmem:[#allocation219_spill] sm:$0xff] }
 0x235   : > { %v2227_v45 = vadd.f32 %v8900_v5, %v8898_v43  ;;  %v8907_v17 = vunpack.c.l.bf16 %v8906_v36  ;;  %v8908_v7 = vunpack.c.h.bf16 %v8906_v36  ;;  %v8910_v6 = vunpack.c.l.bf16 %v8909_v46  ;;  %v8918_v36 = vld [vmem:[#allocation220_spill] sm:$0xff] }
 0x236   : > { %v2248_v12 = vadd.f32 %v8902_v47, %v8901_v10  ;;  %v2102_v13 = vadd.f32 %v2101_v32, %v8904_v49  ;;  %v2123_v3 = vadd.f32 %v2122_v27, %v8905_v11  ;;  %v8911_v42 = vunpack.c.h.bf16 %v8909_v46  ;;  %v8921_v46 = vld [vmem:[#allocation266_spill] sm:$0xff] }
 0x237   : > { %v2144_v48 = vadd.f32 %v2143_v39, %v8907_v17  ;;  %v2165_v20 = vadd.f32 %v2164_v37, %v8908_v7  ;;  %v2186_v1 = vadd.f32 %v2185_v23, %v8910_v6  ;;  %v8913_v5 = vunpack.c.l.bf16 %v8912_v51 }
 0x238   : > { %v2207_v43 = vadd.f32 %v2206_v41, %v8911_v42  ;;  %v8914_v32 = vunpack.c.h.bf16 %v8912_v51  ;;  %v8916_v27 = vunpack.c.l.bf16 %v8915_v54  ;;  %v8917_v39 = vunpack.c.h.bf16 %v8915_v54  ;;  %v8924_v51 = vld [vmem:[#allocation267_spill] sm:$0xff]  ;;  %v8927_v54 = vld [vmem:[#allocation222_spill] sm:$0xff] }
 0x239   : > { %v2228_v10 = vadd.f32 %v2227_v45, %v8913_v5  ;;  %v8919_v37 = vunpack.c.l.bf16 %v8918_v36  ;;  %v8920_v23 = vunpack.c.h.bf16 %v8918_v36  ;;  %v8922_v41 = vunpack.c.l.bf16 %v8921_v46  ;;  %v8930_v36 = vld [vmem:[#allocation223_spill] sm:$0xff] }
 0x23a   : > { %v2249_v47 = vadd.f32 %v2248_v12, %v8914_v32  ;;  %v2103_v49 = vadd.f32 %v2102_v13, %v8916_v27  ;;  %v2124_v11 = vadd.f32 %v2123_v3, %v8917_v39  ;;  %v8923_v45 = vunpack.c.h.bf16 %v8921_v46  ;;  %v8933_v46 = vld [vmem:[#allocation269_spill] sm:$0xff] }
 0x23b   : > { %v2145_v17 = vadd.f32 %v2144_v48, %v8919_v37  ;;  %v2166_v7 = vadd.f32 %v2165_v20, %v8920_v23  ;;  %v2187_v6 = vadd.f32 %v2186_v1, %v8922_v41  ;;  %v8925_v12 = vunpack.c.l.bf16 %v8924_v51 }
 0x23c   : > { %v2208_v42 = vadd.f32 %v2207_v43, %v8923_v45  ;;  %v8926_v13 = vunpack.c.h.bf16 %v8924_v51  ;;  %v8928_v3 = vunpack.c.l.bf16 %v8927_v54  ;;  %v8929_v48 = vunpack.c.h.bf16 %v8927_v54  ;;  %v8936_v51 = vld [vmem:[#allocation270_spill] sm:$0xff]  ;;  %v8939_v54 = vld [vmem:[#allocation225_spill] sm:$0xff] }
 0x23d   : > { %v2229_v5 = vadd.f32 %v2228_v10, %v8925_v12  ;;  %v8931_v20 = vunpack.c.l.bf16 %v8930_v36  ;;  %v8932_v1 = vunpack.c.h.bf16 %v8930_v36  ;;  %v8934_v43 = vunpack.c.l.bf16 %v8933_v46  ;;  %v8942_v36 = vld [vmem:[#allocation226_spill] sm:$0xff] }
 0x23e   : > { %v2250_v32 = vadd.f32 %v2249_v47, %v8926_v13  ;;  %v2104_v27 = vadd.f32 %v2103_v49, %v8928_v3  ;;  %v2125_v39 = vadd.f32 %v2124_v11, %v8929_v48  ;;  %v8935_v10 = vunpack.c.h.bf16 %v8933_v46  ;;  %v8945_v46 = vld [vmem:[#allocation272_spill] sm:$0xff] }
 0x23f   : > { %v2146_v37 = vadd.f32 %v2145_v17, %v8931_v20  ;;  %v2167_v23 = vadd.f32 %v2166_v7, %v8932_v1  ;;  %v2188_v41 = vadd.f32 %v2187_v6, %v8934_v43  ;;  %v8937_v47 = vunpack.c.l.bf16 %v8936_v51 }
 0x240   : > { %v2209_v45 = vadd.f32 %v2208_v42, %v8935_v10  ;;  %v8938_v49 = vunpack.c.h.bf16 %v8936_v51  ;;  %v8940_v11 = vunpack.c.l.bf16 %v8939_v54  ;;  %v8941_v17 = vunpack.c.h.bf16 %v8939_v54  ;;  %v8948_v51 = vld [vmem:[#allocation273_spill] sm:$0xff]  ;;  %v8951_v54 = vld [vmem:[#allocation228_spill] sm:$0xff] }
 0x241   : > { %v2230_v12 = vadd.f32 %v2229_v5, %v8937_v47  ;;  %v8943_v7 = vunpack.c.l.bf16 %v8942_v36  ;;  %v8944_v6 = vunpack.c.h.bf16 %v8942_v36  ;;  %v8946_v42 = vunpack.c.l.bf16 %v8945_v46  ;;  %v8954_v36 = vld [vmem:[#allocation229_spill] sm:$0xff] }
 0x242   : > { %v2251_v13 = vadd.f32 %v2250_v32, %v8938_v49  ;;  %v2105_v3 = vadd.f32 %v2104_v27, %v8940_v11  ;;  %v2126_v48 = vadd.f32 %v2125_v39, %v8941_v17  ;;  %v8947_v5 = vunpack.c.h.bf16 %v8945_v46  ;;  %v8957_v46 = vld [vmem:[#allocation275_spill] sm:$0xff] }
 0x243   : > { %v2147_v20 = vadd.f32 %v2146_v37, %v8943_v7  ;;  %v2168_v1 = vadd.f32 %v2167_v23, %v8944_v6  ;;  %v2189_v43 = vadd.f32 %v2188_v41, %v8946_v42  ;;  %v8949_v32 = vunpack.c.l.bf16 %v8948_v51 }
 0x244   : > { %v2210_v10 = vadd.f32 %v2209_v45, %v8947_v5  ;;  %v8950_v27 = vunpack.c.h.bf16 %v8948_v51  ;;  %v8952_v39 = vunpack.c.l.bf16 %v8951_v54  ;;  %v8953_v37 = vunpack.c.h.bf16 %v8951_v54  ;;  %v8960_v51 = vld [vmem:[#allocation276_spill] sm:$0xff]  ;;  %v8963_v54 = vld [vmem:[#allocation231_spill] sm:$0xff] }
 0x245   : > { %v2231_v47 = vadd.f32 %v2230_v12, %v8949_v32  ;;  %v8955_v23 = vunpack.c.l.bf16 %v8954_v36  ;;  %v8956_v41 = vunpack.c.h.bf16 %v8954_v36  ;;  %v8958_v45 = vunpack.c.l.bf16 %v8957_v46  ;;  %v8966_v36 = vld [vmem:[#allocation232_spill] sm:$0xff] }
 0x246   : > { %v2252_v49 = vadd.f32 %v2251_v13, %v8950_v27  ;;  %v2106_v11 = vadd.f32 %v2105_v3, %v8952_v39  ;;  %v2127_v17 = vadd.f32 %v2126_v48, %v8953_v37  ;;  %v8959_v12 = vunpack.c.h.bf16 %v8957_v46  ;;  %v8969_v46 = vld [vmem:[#allocation278_spill] sm:$0xff] }
 0x247   : > { %v2148_v7 = vadd.f32 %v2147_v20, %v8955_v23  ;;  %v2169_v6 = vadd.f32 %v2168_v1, %v8956_v41  ;;  %v2190_v42 = vadd.f32 %v2189_v43, %v8958_v45  ;;  %v8961_v13 = vunpack.c.l.bf16 %v8960_v51 }
 0x248   : > { %v2211_v5 = vadd.f32 %v2210_v10, %v8959_v12  ;;  %v8962_v3 = vunpack.c.h.bf16 %v8960_v51  ;;  %v8964_v48 = vunpack.c.l.bf16 %v8963_v54  ;;  %v8965_v20 = vunpack.c.h.bf16 %v8963_v54  ;;  %v8972_v51 = vld [vmem:[#allocation279_spill] sm:$0xff]  ;;  %v8975_v54 = vld [vmem:[#allocation234_spill] sm:$0xff] }
 0x249   : > { %v2232_v32 = vadd.f32 %v2231_v47, %v8961_v13  ;;  %v8967_v1 = vunpack.c.l.bf16 %v8966_v36  ;;  %v8968_v43 = vunpack.c.h.bf16 %v8966_v36  ;;  %v8970_v10 = vunpack.c.l.bf16 %v8969_v46  ;;  %v8978_v36 = vld [vmem:[#allocation235_spill] sm:$0xff] }
 0x24a   : > { %v2253_v27 = vadd.f32 %v2252_v49, %v8962_v3  ;;  %v2107_v39 = vadd.f32 %v2106_v11, %v8964_v48  ;;  %v2128_v37 = vadd.f32 %v2127_v17, %v8965_v20  ;;  %v8971_v47 = vunpack.c.h.bf16 %v8969_v46  ;;  %v8981_v46 = vld [vmem:[#allocation281_spill] sm:$0xff] }
 0x24b   : > { %v2149_v23 = vadd.f32 %v2148_v7, %v8967_v1  ;;  %v2170_v41 = vadd.f32 %v2169_v6, %v8968_v43  ;;  %v2191_v45 = vadd.f32 %v2190_v42, %v8970_v10  ;;  %v8973_v49 = vunpack.c.l.bf16 %v8972_v51 }
 0x24c   : > { %v2212_v12 = vadd.f32 %v2211_v5, %v8971_v47  ;;  %v8974_v11 = vunpack.c.h.bf16 %v8972_v51  ;;  %v8976_v17 = vunpack.c.l.bf16 %v8975_v54  ;;  %v8977_v7 = vunpack.c.h.bf16 %v8975_v54  ;;  %v8984_v51 = vld [vmem:[#allocation282_spill] sm:$0xff]  ;;  %v8987_v54 = vld [vmem:[#allocation237_spill] sm:$0xff] }
 0x24d   : > { %v2233_v13 = vadd.f32 %v2232_v32, %v8973_v49  ;;  %v8979_v6 = vunpack.c.l.bf16 %v8978_v36  ;;  %v8980_v42 = vunpack.c.h.bf16 %v8978_v36  ;;  %v8982_v5 = vunpack.c.l.bf16 %v8981_v46  ;;  %v8990_v36 = vld [vmem:[#allocation238_spill] sm:$0xff] }
 0x24e   : > { %v2254_v3 = vadd.f32 %v2253_v27, %v8974_v11  ;;  %v2108_v48 = vadd.f32 %v2107_v39, %v8976_v17  ;;  %v2129_v20 = vadd.f32 %v2128_v37, %v8977_v7  ;;  %v8983_v32 = vunpack.c.h.bf16 %v8981_v46  ;;  %v8993_v46 = vld [vmem:[#allocation284_spill] sm:$0xff] }
 0x24f   : > { %v2150_v1 = vadd.f32 %v2149_v23, %v8979_v6  ;;  %v2171_v43 = vadd.f32 %v2170_v41, %v8980_v42  ;;  %v2192_v10 = vadd.f32 %v2191_v45, %v8982_v5  ;;  %v8985_v27 = vunpack.c.l.bf16 %v8984_v51 }
 0x250   : > { %v2213_v47 = vadd.f32 %v2212_v12, %v8983_v32  ;;  %v8986_v39 = vunpack.c.h.bf16 %v8984_v51  ;;  %v8988_v37 = vunpack.c.l.bf16 %v8987_v54  ;;  %v8989_v23 = vunpack.c.h.bf16 %v8987_v54  ;;  %v8996_v51 = vld [vmem:[#allocation285_spill] sm:$0xff]  ;;  %v8999_v54 = vld [vmem:[#allocation240_spill] sm:$0xff] }
 0x251   : > { %v2234_v49 = vadd.f32 %v2233_v13, %v8985_v27  ;;  %v8991_v41 = vunpack.c.l.bf16 %v8990_v36  ;;  %v8992_v45 = vunpack.c.h.bf16 %v8990_v36  ;;  %v8994_v12 = vunpack.c.l.bf16 %v8993_v46  ;;  %v9002_v36 = vld [vmem:[#allocation241_spill] sm:$0xff] }
 0x252   : > { %v2255_v11 = vadd.f32 %v2254_v3, %v8986_v39  ;;  %v2109_v17 = vadd.f32 %v2108_v48, %v8988_v37  ;;  %v2130_v7 = vadd.f32 %v2129_v20, %v8989_v23  ;;  %v8995_v13 = vunpack.c.h.bf16 %v8993_v46  ;;  %v9005_v46 = vld [vmem:[#allocation287_spill] sm:$0xff] }
 0x253   : > { %v2151_v6 = vadd.f32 %v2150_v1, %v8991_v41  ;;  %v2172_v42 = vadd.f32 %v2171_v43, %v8992_v45  ;;  %v2193_v5 = vadd.f32 %v2192_v10, %v8994_v12  ;;  %v8997_v3 = vunpack.c.l.bf16 %v8996_v51 }
 0x254   : > { %v2214_v32 = vadd.f32 %v2213_v47, %v8995_v13  ;;  %v8998_v48 = vunpack.c.h.bf16 %v8996_v51  ;;  %v9000_v20 = vunpack.c.l.bf16 %v8999_v54  ;;  %v9001_v1 = vunpack.c.h.bf16 %v8999_v54  ;;  %v9008_v51 = vld [vmem:[#allocation288_spill] sm:$0xff]  ;;  %v9011_v54 = vld [vmem:[#allocation243_spill] sm:$0xff] }
 0x255   : > { %v2235_v27 = vadd.f32 %v2234_v49, %v8997_v3  ;;  %v9003_v43 = vunpack.c.l.bf16 %v9002_v36  ;;  %v9004_v10 = vunpack.c.h.bf16 %v9002_v36  ;;  %v9006_v47 = vunpack.c.l.bf16 %v9005_v46  ;;  %v9014_v36 = vld [vmem:[#allocation244_spill] sm:$0xff] }
 0x256   : > { %v2256_v39 = vadd.f32 %v2255_v11, %v8998_v48  ;;  %v2110_v37 = vadd.f32 %v2109_v17, %v9000_v20  ;;  %v2131_v23 = vadd.f32 %v2130_v7, %v9001_v1  ;;  %v9007_v49 = vunpack.c.h.bf16 %v9005_v46  ;;  %v9017_v46 = vld [vmem:[#allocation290_spill] sm:$0xff] }
 0x257   : > { %v2152_v41 = vadd.f32 %v2151_v6, %v9003_v43  ;;  %v2173_v45 = vadd.f32 %v2172_v42, %v9004_v10  ;;  %v2194_v12 = vadd.f32 %v2193_v5, %v9006_v47  ;;  %v9009_v11 = vunpack.c.l.bf16 %v9008_v51 }
 0x258   : > { %v2215_v13 = vadd.f32 %v2214_v32, %v9007_v49  ;;  %v9010_v17 = vunpack.c.h.bf16 %v9008_v51  ;;  %v9012_v7 = vunpack.c.l.bf16 %v9011_v54  ;;  %v9013_v6 = vunpack.c.h.bf16 %v9011_v54  ;;  %v9020_v51 = vld [vmem:[#allocation291_spill] sm:$0xff]  ;;  %v9023_v54 = vld [vmem:[#allocation246_spill] sm:$0xff] }
 0x259   : > { %v2236_v3 = vadd.f32 %v2235_v27, %v9009_v11  ;;  %v9015_v42 = vunpack.c.l.bf16 %v9014_v36  ;;  %v9016_v5 = vunpack.c.h.bf16 %v9014_v36  ;;  %v9018_v32 = vunpack.c.l.bf16 %v9017_v46  ;;  %v9026_v36 = vld [vmem:[#allocation247_spill] sm:$0xff] }
 0x25a   : > { %v2257_v48 = vadd.f32 %v2256_v39, %v9010_v17  ;;  %v2111_v20 = vadd.f32 %v2110_v37, %v9012_v7  ;;  %v2132_v1 = vadd.f32 %v2131_v23, %v9013_v6  ;;  %v9019_v27 = vunpack.c.h.bf16 %v9017_v46  ;;  %v9029_v46 = vld [vmem:[#allocation293_spill] sm:$0xff] }
 0x25b   : > { %v2153_v43 = vadd.f32 %v2152_v41, %v9015_v42  ;;  %v2174_v10 = vadd.f32 %v2173_v45, %v9016_v5  ;;  %v2195_v47 = vadd.f32 %v2194_v12, %v9018_v32  ;;  %v9021_v39 = vunpack.c.l.bf16 %v9020_v51 }
 0x25c   : > { %v2216_v49 = vadd.f32 %v2215_v13, %v9019_v27  ;;  %v9022_v37 = vunpack.c.h.bf16 %v9020_v51  ;;  %v9024_v23 = vunpack.c.l.bf16 %v9023_v54  ;;  %v9025_v41 = vunpack.c.h.bf16 %v9023_v54  ;;  %v9032_v51 = vld [vmem:[#allocation294_spill] sm:$0xff]  ;;  %v9035_v54 = vld [vmem:[#allocation249_spill] sm:$0xff] }
 0x25d   : > { %v2237_v11 = vadd.f32 %v2236_v3, %v9021_v39  ;;  %v9027_v45 = vunpack.c.l.bf16 %v9026_v36  ;;  %v9028_v12 = vunpack.c.h.bf16 %v9026_v36  ;;  %v9030_v13 = vunpack.c.l.bf16 %v9029_v46  ;;  %v9038_v36 = vld [vmem:[#allocation250_spill] sm:$0xff] }
 0x25e   : > { %v2258_v17 = vadd.f32 %v2257_v48, %v9022_v37  ;;  %v2112_v7 = vadd.f32 %v2111_v20, %v9024_v23  ;;  %v2133_v6 = vadd.f32 %v2132_v1, %v9025_v41  ;;  %v9031_v3 = vunpack.c.h.bf16 %v9029_v46  ;;  %v9041_v46 = vld [vmem:[#allocation296_spill] sm:$0xff] }
 0x25f   : > { %v2154_v42 = vadd.f32 %v2153_v43, %v9027_v45  ;;  %v2175_v5 = vadd.f32 %v2174_v10, %v9028_v12  ;;  %v2196_v32 = vadd.f32 %v2195_v47, %v9030_v13  ;;  %v9033_v48 = vunpack.c.l.bf16 %v9032_v51 }
 0x260   : > { %v2217_v27 = vadd.f32 %v2216_v49, %v9031_v3  ;;  %v9034_v20 = vunpack.c.h.bf16 %v9032_v51  ;;  %v9036_v1 = vunpack.c.l.bf16 %v9035_v54  ;;  %v9037_v43 = vunpack.c.h.bf16 %v9035_v54  ;;  %v9044_v51 = vld [vmem:[#allocation297_spill] sm:$0xff]  ;;  %v9047_v54 = vld [vmem:[#allocation252_spill] sm:$0xff] }
 0x261   : > { %v2238_v39 = vadd.f32 %v2237_v11, %v9033_v48  ;;  %v9039_v10 = vunpack.c.l.bf16 %v9038_v36  ;;  %v9040_v47 = vunpack.c.h.bf16 %v9038_v36  ;;  %v9042_v49 = vunpack.c.l.bf16 %v9041_v46  ;;  %v9050_v36 = vld [vmem:[#allocation253_spill] sm:$0xff] }
 0x262   : > { %v2259_v37 = vadd.f32 %v2258_v17, %v9034_v20  ;;  %v2113_v23 = vadd.f32 %v2112_v7, %v9036_v1  ;;  %v2134_v41 = vadd.f32 %v2133_v6, %v9037_v43  ;;  %v9043_v11 = vunpack.c.h.bf16 %v9041_v46  ;;  %v9053_v46 = vld [vmem:[#allocation299_spill] sm:$0xff] }
 0x263   : > { %v2155_v45 = vadd.f32 %v2154_v42, %v9039_v10  ;;  %v2176_v12 = vadd.f32 %v2175_v5, %v9040_v47  ;;  %v2197_v13 = vadd.f32 %v2196_v32, %v9042_v49  ;;  %v9045_v17 = vunpack.c.l.bf16 %v9044_v51 }
 0x264   : > { %v2218_v3 = vadd.f32 %v2217_v27, %v9043_v11  ;;  %v9046_v7 = vunpack.c.h.bf16 %v9044_v51  ;;  %v9048_v6 = vunpack.c.l.bf16 %v9047_v54  ;;  %v9049_v42 = vunpack.c.h.bf16 %v9047_v54  ;;  %v9056_v51 = vld [vmem:[#allocation300_spill] sm:$0xff]  ;;  %v9059_v54 = vld [vmem:[#allocation255_spill] sm:$0xff] }
 0x265   : > { %v2239_v48 = vadd.f32 %v2238_v39, %v9045_v17  ;;  %v9051_v5 = vunpack.c.l.bf16 %v9050_v36  ;;  %v9052_v32 = vunpack.c.h.bf16 %v9050_v36  ;;  %v9054_v27 = vunpack.c.l.bf16 %v9053_v46  ;;  %v9062_v36 = vld [vmem:[#allocation256_spill] sm:$0xff] }
 0x266   : > { %v2260_v20 = vadd.f32 %v2259_v37, %v9046_v7  ;;  %v2114_v1 = vadd.f32 %v2113_v23, %v9048_v6  ;;  %v2135_v43 = vadd.f32 %v2134_v41, %v9049_v42  ;;  %v9055_v39 = vunpack.c.h.bf16 %v9053_v46  ;;  %v9065_v46 = vld [vmem:[#allocation302_spill] sm:$0xff] }
 0x267   : > { %v2156_v10 = vadd.f32 %v2155_v45, %v9051_v5  ;;  %v2177_v47 = vadd.f32 %v2176_v12, %v9052_v32  ;;  %v2198_v49 = vadd.f32 %v2197_v13, %v9054_v27  ;;  %v9057_v37 = vunpack.c.l.bf16 %v9056_v51 }
 0x268   : > { %v2219_v11 = vadd.f32 %v2218_v3, %v9055_v39  ;;  %v9058_v23 = vunpack.c.h.bf16 %v9056_v51  ;;  %v9060_v41 = vunpack.c.l.bf16 %v9059_v54  ;;  %v9061_v45 = vunpack.c.h.bf16 %v9059_v54  ;;  %v9068_v51 = vld [vmem:[#allocation303_spill] sm:$0xff] }
 0x269   : > { %v2240_v17 = vadd.f32 %v2239_v48, %v9057_v37  ;;  %v9063_v12 = vunpack.c.l.bf16 %v9062_v36  ;;  %v9064_v13 = vunpack.c.h.bf16 %v9062_v36  ;;  %v9066_v3 = vunpack.c.l.bf16 %v9065_v46 }
 0x26a   : > { %v2261_v7 = vadd.f32 %v2260_v20, %v9058_v23  ;;  %v2115_v6 = vadd.f32 %v2114_v1, %v9060_v41  ;;  %v2136_v42 = vadd.f32 %v2135_v43, %v9061_v45  ;;  %v9067_v48 = vunpack.c.h.bf16 %v9065_v46 }
 0x26b   : > { %v2157_v5 = vadd.f32 %v2156_v10, %v9063_v12  ;;  %v2178_v32 = vadd.f32 %v2177_v47, %v9064_v13  ;;  %v2199_v27 = vadd.f32 %v2198_v49, %v9066_v3  ;;  %v9069_v20 = vunpack.c.l.bf16 %v9068_v51 }
 0x26c   : > { %v2220_v39 = vadd.f32 %v2219_v11, %v9067_v48  ;;  %v9070_v1 = vunpack.c.h.bf16 %v9068_v51  ;;  %v2116_v54 = vrot.slane %v2115_v6, 4  ;;  %v2137_v43 = vrot.slane %v2136_v42, 4 }
 0x26d   : > { %v2241_v37 = vadd.f32 %v2240_v17, %v9069_v20  ;;  %v2158_v41 = vrot.slane %v2157_v5, 4  ;;  %v2179_v45 = vrot.slane %v2178_v32, 4  ;;  %v2200_v10 = vrot.slane %v2199_v27, 4 }
 0x26e   : > { %v2262_v23 = vadd.f32 %v2261_v7, %v9070_v1  ;;  %v2221_v12 = vrot.slane %v2220_v39, 4  ;;  %v2117_v13 = vadd.f32 %v2116_v54, %v2115_v6  ;;  %v2138_v24 = vadd.f32 %v2137_v43, %v2136_v42 }
 0x26f   : > { %v2242_v36 = vrot.slane %v2241_v37, 4  ;;  %v2159_v49 = vadd.f32 %v2158_v41, %v2157_v5  ;;  %v2180_v3 = vadd.f32 %v2179_v45, %v2178_v32  ;;  %v2201_v46 = vadd.f32 %v2200_v10, %v2199_v27 }
 0x270   : > { %v2263_v47 = vrot.slane %v2262_v23, 4  ;;  %v2222_v11 = vadd.f32 %v2221_v12, %v2220_v39  ;;  %v2118_v17 = vrot.slane %v2117_v13, 2  ;;  %v2139_v20 = vrot.slane %v2138_v24, 2 }
 0x271   : > { %v2243_v48 = vadd.f32 %v2242_v36, %v2241_v37  ;;  %v2160_v51 = vrot.slane %v2159_v49, 2  ;;  %v2181_v7 = vrot.slane %v2180_v3, 2  ;;  %v2202_v1 = vrot.slane %v2201_v46, 2 }
 0x272   : > { %v2264_v2 = vadd.f32 %v2263_v47, %v2262_v23  ;;  %v2223_v63 = vrot.slane %v2222_v11, 2  ;;  %v2119_v53 = vadd.f32 %v2118_v17, %v2117_v13  ;;  %v2140_v22 = vadd.f32 %v2139_v20, %v2138_v24 }
 0x273   : > { %v2244_v61 = vrot.slane %v2243_v48, 2  ;;  %v2161_v0 = vadd.f32 %v2160_v51, %v2159_v49  ;;  %v2182_v4 = vadd.f32 %v2181_v7, %v2180_v3  ;;  %v2203_v6 = vadd.f32 %v2202_v1, %v2201_v46  ;;  %v9076_v49 = vld [vmem:[#allocation262_spill] sm:$0xff] }
 0x274   : > { %v2265_v55 = vrot.slane %v2264_v2, 2  ;;  %v2224_v42 = vadd.f32 %v2223_v63, %v2222_v11  ;;  %v2120_v27 = vrot.slane %v2119_v53, 1  ;;  %v2141_v39 = vrot.slane %v2140_v22, 1  ;;  %v9080_v11 = vld [vmem:[#allocation305_spill] sm:$0xff] }
 0x275   : > { %v2245_v5 = vadd.f32 %v2244_v61, %v2243_v48  ;;  %v2162_v37 = vrot.slane %v2161_v0, 1  ;;  %v2183_v23 = vrot.slane %v2182_v4, 1  ;;  %v9071_v54 = vrot.slane %v6452_v25, 1 }
 0x276   : > { %v6730_v32 = vadd.f32 %v2265_v55, %v2264_v2  ;;  %v2204_v41 = vrot.slane %v2203_v6, 1  ;;  %v2225_v45 = vrot.slane %v2224_v42, 1  ;;  %v6737_v24 = vadd.f32 %v2120_v27, %v2119_v53 }
 0x277   : > { %v6735_v43 = vadd.f32 %v9071_v54, %v6452_v25  ;;  %v2246_v10 = vrot.slane %v2245_v5, 1  ;;  %v6739_v12 = vadd.f32 %v2141_v39, %v2140_v22  ;;  %v6741_v63 = vadd.f32 %v2162_v37, %v2161_v0  ;;  %v9074_v25 = vld [vmem:[#allocation259_spill] sm:$0xff] }
 0x278   : > { %v6744_v61 = vadd.f32 %v2183_v23, %v2182_v4  ;;  %v6746_v2 = vadd.f32 %v2204_v41, %v2203_v6  ;;  %v6748_v36 = vadd.f32 %v2225_v45, %v2224_v42  ;;  %v9075_v13 = vunpack.c.l.bf16 %v9074_v25  ;;  %v9082_v4 = vld [vmem:[#allocation308_spill] sm:$0xff]  ;;  %v9086_v6 = vld [vmem:[#allocation306_spill] sm:$0xff]  ;;  %v9092_v41 = vld [vmem:[#allocation307_spill] sm:$0xff] }
 0x279   : > { %9072 = vst [vmem:[#allocation21_spill] sm:$0xff] %v6741_v63  ;;  %v6750_v47 = vadd.f32 %v2246_v10, %v2245_v5  ;;  %v9077_v3 = vunpack.c.l.bf16 %v9076_v49  ;;  %v9078_v22 = vunpack.c.h.bf16 %v9074_v25  ;;  %v9079_v0 = vunpack.c.h.bf16 %v9076_v49  ;;  %v9088_v5 = vld [vmem:[#allocation309_spill] sm:$0xff]  ;;  %v9094_v10 = vld [vmem:[#allocation310_spill] sm:$0xff] }
 0x27a   : > { %9073 = vst [vmem:[#allocation56_spill] sm:$0xff] %v6744_v61  ;;  %v9081_v48 = vunpack.c.l.bf16 %v9080_v11  ;;  %v9083_v17 = vunpack.c.l.bf16 %v9082_v4  ;;  %v9084_v51 = vunpack.c.h.bf16 %v9080_v11  ;;  %v9085_v7 = vunpack.c.h.bf16 %v9082_v4 }
 0x27b   : > { %v2269_v53 = vadd.f32 %v9077_v3, %v9075_v13  ;;  %v2290_v46 = vadd.f32 %v9079_v0, %v9078_v22  ;;  %v9087_v42 = vunpack.c.l.bf16 %v9086_v6  ;;  %v9089_v27 = vunpack.c.l.bf16 %v9088_v5  ;;  %v9098_v0 = vld [vmem:[#allocation265_spill] sm:$0xff] }
 0x27c   : > { %v2311_v20 = vadd.f32 %v9083_v17, %v9081_v48  ;;  %v2332_v1 = vadd.f32 %v9085_v7, %v9084_v51  ;;  %v9090_v37 = vunpack.c.h.bf16 %v9086_v6  ;;  %v9091_v23 = vunpack.c.h.bf16 %v9088_v5  ;;  %v9101_v51 = vld [vmem:[#allocation311_spill] sm:$0xff] }
 0x27d   : > { %v2353_v39 = vadd.f32 %v9089_v27, %v9087_v42  ;;  %v9093_v45 = vunpack.c.l.bf16 %v9092_v41  ;;  %v9095_v25 = vunpack.c.l.bf16 %v9094_v10  ;;  %v9096_v49 = vunpack.c.h.bf16 %v9092_v41  ;;  %v9104_v27 = vld [vmem:[#allocation312_spill] sm:$0xff] }
 0x27e   : > { %v2374_v54 = vadd.f32 %v9091_v23, %v9090_v37  ;;  %v9097_v3 = vunpack.c.h.bf16 %v9094_v10  ;;  %v9099_v11 = vunpack.c.l.bf16 %v9098_v0  ;;  %v9100_v4 = vunpack.c.h.bf16 %v9098_v0  ;;  %v9107_v10 = vld [vmem:[#allocation313_spill] sm:$0xff]  ;;  %v9110_v0 = vld [vmem:[#allocation268_spill] sm:$0xff] }
 0x27f   : > { %v2395_v13 = vadd.f32 %v9095_v25, %v9093_v45  ;;  %v9102_v7 = vunpack.c.l.bf16 %v9101_v51  ;;  %v9103_v42 = vunpack.c.h.bf16 %v9101_v51  ;;  %v9105_v37 = vunpack.c.l.bf16 %v9104_v27  ;;  %v9113_v51 = vld [vmem:[#allocation314_spill] sm:$0xff] }
 0x280   : > { %v2416_v22 = vadd.f32 %v9097_v3, %v9096_v49  ;;  %v2270_v48 = vadd.f32 %v2269_v53, %v9099_v11  ;;  %v2291_v17 = vadd.f32 %v2290_v46, %v9100_v4  ;;  %v9106_v41 = vunpack.c.h.bf16 %v9104_v27  ;;  %v9116_v27 = vld [vmem:[#allocation315_spill] sm:$0xff] }
 0x281   : > { %v2312_v6 = vadd.f32 %v2311_v20, %v9102_v7  ;;  %v2333_v5 = vadd.f32 %v2332_v1, %v9103_v42  ;;  %v2354_v23 = vadd.f32 %v2353_v39, %v9105_v37  ;;  %v9108_v25 = vunpack.c.l.bf16 %v9107_v10 }
 0x282   : > { %v2375_v45 = vadd.f32 %v2374_v54, %v9106_v41  ;;  %v9109_v53 = vunpack.c.h.bf16 %v9107_v10  ;;  %v9111_v46 = vunpack.c.l.bf16 %v9110_v0  ;;  %v9112_v20 = vunpack.c.h.bf16 %v9110_v0  ;;  %v9119_v10 = vld [vmem:[#allocation316_spill] sm:$0xff]  ;;  %v9122_v0 = vld [vmem:[#allocation271_spill] sm:$0xff] }
 0x283   : > { %v2396_v49 = vadd.f32 %v2395_v13, %v9108_v25  ;;  %v9114_v1 = vunpack.c.l.bf16 %v9113_v51  ;;  %v9115_v39 = vunpack.c.h.bf16 %v9113_v51  ;;  %v9117_v54 = vunpack.c.l.bf16 %v9116_v27  ;;  %v9125_v51 = vld [vmem:[#allocation317_spill] sm:$0xff] }
 0x284   : > { %v2417_v3 = vadd.f32 %v2416_v22, %v9109_v53  ;;  %v2271_v11 = vadd.f32 %v2270_v48, %v9111_v46  ;;  %v2292_v4 = vadd.f32 %v2291_v17, %v9112_v20  ;;  %v9118_v13 = vunpack.c.h.bf16 %v9116_v27  ;;  %v9128_v27 = vld [vmem:[#allocation318_spill] sm:$0xff] }
 0x285   : > { %v2313_v7 = vadd.f32 %v2312_v6, %v9114_v1  ;;  %v2334_v42 = vadd.f32 %v2333_v5, %v9115_v39  ;;  %v2355_v37 = vadd.f32 %v2354_v23, %v9117_v54  ;;  %v9120_v22 = vunpack.c.l.bf16 %v9119_v10 }
 0x286   : > { %v2376_v41 = vadd.f32 %v2375_v45, %v9118_v13  ;;  %v9121_v48 = vunpack.c.h.bf16 %v9119_v10  ;;  %v9123_v17 = vunpack.c.l.bf16 %v9122_v0  ;;  %v9124_v6 = vunpack.c.h.bf16 %v9122_v0  ;;  %v9131_v10 = vld [vmem:[#allocation319_spill] sm:$0xff]  ;;  %v9134_v0 = vld [vmem:[#allocation274_spill] sm:$0xff] }
 0x287   : > { %v2397_v25 = vadd.f32 %v2396_v49, %v9120_v22  ;;  %v9126_v5 = vunpack.c.l.bf16 %v9125_v51  ;;  %v9127_v23 = vunpack.c.h.bf16 %v9125_v51  ;;  %v9129_v45 = vunpack.c.l.bf16 %v9128_v27  ;;  %v9137_v51 = vld [vmem:[#allocation320_spill] sm:$0xff] }
 0x288   : > { %v2418_v53 = vadd.f32 %v2417_v3, %v9121_v48  ;;  %v2272_v46 = vadd.f32 %v2271_v11, %v9123_v17  ;;  %v2293_v20 = vadd.f32 %v2292_v4, %v9124_v6  ;;  %v9130_v49 = vunpack.c.h.bf16 %v9128_v27  ;;  %v9140_v27 = vld [vmem:[#allocation321_spill] sm:$0xff] }
 0x289   : > { %v2314_v1 = vadd.f32 %v2313_v7, %v9126_v5  ;;  %v2335_v39 = vadd.f32 %v2334_v42, %v9127_v23  ;;  %v2356_v54 = vadd.f32 %v2355_v37, %v9129_v45  ;;  %v9132_v3 = vunpack.c.l.bf16 %v9131_v10 }
 0x28a   : > { %v2377_v13 = vadd.f32 %v2376_v41, %v9130_v49  ;;  %v9133_v11 = vunpack.c.h.bf16 %v9131_v10  ;;  %v9135_v4 = vunpack.c.l.bf16 %v9134_v0  ;;  %v9136_v7 = vunpack.c.h.bf16 %v9134_v0  ;;  %v9143_v10 = vld [vmem:[#allocation322_spill] sm:$0xff]  ;;  %v9146_v0 = vld [vmem:[#allocation277_spill] sm:$0xff] }
 0x28b   : > { %v2398_v22 = vadd.f32 %v2397_v25, %v9132_v3  ;;  %v9138_v42 = vunpack.c.l.bf16 %v9137_v51  ;;  %v9139_v37 = vunpack.c.h.bf16 %v9137_v51  ;;  %v9141_v41 = vunpack.c.l.bf16 %v9140_v27  ;;  %v9149_v51 = vld [vmem:[#allocation323_spill] sm:$0xff] }
 0x28c   : > { %v2419_v48 = vadd.f32 %v2418_v53, %v9133_v11  ;;  %v2273_v17 = vadd.f32 %v2272_v46, %v9135_v4  ;;  %v2294_v6 = vadd.f32 %v2293_v20, %v9136_v7  ;;  %v9142_v25 = vunpack.c.h.bf16 %v9140_v27  ;;  %v9152_v27 = vld [vmem:[#allocation324_spill] sm:$0xff] }
 0x28d   : > { %v2315_v5 = vadd.f32 %v2314_v1, %v9138_v42  ;;  %v2336_v23 = vadd.f32 %v2335_v39, %v9139_v37  ;;  %v2357_v45 = vadd.f32 %v2356_v54, %v9141_v41  ;;  %v9144_v53 = vunpack.c.l.bf16 %v9143_v10 }
 0x28e   : > { %v2378_v49 = vadd.f32 %v2377_v13, %v9142_v25  ;;  %v9145_v46 = vunpack.c.h.bf16 %v9143_v10  ;;  %v9147_v20 = vunpack.c.l.bf16 %v9146_v0  ;;  %v9148_v1 = vunpack.c.h.bf16 %v9146_v0  ;;  %v9155_v10 = vld [vmem:[#allocation325_spill] sm:$0xff]  ;;  %v9158_v0 = vld [vmem:[#allocation280_spill] sm:$0xff] }
 0x28f   : > { %v2399_v3 = vadd.f32 %v2398_v22, %v9144_v53  ;;  %v9150_v39 = vunpack.c.l.bf16 %v9149_v51  ;;  %v9151_v54 = vunpack.c.h.bf16 %v9149_v51  ;;  %v9153_v13 = vunpack.c.l.bf16 %v9152_v27  ;;  %v9161_v51 = vld [vmem:[#allocation326_spill] sm:$0xff] }
 0x290   : > { %v2420_v11 = vadd.f32 %v2419_v48, %v9145_v46  ;;  %v2274_v4 = vadd.f32 %v2273_v17, %v9147_v20  ;;  %v2295_v7 = vadd.f32 %v2294_v6, %v9148_v1  ;;  %v9154_v22 = vunpack.c.h.bf16 %v9152_v27  ;;  %v9164_v27 = vld [vmem:[#allocation327_spill] sm:$0xff] }
 0x291   : > { %v2316_v42 = vadd.f32 %v2315_v5, %v9150_v39  ;;  %v2337_v37 = vadd.f32 %v2336_v23, %v9151_v54  ;;  %v2358_v41 = vadd.f32 %v2357_v45, %v9153_v13  ;;  %v9156_v48 = vunpack.c.l.bf16 %v9155_v10 }
 0x292   : > { %v2379_v25 = vadd.f32 %v2378_v49, %v9154_v22  ;;  %v9157_v17 = vunpack.c.h.bf16 %v9155_v10  ;;  %v9159_v6 = vunpack.c.l.bf16 %v9158_v0  ;;  %v9160_v5 = vunpack.c.h.bf16 %v9158_v0  ;;  %v9167_v10 = vld [vmem:[#allocation328_spill] sm:$0xff]  ;;  %v9170_v0 = vld [vmem:[#allocation283_spill] sm:$0xff] }
 0x293   : > { %v2400_v53 = vadd.f32 %v2399_v3, %v9156_v48  ;;  %v9162_v23 = vunpack.c.l.bf16 %v9161_v51  ;;  %v9163_v45 = vunpack.c.h.bf16 %v9161_v51  ;;  %v9165_v49 = vunpack.c.l.bf16 %v9164_v27  ;;  %v9173_v51 = vld [vmem:[#allocation329_spill] sm:$0xff] }
 0x294   : > { %v2421_v46 = vadd.f32 %v2420_v11, %v9157_v17  ;;  %v2275_v20 = vadd.f32 %v2274_v4, %v9159_v6  ;;  %v2296_v1 = vadd.f32 %v2295_v7, %v9160_v5  ;;  %v9166_v3 = vunpack.c.h.bf16 %v9164_v27  ;;  %v9176_v27 = vld [vmem:[#allocation330_spill] sm:$0xff] }
 0x295   : > { %v2317_v39 = vadd.f32 %v2316_v42, %v9162_v23  ;;  %v2338_v54 = vadd.f32 %v2337_v37, %v9163_v45  ;;  %v2359_v13 = vadd.f32 %v2358_v41, %v9165_v49  ;;  %v9168_v11 = vunpack.c.l.bf16 %v9167_v10 }
 0x296   : > { %v2380_v22 = vadd.f32 %v2379_v25, %v9166_v3  ;;  %v9169_v4 = vunpack.c.h.bf16 %v9167_v10  ;;  %v9171_v7 = vunpack.c.l.bf16 %v9170_v0  ;;  %v9172_v42 = vunpack.c.h.bf16 %v9170_v0  ;;  %v9179_v10 = vld [vmem:[#allocation331_spill] sm:$0xff]  ;;  %v9182_v0 = vld [vmem:[#allocation286_spill] sm:$0xff] }
 0x297   : > { %v2401_v48 = vadd.f32 %v2400_v53, %v9168_v11  ;;  %v9174_v37 = vunpack.c.l.bf16 %v9173_v51  ;;  %v9175_v41 = vunpack.c.h.bf16 %v9173_v51  ;;  %v9177_v25 = vunpack.c.l.bf16 %v9176_v27  ;;  %v9185_v51 = vld [vmem:[#allocation332_spill] sm:$0xff] }
 0x298   : > { %v2422_v17 = vadd.f32 %v2421_v46, %v9169_v4  ;;  %v2276_v6 = vadd.f32 %v2275_v20, %v9171_v7  ;;  %v2297_v5 = vadd.f32 %v2296_v1, %v9172_v42  ;;  %v9178_v53 = vunpack.c.h.bf16 %v9176_v27  ;;  %v9188_v27 = vld [vmem:[#allocation333_spill] sm:$0xff] }
 0x299   : > { %v2318_v23 = vadd.f32 %v2317_v39, %v9174_v37  ;;  %v2339_v45 = vadd.f32 %v2338_v54, %v9175_v41  ;;  %v2360_v49 = vadd.f32 %v2359_v13, %v9177_v25  ;;  %v9180_v46 = vunpack.c.l.bf16 %v9179_v10 }
 0x29a   : > { %v2381_v3 = vadd.f32 %v2380_v22, %v9178_v53  ;;  %v9181_v20 = vunpack.c.h.bf16 %v9179_v10  ;;  %v9183_v1 = vunpack.c.l.bf16 %v9182_v0  ;;  %v9184_v39 = vunpack.c.h.bf16 %v9182_v0  ;;  %v9191_v10 = vld [vmem:[#allocation334_spill] sm:$0xff]  ;;  %v9194_v0 = vld [vmem:[#allocation289_spill] sm:$0xff] }
 0x29b   : > { %v2402_v11 = vadd.f32 %v2401_v48, %v9180_v46  ;;  %v9186_v54 = vunpack.c.l.bf16 %v9185_v51  ;;  %v9187_v13 = vunpack.c.h.bf16 %v9185_v51  ;;  %v9189_v22 = vunpack.c.l.bf16 %v9188_v27  ;;  %v9197_v51 = vld [vmem:[#allocation335_spill] sm:$0xff] }
 0x29c   : > { %v2423_v4 = vadd.f32 %v2422_v17, %v9181_v20  ;;  %v2277_v7 = vadd.f32 %v2276_v6, %v9183_v1  ;;  %v2298_v42 = vadd.f32 %v2297_v5, %v9184_v39  ;;  %v9190_v48 = vunpack.c.h.bf16 %v9188_v27  ;;  %v9200_v27 = vld [vmem:[#allocation336_spill] sm:$0xff] }
 0x29d   : > { %v2319_v37 = vadd.f32 %v2318_v23, %v9186_v54  ;;  %v2340_v41 = vadd.f32 %v2339_v45, %v9187_v13  ;;  %v2361_v25 = vadd.f32 %v2360_v49, %v9189_v22  ;;  %v9192_v17 = vunpack.c.l.bf16 %v9191_v10 }
 0x29e   : > { %v2382_v53 = vadd.f32 %v2381_v3, %v9190_v48  ;;  %v9193_v6 = vunpack.c.h.bf16 %v9191_v10  ;;  %v9195_v5 = vunpack.c.l.bf16 %v9194_v0  ;;  %v9196_v23 = vunpack.c.h.bf16 %v9194_v0  ;;  %v9203_v10 = vld [vmem:[#allocation337_spill] sm:$0xff]  ;;  %v9206_v0 = vld [vmem:[#allocation292_spill] sm:$0xff] }
 0x29f   : > { %v2403_v46 = vadd.f32 %v2402_v11, %v9192_v17  ;;  %v9198_v45 = vunpack.c.l.bf16 %v9197_v51  ;;  %v9199_v49 = vunpack.c.h.bf16 %v9197_v51  ;;  %v9201_v3 = vunpack.c.l.bf16 %v9200_v27  ;;  %v9209_v51 = vld [vmem:[#allocation338_spill] sm:$0xff] }
 0x2a0   : > { %v2424_v20 = vadd.f32 %v2423_v4, %v9193_v6  ;;  %v2278_v1 = vadd.f32 %v2277_v7, %v9195_v5  ;;  %v2299_v39 = vadd.f32 %v2298_v42, %v9196_v23  ;;  %v9202_v11 = vunpack.c.h.bf16 %v9200_v27  ;;  %v9212_v27 = vld [vmem:[#allocation339_spill] sm:$0xff] }
 0x2a1   : > { %v2320_v54 = vadd.f32 %v2319_v37, %v9198_v45  ;;  %v2341_v13 = vadd.f32 %v2340_v41, %v9199_v49  ;;  %v2362_v22 = vadd.f32 %v2361_v25, %v9201_v3  ;;  %v9204_v4 = vunpack.c.l.bf16 %v9203_v10 }
 0x2a2   : > { %v2383_v48 = vadd.f32 %v2382_v53, %v9202_v11  ;;  %v9205_v7 = vunpack.c.h.bf16 %v9203_v10  ;;  %v9207_v42 = vunpack.c.l.bf16 %v9206_v0  ;;  %v9208_v37 = vunpack.c.h.bf16 %v9206_v0 }
 0x2a3   : > { %v2404_v17 = vadd.f32 %v2403_v46, %v9204_v4  ;;  %v9210_v41 = vunpack.c.l.bf16 %v9209_v51  ;;  %v9211_v25 = vunpack.c.h.bf16 %v9209_v51  ;;  %v9213_v53 = vunpack.c.l.bf16 %v9212_v27 }
 0x2a4   : > { %v2425_v6 = vadd.f32 %v2424_v20, %v9205_v7  ;;  %v2279_v5 = vadd.f32 %v2278_v1, %v9207_v42  ;;  %v2300_v23 = vadd.f32 %v2299_v39, %v9208_v37  ;;  %v9214_v46 = vunpack.c.h.bf16 %v9212_v27  ;;  %v9217_v7 = vld [vmem:[#allocation295_spill] sm:$0xff]  ;;  %v9220_v37 = vld [vmem:[#allocation340_spill] sm:$0xff] }
 0x2a5   : > { %v2321_v45 = vadd.f32 %v2320_v54, %v9210_v41  ;;  %v2342_v49 = vadd.f32 %v2341_v13, %v9211_v25  ;;  %v2363_v3 = vadd.f32 %v2362_v22, %v9213_v53  ;;  %v9215_v20 = vunpack.c.l.bf16 %v5288_v26  ;;  %v9223_v25 = vld [vmem:[#allocation341_spill] sm:$0xff] }
 0x2a6   : > { %v2384_v11 = vadd.f32 %v2383_v48, %v9214_v46  ;;  %v9216_v1 = vunpack.c.h.bf16 %v5288_v26  ;;  %v9218_v39 = vunpack.c.l.bf16 %v9217_v7  ;;  %v9219_v54 = vunpack.c.h.bf16 %v9217_v7  ;;  %v9226_v26 = vld [vmem:[#allocation342_spill] sm:$0xff] }
 0x2a7   : > { %v2405_v10 = vadd.f32 %v2404_v17, %v9215_v20  ;;  %v9221_v13 = vunpack.c.l.bf16 %v9220_v37  ;;  %v9222_v22 = vunpack.c.h.bf16 %v9220_v37  ;;  %v9224_v48 = vunpack.c.l.bf16 %v9223_v25 }
 0x2a8   : > { %v2426_v4 = vadd.f32 %v2425_v6, %v9216_v1  ;;  %v2280_v0 = vadd.f32 %v2279_v5, %v9218_v39  ;;  %v2301_v42 = vadd.f32 %v2300_v23, %v9219_v54  ;;  %v9225_v17 = vunpack.c.h.bf16 %v9223_v25  ;;  %v9229_v1 = vld [vmem:[#allocation298_spill] sm:$0xff] }
 0x2a9   : > { %v2322_v51 = vadd.f32 %v2321_v45, %v9221_v13  ;;  %v2343_v41 = vadd.f32 %v2342_v49, %v9222_v22  ;;  %v2364_v27 = vadd.f32 %v2363_v3, %v9224_v48  ;;  %v9227_v6 = vunpack.c.l.bf16 %v9226_v26 }
 0x2aa   : > { %v2385_v53 = vadd.f32 %v2384_v11, %v9225_v17  ;;  %v9228_v5 = vunpack.c.h.bf16 %v9226_v26  ;;  %v9230_v23 = vunpack.c.l.bf16 %v9229_v1  ;;  %v9231_v45 = vunpack.c.h.bf16 %v9229_v1  ;;  %v9238_v17 = vld [vmem:[#allocation301_spill] sm:$0xff] }
 0x2ab   : > { %v2406_v46 = vadd.f32 %v2405_v10, %v9227_v6  ;;  %v9232_v49 = vunpack.c.l.bf16 %v5308_v38  ;;  %v9233_v3 = vunpack.c.h.bf16 %v5308_v38  ;;  %v9234_v11 = vunpack.c.l.bf16 %v5315_v44  ;;  %v9241_v38 = vld [vmem:[#allocation343_spill] sm:$0xff] }
 0x2ac   : > { %v2427_v20 = vadd.f32 %v2426_v4, %v9228_v5  ;;  %v2281_v7 = vadd.f32 %v2280_v0, %v9230_v23  ;;  %v2302_v39 = vadd.f32 %v2301_v42, %v9231_v45  ;;  %v9235_v10 = vunpack.c.h.bf16 %v5315_v44  ;;  %v9244_v44 = vld [vmem:[#allocation344_spill] sm:$0xff] }
 0x2ad   : > { %v2323_v54 = vadd.f32 %v2322_v51, %v9232_v49  ;;  %v2344_v37 = vadd.f32 %v2343_v41, %v9233_v3  ;;  %v2365_v13 = vadd.f32 %v2364_v27, %v9234_v11  ;;  %v9236_v4 = vunpack.c.l.bf16 %v5318_v21  ;;  %v9250_v11 = vld [vmem:[#allocation304_spill] sm:$0xff] }
 0x2ae   : > { %v2386_v22 = vadd.f32 %v2385_v53, %v9235_v10  ;;  %v9237_v0 = vunpack.c.h.bf16 %v5318_v21  ;;  %v9239_v42 = vunpack.c.l.bf16 %v9238_v17  ;;  %v9240_v51 = vunpack.c.h.bf16 %v9238_v17  ;;  %v9247_v21 = vld [vmem:[#allocation345_spill] sm:$0xff] }
 0x2af   : > { %v2407_v25 = vadd.f32 %v2406_v46, %v9236_v4  ;;  %v9242_v41 = vunpack.c.l.bf16 %v9241_v38  ;;  %v9243_v27 = vunpack.c.h.bf16 %v9241_v38  ;;  %v9245_v53 = vunpack.c.l.bf16 %v9244_v44 }
 0x2b0   : > { %v2428_v48 = vadd.f32 %v2427_v20, %v9237_v0  ;;  %v2282_v26 = vadd.f32 %v2281_v7, %v9239_v42  ;;  %v2303_v6 = vadd.f32 %v2302_v39, %v9240_v51  ;;  %v9246_v46 = vunpack.c.h.bf16 %v9244_v44  ;;  %v9253_v0 = vld [vmem:[#allocation346_spill] sm:$0xff]  ;;  %v9256_v51 = vld [vmem:[#allocation347_spill] sm:$0xff] }
 0x2b1   : > { %v2324_v5 = vadd.f32 %v2323_v54, %v9242_v41  ;;  %v2345_v1 = vadd.f32 %v2344_v37, %v9243_v27  ;;  %v2366_v23 = vadd.f32 %v2365_v13, %v9245_v53  ;;  %v9248_v20 = vunpack.c.l.bf16 %v9247_v21 }
 0x2b2   : > { %v2387_v45 = vadd.f32 %v2386_v22, %v9246_v46  ;;  %v9249_v7 = vunpack.c.h.bf16 %v9247_v21  ;;  %v9251_v39 = vunpack.c.l.bf16 %v9250_v11  ;;  %v9252_v54 = vunpack.c.h.bf16 %v9250_v11 }
 0x2b3   : > { %v2408_v49 = vadd.f32 %v2407_v25, %v9248_v20  ;;  %v9254_v37 = vunpack.c.l.bf16 %v9253_v0  ;;  %v9255_v13 = vunpack.c.h.bf16 %v9253_v0  ;;  %v9257_v22 = vunpack.c.l.bf16 %v9256_v51 }
 0x2b4   : > { %v2429_v3 = vadd.f32 %v2428_v48, %v9249_v7  ;;  %v2283_v10 = vadd.f32 %v2282_v26, %v9251_v39  ;;  %v2304_v4 = vadd.f32 %v2303_v6, %v9252_v54  ;;  %v9258_v25 = vunpack.c.h.bf16 %v9256_v51 }
 0x2b5   : > { %v2325_v17 = vadd.f32 %v2324_v5, %v9254_v37  ;;  %v2346_v42 = vadd.f32 %v2345_v1, %v9255_v13  ;;  %v2367_v38 = vadd.f32 %v2366_v23, %v9257_v22  ;;  %v9259_v48 = vunpack.c.l.bf16 %v5348_v9 }
 0x2b6   : > { %v2388_v41 = vadd.f32 %v2387_v45, %v9258_v25  ;;  %v9260_v26 = vunpack.c.h.bf16 %v5348_v9  ;;  %v2284_v53 = vrot.slane %v2283_v10, 4  ;;  %v2305_v6 = vrot.slane %v2304_v4, 4 }
 0x2b7   : > { %v2409_v27 = vadd.f32 %v2408_v49, %v9259_v48  ;;  %v2326_v46 = vrot.slane %v2325_v17, 4  ;;  %v2347_v21 = vrot.slane %v2346_v42, 4  ;;  %v2368_v5 = vrot.slane %v2367_v38, 4 }
 0x2b8   : > { %v2430_v44 = vadd.f32 %v2429_v3, %v9260_v26  ;;  %v2389_v20 = vrot.slane %v2388_v41, 4  ;;  %v2285_v11 = vadd.f32 %v2284_v53, %v2283_v10  ;;  %v2306_v39 = vadd.f32 %v2305_v6, %v2304_v4 }
 0x2b9   : > { %v2410_v7 = vrot.slane %v2409_v27, 4  ;;  %v2327_v23 = vadd.f32 %v2326_v46, %v2325_v17  ;;  %v2348_v54 = vadd.f32 %v2347_v21, %v2346_v42  ;;  %v2369_v0 = vadd.f32 %v2368_v5, %v2367_v38 }
 0x2ba   : > { %v2431_v1 = vrot.slane %v2430_v44, 4  ;;  %v2390_v45 = vadd.f32 %v2389_v20, %v2388_v41  ;;  %v2286_v49 = vrot.slane %v2285_v11, 2  ;;  %v2307_v51 = vrot.slane %v2306_v39, 2 }
 0x2bb   : > { %v2411_v37 = vadd.f32 %v2410_v7, %v2409_v27  ;;  %v2328_v9 = vrot.slane %v2327_v23, 2  ;;  %v2349_v3 = vrot.slane %v2348_v54, 2  ;;  %v2370_v22 = vrot.slane %v2369_v0, 2 }
 0x2bc   : > { %v2432_v13 = vadd.f32 %v2431_v1, %v2430_v44  ;;  %v2391_v25 = vrot.slane %v2390_v45, 2  ;;  %v2287_v55 = vadd.f32 %v2286_v49, %v2285_v11  ;;  %v2308_v61 = vadd.f32 %v2307_v51, %v2306_v39  ;;  %v9262_v49 = vld [vmem:[#allocation13_spill] sm:$0xff] }
 0x2bd   : > { %v2412_v48 = vrot.slane %v2411_v37, 2  ;;  %v2329_v63 = vadd.f32 %v2328_v9, %v2327_v23  ;;  %v2350_v60 = vadd.f32 %v2349_v3, %v2348_v54  ;;  %v2371_v10 = vadd.f32 %v2370_v22, %v2369_v0  ;;  %v9264_v9 = vld [vmem:[#allocation16_spill] sm:$0xff]  ;;  %v9265_v22 = vld [vmem:[#allocation14_spill] sm:$0xff] }
 0x2be   : > { %v2433_v26 = vrot.slane %v2432_v13, 2  ;;  %v2392_v4 = vadd.f32 %v2391_v25, %v2390_v45  ;;  %v2288_v38 = vrot.slane %v2287_v55, 1  ;;  %v2309_v41 = vrot.slane %v2308_v61, 1  ;;  %v1426_v45 = vld [vmem:[#allocation2] sm:$0xff] }
 0x2bf   : > { %v2413_v17 = vadd.f32 %v2412_v48, %v2411_v37  ;;  %v2330_v27 = vrot.slane %v2329_v63, 1  ;;  %v2351_v44 = vrot.slane %v2350_v60, 1  ;;  %v9261_v53 = vrot.slane %v6730_v32, 1 }
 0x2c0   : > { %v7008_v42 = vadd.f32 %v2433_v26, %v2432_v13  ;;  %v2372_v46 = vrot.slane %v2371_v10, 1  ;;  %v2393_v21 = vrot.slane %v2392_v4, 1  ;;  %v7013_v20 = vadd.f32 %v2288_v38, %v2287_v55  ;;  %v9267_v26 = vld [vmem:[#allocation18_spill] sm:$0xff] }
 0x2c1   : > { %v2268_v6 = vadd.f32 %v9261_v53, %v6730_v32  ;;  %v2414_v5 = vrot.slane %v2413_v17, 1  ;;  %v7015_v7 = vadd.f32 %v2309_v41, %v2308_v61  ;;  %v2331_v1 = vadd.f32 %v2330_v27, %v2329_v63 }
 0x2c2   : > { %v2435_v11 = vrot.slane %v7008_v42, 1  ;;  %v2352_v39 = vadd.f32 %v2351_v44, %v2350_v60  ;;  %v2373_v23 = vadd.f32 %v2372_v46, %v2371_v10  ;;  %v2394_v54 = vadd.f32 %v2393_v21, %v2392_v4  ;;  %v9268_v4 = vld [vmem:[#allocation17_spill] sm:$0xff]  ;;  %v9269_v44 = vld [vmem:[#allocation19_spill] sm:$0xff] }
 0x2c3   : > { %v7018_v0 = vadd.f32 %v2414_v5, %v2413_v17  ;;  %v2486_v32 = vsel %vm2485_vm0, %v5638_v33, %v5625_v15  ;;  %v2499_v60 = vsel %vm2485_vm0, %v5901_v57, %v5627_v50  ;;  %v2506_v55 = vsel %vm2485_vm0, %v5903_v14, %v5629_v28  ;;  %v1427_v21 = vld [vmem:[#allocation2 + $0x18] sm:$0xff] }
 0x2c4   : > { %v2488_v63 = vsel %vm2487_vm1, %v5912_v59, %v2486_v32  ;;  %v2513_v61 = vsel %vm2485_vm0, %v5905_v18, %v5632_v31  ;;  %v2500_v33 = vsel %vm2487_vm1, %v5914_v40, %v2499_v60  ;;  %v2507_v59 = vsel %vm2487_vm1, %v5916_v19, %v2506_v55  ;;  %v9271_v5 = vld [vmem:[#allocation21_spill] sm:$0xff] }
 0x2c5   : > { %v2490_v15 = vsel %vm2489_vm2, %v6185_v35, %v2488_v63  ;;  %v2514_v50 = vsel %vm2487_vm1, %v6179_v56, %v2513_v61  ;;  %v2501_v28 = vsel %vm2489_vm2, %v6188_v8, %v2500_v33  ;;  %v2508_v31 = vsel %vm2489_vm2, %v6190_v30, %v2507_v59  ;;  %v1423_v35 = vld [vmem:[#allocation2 + $0x28] sm:$0xff]  ;;  %v1424_v8 = vld [vmem:[#allocation2 + $0x10] sm:$0xff] }
 0x2c6   : > { %v2492_v57 = vsel %vm2491_vm3, %v6459_v52, %v2490_v15  ;;  %v2515_v14 = vsel %vm2489_vm2, %v6192_v34, %v2514_v50  ;;  %v2502_v40 = vsel %vm2491_vm3, %v6461_v58, %v2501_v28  ;;  %v2509_v19 = vsel %vm2491_vm3, %v6463_v29, %v2508_v31 }
 0x2c7   : > { %v2494_v18 = vsel %vm2493_vm4, %v6472_v16, %v2492_v57  ;;  %v2516_v56 = vsel %vm2491_vm3, %v6466_v62, %v2515_v14  ;;  %v2503_v34 = vsel %vm2493_vm4, %v6735_v43, %v2502_v40  ;;  %v2510_v52 = vsel %vm2493_vm4, %v6737_v24, %v2509_v19  ;;  %v1425_v16 = vld [vmem:[#allocation2 + $0x8] sm:$0xff] }
 0x2c8   : > { %v2496_v30 = vsel %vm2495_vm5, %v6746_v2, %v2494_v18  ;;  %v2517_v58 = vsel %vm2493_vm4, %v6739_v12, %v2516_v56  ;;  %v2504_v62 = vsel %vm2495_vm5, %v6748_v36, %v2503_v34  ;;  %v2511_v37 = vsel %vm2495_vm5, %v6750_v47, %v2510_v52  ;;  %v9263_v12 = vld [vmem:[#allocation15_spill] sm:$0xff]  ;;  %v9266_v36 = vld [vmem:[#allocation50_spill] sm:$0xff] }
 0x2c9   : > { %v2498_v29 = vsel %vm2497_vm6, %v2331_v1, %v2496_v30  ;;  %v2518_v2 = vsel %vm2495_vm5, %v2268_v6, %v2517_v58  ;;  %v2505_v43 = vsel %vm2497_vm6, %v2352_v39, %v2504_v62  ;;  %v2512_v13 = vsel %vm2497_vm6, %v2373_v23, %v2511_v37  ;;  %v9270_v6 = vld [vmem:[#allocation53_spill] sm:$0xff]  ;;  %v9272_v39 = vld [vmem:[#allocation20_spill] sm:$0xff] }
 0x2ca   : > { %v2519_v24 = vsel %vm2497_vm6, %v2394_v54, %v2518_v2  ;;  %v2520_v51 = vsel %vm2485_vm0, %v9263_v12, %v9262_v49  ;;  %v2527_v25 = vsel %vm2485_vm0, %v9266_v36, %v9265_v22  ;;  %v2540_v47 = vadd.f32 %v2498_v29, %v1423_v35  ;;  %v1428_v54 = vld [vmem:[#allocation2 + $0x20] sm:$0xff] }
 0x2cb   : > { %v2521_v3 = vsel %vm2487_vm1, %v9264_v9, %v2520_v51  ;;  %v2541_v48 = vadd.f32 %v2505_v43, %v1424_v8  ;;  %v2528_v17 = vsel %vm2487_vm1, %v9268_v4, %v2527_v25  ;;  %v2542_v38 = vadd.f32 %v2512_v13, %v1425_v16 }
 0x2cc   : > { %v2522_v10 = vsel %vm2489_vm2, %v9267_v26, %v2521_v3  ;;  %v2543_v41 = vadd.f32 %v2519_v24, %v1426_v45  ;;  %v2436_v27 = vadd.f32 %v2435_v11, %v7008_v42  ;;  %v2529_v46 = vsel %vm2489_vm2, %v9270_v6, %v2528_v17  ;;  %2546 = vst [vmem:[#allocation2 + $0x28] sm:$0xff] %v2540_v47  ;;  %v9273_v11 = vld [vmem:[#allocation56_spill] sm:$0xff] }
 0x2cd   : > { %v2523_v53 = vsel %vm2491_vm3, %v9269_v44, %v2522_v10  ;;  %2547 = vst [vmem:[#allocation2 + $0x10] sm:$0xff] %v2541_v48  ;;  %v2530_v23 = vsel %vm2491_vm3, %v9272_v39, %v2529_v46  ;;  %2548 = vst [vmem:[#allocation2 + $0x8] sm:$0xff] %v2542_v38 }
 0x2ce   : > { %v2524_v1 = vsel %vm2493_vm4, %v9271_v5, %v2523_v53  ;;  %2549 = vst [vmem:[#allocation2] sm:$0xff] %v2543_v41  ;;  %v2531_v32 = vsel %vm2493_vm4, %v9273_v11, %v2530_v23 }
 0x2cf   : > { %v2525_v42 = vsel %vm2495_vm5, %v7013_v20, %v2524_v1  ;;  %v2532_v60 = vsel %vm2495_vm5, %v7015_v7, %v2531_v32  ;;  %2555 = sbr.rel (%p2984_p8) target bundleno = 996 (0x3e4), region = 52 }
 0x2d0   : > { %v2526_v63 = vsel %vm2497_vm6, %v7018_v0, %v2525_v42  ;;  %v2533_v55 = vsel %vm2497_vm6, %v2436_v27, %v2532_v60 }
 0x2d1   : > { %v2544_v61 = vadd.f32 %v2526_v63, %v1427_v21  ;;  %v2545_v15 = vadd.f32 %v2533_v55, %v1428_v54 }
 0x2d3   : > { %2550 = vst [vmem:[#allocation2 + $0x18] sm:$0xff] %v2544_v61  ;;  %2551 = vst [vmem:[#allocation2 + $0x20] sm:$0xff] %v2545_v15 }
 0x2d4   : > { %v2593_v33 = vld [vmem:[#allocation5 + $0xf8] sm:$0xff]  ;;  %v2592_v57 = vld [vmem:[#allocation5 + $0xf0] sm:$0xff]  ;;  %v2591_v31 = vld [vmem:[#allocation5 + $0xe8] sm:$0xff] }
 0x2d5   : > { %v2625_v20 = vld [vmem:[#allocation5 + $0x1f8] sm:$0xff]  ;;  %2989 = vmatprep.subr.mxu0 %v2593_v33  ;;  %v2624_v0 = vld [vmem:[#allocation5 + $0x1f0] sm:$0xff]  ;;  %v2623_v14 = vld [vmem:[#allocation5 + $0x1e8] sm:$0xff] }
 0x2d6   : > { %v2577_v59 = vld [vmem:[#allocation5 + $0x78] sm:$0xff]  ;;  %3024 = vmatprep.subr.mxu1 %v2625_v20  ;;  %v2576_v7 = vld [vmem:[#allocation5 + $0x70] sm:$0xff]  ;;  %v2575_v18 = vld [vmem:[#allocation5 + $0x68] sm:$0xff] }
 0x2d7   : > { %v2609_v50 = vld [vmem:[#allocation5 + $0x178] sm:$0xff]  ;;  %2990 = vmatpush3.msra.mxu0 %v2577_v59  ;;  %v2608_v28 = vld [vmem:[#allocation5 + $0x170] sm:$0xff]  ;;  %v2607_v40 = vld [vmem:[#allocation5 + $0x168] sm:$0xff] }
 0x2d8   : > { %3025 = vmatpush3.msra.mxu1 %v2609_v50  ;;  %2991 = vmatprep.subr.mxu0 %v2592_v57  ;;  %v2590_v19 = vld [vmem:[#allocation5 + $0xe0] sm:$0xff]  ;;  %v2589_v30 = vld [vmem:[#allocation5 + $0xd8] sm:$0xff]  ;;  %v2588_v16 = vld [vmem:[#allocation5 + $0xd0] sm:$0xff] }
 0x2d9   : > { %3026 = vmatprep.subr.mxu1 %v2624_v0  ;;  %2992 = vmatpush3.msra.mxu0 %v2576_v7  ;;  %v2622_v56 = vld [vmem:[#allocation5 + $0x1e0] sm:$0xff]  ;;  %v2621_v34 = vld [vmem:[#allocation5 + $0x1d8] sm:$0xff]  ;;  %v2620_v45 = vld [vmem:[#allocation5 + $0x1d0] sm:$0xff] }
 0x2da   : > { %3027 = vmatpush3.msra.mxu1 %v2608_v28  ;;  %2993 = vmatprep.subr.mxu0 %v2591_v31  ;;  %v2574_v35 = vld [vmem:[#allocation5 + $0x60] sm:$0xff]  ;;  %v2573_v52 = vld [vmem:[#allocation5 + $0x58] sm:$0xff]  ;;  %v2572_v29 = vld [vmem:[#allocation5 + $0x50] sm:$0xff] }
 0x2db   : > { %3028 = vmatprep.subr.mxu1 %v2623_v14  ;;  %v2606_v8 = vld [vmem:[#allocation5 + $0x160] sm:$0xff]  ;;  %2994 = vmatpush3.msra.mxu0 %v2575_v18  ;;  %v2605_v58 = vld [vmem:[#allocation5 + $0x158] sm:$0xff]  ;;  %v2604_v62 = vld [vmem:[#allocation5 + $0x150] sm:$0xff] }
 0x2dc   : > { %3029 = vmatpush3.msra.mxu1 %v2607_v40  ;;  %2995 = vmatprep.subr.mxu0 %v2590_v19  ;;  %v2587_v37 = vld [vmem:[#allocation5 + $0xc8] sm:$0xff]  ;;  %v2586_v24 = vld [vmem:[#allocation5 + $0xc0] sm:$0xff]  ;;  %v2585_v9 = vld [vmem:[#allocation5 + $0xb8] sm:$0xff] }
 0x2dd   : > { %3030 = vmatprep.subr.mxu1 %v2622_v56  ;;  %2996 = vmatpush3.msra.mxu0 %v2574_v35  ;;  %v2619_v2 = vld [vmem:[#allocation5 + $0x1c8] sm:$0xff]  ;;  %v2618_v49 = vld [vmem:[#allocation5 + $0x1c0] sm:$0xff]  ;;  %v2617_v3 = vld [vmem:[#allocation5 + $0x1b8] sm:$0xff] }
 0x2de   : > { %3031 = vmatpush3.msra.mxu1 %v2606_v8  ;;  %2997 = vmatprep.subr.mxu0 %v2589_v30  ;;  %v2571_v43 = vld [vmem:[#allocation5 + $0x48] sm:$0xff]  ;;  %v2570_v12 = vld [vmem:[#allocation5 + $0x40] sm:$0xff]  ;;  %v2569_v22 = vld [vmem:[#allocation5 + $0x38] sm:$0xff] }
 0x2df   : > { %3032 = vmatprep.subr.mxu1 %v2621_v34  ;;  %2998 = vmatpush3.msra.mxu0 %v2573_v52  ;;  %v2603_v13 = vld [vmem:[#allocation5 + $0x148] sm:$0xff]  ;;  %v2602_v51 = vld [vmem:[#allocation5 + $0x140] sm:$0xff]  ;;  %v2601_v36 = vld [vmem:[#allocation5 + $0x138] sm:$0xff] }
 0x2e0   : > { %3033 = vmatpush3.msra.mxu1 %v2605_v58  ;;  %2999 = vmatprep.subr.mxu0 %v2588_v16  ;;  %v2584_v25 = vld [vmem:[#allocation5 + $0xb0] sm:$0xff]  ;;  %v2583_v10 = vld [vmem:[#allocation5 + $0xa8] sm:$0xff]  ;;  %v2582_v41 = vld [vmem:[#allocation5 + $0xa0] sm:$0xff] }
 0x2e1   : > { %3034 = vmatprep.subr.mxu1 %v2620_v45  ;;  %3000 = vmatpush3.msra.mxu0 %v2572_v29  ;;  %v2616_v47 = vld [vmem:[#allocation5 + $0x1b0] sm:$0xff]  ;;  %v2615_v4 = vld [vmem:[#allocation5 + $0x1a8] sm:$0xff]  ;;  %v2614_v27 = vld [vmem:[#allocation5 + $0x1a0] sm:$0xff] }
 0x2e2   : > { %3035 = vmatpush3.msra.mxu1 %v2604_v62  ;;  %3001 = vmatprep.subr.mxu0 %v2587_v37  ;;  %v2568_v48 = vld [vmem:[#allocation5 + $0x30] sm:$0xff]  ;;  %v2567_v17 = vld [vmem:[#allocation5 + $0x28] sm:$0xff]  ;;  %v2566_v44 = vld [vmem:[#allocation5 + $0x20] sm:$0xff] }
 0x2e3   : > { %3036 = vmatprep.subr.mxu1 %v2619_v2  ;;  %3002 = vmatpush3.msra.mxu0 %v2571_v43  ;;  %v2600_v26 = vld [vmem:[#allocation5 + $0x130] sm:$0xff]  ;;  %v2599_v38 = vld [vmem:[#allocation5 + $0x128] sm:$0xff]  ;;  %v2598_v53 = vld [vmem:[#allocation5 + $0x120] sm:$0xff] }
 0x2e4   : > { %3037 = vmatpush3.msra.mxu1 %v2603_v13  ;;  %3003 = vmatprep.subr.mxu0 %v2586_v24  ;;  %v2581_v6 = vld [vmem:[#allocation5 + $0x98] sm:$0xff]  ;;  %v2580_v1 = vld [vmem:[#allocation5 + $0x90] sm:$0xff]  ;;  %v2579_v42 = vld [vmem:[#allocation5 + $0x88] sm:$0xff] }
 0x2e5   : > { %3038 = vmatprep.subr.mxu1 %v2618_v49  ;;  %3004 = vmatpush3.msra.mxu0 %v2570_v12  ;;  %v2613_v46 = vld [vmem:[#allocation5 + $0x198] sm:$0xff]  ;;  %v2612_v39 = vld [vmem:[#allocation5 + $0x190] sm:$0xff]  ;;  %v2611_v11 = vld [vmem:[#allocation5 + $0x188] sm:$0xff] }
 0x2e6   : > { %3039 = vmatpush3.msra.mxu1 %v2602_v51  ;;  %3005 = vmatprep.subr.mxu0 %v2585_v9  ;;  %v2565_v21 = vld [vmem:[#allocation5 + $0x18] sm:$0xff]  ;;  %v2564_v23 = vld [vmem:[#allocation5 + $0x10] sm:$0xff]  ;;  %v2563_v32 = vld [vmem:[#allocation5 + $0x8] sm:$0xff] }
 0x2e7   : > { %3040 = vmatprep.subr.mxu1 %v2617_v3  ;;  %3006 = vmatpush3.msra.mxu0 %v2569_v22  ;;  %v2597_v5 = vld [vmem:[#allocation5 + $0x118] sm:$0xff]  ;;  %v2596_v54 = vld [vmem:[#allocation5 + $0x110] sm:$0xff]  ;;  %v2595_v63 = vld [vmem:[#allocation5 + $0x108] sm:$0xff] }
 0x2e8   : > { %3041 = vmatpush3.msra.mxu1 %v2601_v36  ;;  %3007 = vmatprep.subr.mxu0 %v2584_v25  ;;  %v2578_v60 = vld [vmem:[#allocation5 + $0x80] sm:$0xff]  ;;  %v2559_v20 = vld [vmem:[#allocation2] sm:$0xff]  ;;  %v2556_v59 = vld [vmem:[#allocation2 + $0x28] sm:$0xff] }
 0x2e9   : > { %3042 = vmatprep.subr.mxu1 %v2616_v47  ;;  %3008 = vmatpush3.msra.mxu0 %v2568_v48  ;;  %v2610_v55 = vld [vmem:[#allocation5 + $0x180] sm:$0xff]  ;;  %v2558_v50 = vld [vmem:[#allocation2 + $0x8] sm:$0xff]  ;;  %v2561_v7 = vld [vmem:[#allocation2 + $0x20] sm:$0xff] }
 0x2ea   : > { %3043 = vmatpush3.msra.mxu1 %v2600_v26  ;;  %3009 = vmatprep.subr.mxu0 %v2583_v10  ;;  %v2562_v61 = vld [vmem:[#allocation5] sm:$0xff]  ;;  %v2657_v57 = vld [vmem:[#allocation5 + $0x2f8] sm:$0xff]  ;;  %v2656_v28 = vld [vmem:[#allocation5 + $0x2f0] sm:$0xff] }
 0x2eb   : > { %3044 = vmatprep.subr.mxu1 %v2615_v4  ;;  %3010 = vmatpush3.msra.mxu0 %v2567_v17  ;;  %v2557_v15 = vld [vmem:[#allocation2 + $0x10] sm:$0xff]  ;;  %v2641_v0 = vld [vmem:[#allocation5 + $0x278] sm:$0xff]  ;;  %v2640_v31 = vld [vmem:[#allocation5 + $0x270] sm:$0xff] }
 0x2ec   : > { %3045 = vmatpush3.msra.mxu1 %v2599_v38  ;;  %3011 = vmatprep.subr.mxu0 %v2582_v41  ;;  %v2594_v33 = vld [vmem:[#allocation5 + $0x100] sm:$0xff]  ;;  %v2655_v14 = vld [vmem:[#allocation5 + $0x2e8] sm:$0xff]  ;;  %v2653_v56 = vld [vmem:[#allocation5 + $0x2d8] sm:$0xff] }
 0x2ed   : > { %3046 = vmatprep.subr.mxu1 %v2614_v27  ;;  %3012 = vmatpush3.msra.mxu0 %v2566_v44  ;;  %v2639_v18 = vld [vmem:[#allocation5 + $0x268] sm:$0xff]  ;;  %v2654_v40 = vld [vmem:[#allocation5 + $0x2e0] sm:$0xff]  ;;  %v2637_v35 = vld [vmem:[#allocation5 + $0x258] sm:$0xff] }
 0x2ee   : > { %3047 = vmatpush3.msra.mxu1 %v2598_v53  ;;  %3013 = vmatprep.subr.mxu0 %v2581_v6  ;;  %v2638_v19 = vld [vmem:[#allocation5 + $0x260] sm:$0xff]  ;;  %v2652_v8 = vld [vmem:[#allocation5 + $0x2d0] sm:$0xff]  ;;  %v2651_v34 = vld [vmem:[#allocation5 + $0x2c8] sm:$0xff] }
 0x2ef   : > { %3048 = vmatprep.subr.mxu1 %v2613_v46  ;;  %3014 = vmatpush3.msra.mxu0 %v2565_v21  ;;  %v2636_v30 = vld [vmem:[#allocation5 + $0x250] sm:$0xff]  ;;  %v2635_v52 = vld [vmem:[#allocation5 + $0x248] sm:$0xff]  ;;  %v2650_v58 = vld [vmem:[#allocation5 + $0x2c0] sm:$0xff] }
 0x2f0   : > { %3049 = vmatpush3.msra.mxu1 %v2597_v5  ;;  %3015 = vmatprep.subr.mxu0 %v2580_v1  ;;  %v2634_v16 = vld [vmem:[#allocation5 + $0x240] sm:$0xff]  ;;  %v2649_v45 = vld [vmem:[#allocation5 + $0x2b8] sm:$0xff]  ;;  %v2648_v62 = vld [vmem:[#allocation5 + $0x2b0] sm:$0xff] }
 0x2f1   : > { %3050 = vmatprep.subr.mxu1 %v2612_v39  ;;  %3016 = vmatpush3.msra.mxu0 %v2564_v23  ;;  %v2633_v29 = vld [vmem:[#allocation5 + $0x238] sm:$0xff]  ;;  %v2632_v37 = vld [vmem:[#allocation5 + $0x230] sm:$0xff]  ;;  %v2647_v2 = vld [vmem:[#allocation5 + $0x2a8] sm:$0xff] }
 0x2f2   : > { %3051 = vmatpush3.msra.mxu1 %v2596_v54  ;;  %3017 = vmatprep.subr.mxu0 %v2579_v42  ;;  %v2631_v43 = vld [vmem:[#allocation5 + $0x228] sm:$0xff]  ;;  %v2646_v13 = vld [vmem:[#allocation5 + $0x2a0] sm:$0xff]  ;;  %v2645_v49 = vld [vmem:[#allocation5 + $0x298] sm:$0xff] }
 0x2f3   : > { %3052 = vmatprep.subr.mxu1 %v2611_v11  ;;  %3018 = vmatpush3.msra.mxu0 %v2563_v32  ;;  %v2630_v24 = vld [vmem:[#allocation5 + $0x220] sm:$0xff]  ;;  %v2629_v12 = vld [vmem:[#allocation5 + $0x218] sm:$0xff]  ;;  %v2644_v51 = vld [vmem:[#allocation5 + $0x290] sm:$0xff] }
 0x2f4   : > { %3053 = vmatpush3.msra.mxu1 %v2595_v63  ;;  %3019 = vmatprep.subr.mxu0 %v2578_v60  ;;  %v2628_v9 = vld [vmem:[#allocation5 + $0x210] sm:$0xff]  ;;  %v2643_v3 = vld [vmem:[#allocation5 + $0x288] sm:$0xff]  ;;  %v2642_v36 = vld [vmem:[#allocation5 + $0x280] sm:$0xff] }
 0x2f5   : > { %3054 = vmatprep.subr.mxu1 %v2610_v55  ;;  %3020 = vmatpush3.msra.mxu0 %v2562_v61  ;;  %v2627_v22 = vld [vmem:[#allocation5 + $0x208] sm:$0xff]  ;;  %v2626_v25 = vld [vmem:[#allocation5 + $0x200] sm:$0xff] }
 0x2f6   : > { %2722 = vmatprep.mubr.f32.mxu0 %v2557_v15  ;;  %3055 = vmatpush3.msra.mxu1 %v2594_v33  ;;  %v2560_v47 = vld [vmem:[#allocation2 + $0x18] sm:$0xff]  ;;  %v2985_v46 = vld [vmem:[#allocation7] ss:$0 sm:$0xff] }
 0x2f7   : > { %2792 = vmatprep.mubr.f32.mxu1 %v2559_v20  ;;  %2723 = vmatmul.mubr.f32.vlgmr.msra.gmra.mxu0 %v2556_v59 }
 0x2f8   : > { %2793 = vmatmul.mubr.f32.vlgmr.msra.gmra.mxu1 %v2558_v50  ;;  %3059 = vmatprep.subr.mxu0 %v2657_v57 }
 0x2f9   : > { %2862 = vmatprep.mubr.f32.mxu0 %v2561_v7  ;;  %3060 = vmatpush3.msra.mxu0 %v2641_v0 }
 0x2fa   : > { %3061 = vmatprep.subr.mxu0 %v2656_v28 }
 0x2fb   : > { %3062 = vmatpush3.msra.mxu0 %v2640_v31 }
 0x2fc   : > { %3063 = vmatprep.subr.mxu0 %v2655_v14 }
 0x2fd   : > { %3064 = vmatpush3.msra.mxu0 %v2639_v18 }
 0x2fe   : > { %3065 = vmatprep.subr.mxu0 %v2654_v40 }
 0x2ff   : > { %3066 = vmatpush3.msra.mxu0 %v2638_v19 }
 0x300   : > { %3067 = vmatprep.subr.mxu0 %v2653_v56 }
 0x301   : > { %3068 = vmatpush3.msra.mxu0 %v2637_v35 }
 0x302   : > { %3069 = vmatprep.subr.mxu0 %v2652_v8 }
 0x303   : > { %3070 = vmatpush3.msra.mxu0 %v2636_v30 }
 0x304   : > { %3071 = vmatprep.subr.mxu0 %v2651_v34 }
 0x305   : > { %3072 = vmatpush3.msra.mxu0 %v2635_v52 }
 0x306   : > { %3073 = vmatprep.subr.mxu0 %v2650_v58 }
 0x307   : > { %3074 = vmatpush3.msra.mxu0 %v2634_v16 }
 0x308   : > { %3075 = vmatprep.subr.mxu0 %v2649_v45 }
 0x309   : > { %3076 = vmatpush3.msra.mxu0 %v2633_v29 }
 0x30a   : > { %3077 = vmatprep.subr.mxu0 %v2648_v62 }
 0x30b   : > { %3078 = vmatpush3.msra.mxu0 %v2632_v37 }
 0x30c   : > { %3079 = vmatprep.subr.mxu0 %v2647_v2 }
 0x30d   : > { %3080 = vmatpush3.msra.mxu0 %v2631_v43 }
 0x30e   : > { %3081 = vmatprep.subr.mxu0 %v2646_v13 }
 0x30f   : > { %3082 = vmatpush3.msra.mxu0 %v2630_v24 }
 0x310   : > { %3083 = vmatprep.subr.mxu0 %v2645_v49 }
 0x311   : > { %3084 = vmatpush3.msra.mxu0 %v2629_v12 }
 0x312   : > { %3085 = vmatprep.subr.mxu0 %v2644_v51 }
 0x313   : > { %3086 = vmatpush3.msra.mxu0 %v2628_v9 }
 0x314   : > { %3087 = vmatprep.subr.mxu0 %v2643_v3 }
 0x315   : > { %3088 = vmatpush3.msra.mxu0 %v2627_v22 }
 0x316   : > { %3089 = vmatprep.subr.mxu0 %v2642_v36 }
 0x317   : > { %3090 = vmatpush3.msra.mxu0 %v2626_v25 }
 0x318   : > { %2863 = vmatmul.mubr.f32.vlgmr.msra.gmra.mxu0 %v2560_v47 }
 0x3b7   : > { %v3021_v48 = vpop.f32.mrf.mxu0 }
 0x3b8   : > { %v3056_v26 = vpop.f32.mrf.mxu1 }
 0x3b9   : > { %v3022_v10 = vpop.f32.mrf.mxu0 }
 0x3ba   : > { %v3057_v4 = vpop.f32.mrf.mxu1  ;;  %v3023_v17 = vadd.f32 %v3022_v10, %v3021_v48 }
 0x3bb   : > { %v3058_v38 = vadd.f32 %v3057_v4, %v3056_v26 }
 0x3bd   : > { %v2795_v44 = vadd.f32 %v3058_v38, %v3023_v17 }
 0x3d8   : > { %v3091_v41 = vpop.f32.mrf.mxu0 }
 0x3da   : > { %v3092_v27 = vpop.f32.mrf.mxu0 }
 0x3db   : > { %v3093_v53 = vadd.f32 %v3092_v27, %v3091_v41 }
 0x3dd   : > { %v2865_v6 = vadd.f32 %v3093_v53, %v2795_v44 }
 0x3df   : > { %v2868_v21 = vmul.f32 0.00390625, %v2865_v6 }
 0x3e1   : > { %v2876_v5 = vadd.f32 %v2985_v46, %v2868_v21 }
 0x3e3   : > { %2877 = vst [vmem:[%s7130_s3] sm:$0xff] %v2876_v5 }
 0x3e4 PF: > { %s17_s17 = sadd.s32 1, %s3290_s17   ;;  %s9274_s12 = smov %s3274_s13 }
 0x3e5   : > { %p14_p10 = scmp.ge.s32.totalorder %s17_s17, 4   ;;  %s9275_s13 = smov %s3278_s14 }
 0x3e6   : > { %s9276_s14 = smov %s3379_s25  ;;  %s9277_s15 = smov %s3286_s16 }
 0x3e7   : > { %s9278_s16 = smov %s9280_s19  ;;  %16 = sbr.rel (!%p14_p10) target bundleno = 5 (0x5), region = 93 }
 0x3ec   :  { %2897 = vsyncpa [#allocation4], 1 }
 0x3ed   :  { %2899 = vsyncpa [#allocation4 + $0x1], 1 }
 0x3ee   :  { %2900 = vsyncpa [#allocation6], 1 }

</bundles_post_ra>
